<compile_context>
chip_gen: v7x
topology: tpu7x:2x2x1
jax: 0.10.0
libtpu: 0.0.40
codegen_flags: <defaults>
</compile_context>

<pallas_src>
import jax
import jax.numpy as jnp
from jax import lax
from jax.experimental import pallas as pl
from jax.experimental.pallas import tpu as pltpu

DIM = 768
HEADS = 12
DIM_HEAD = 64
SCALE = DIM_HEAD ** -0.5  # 0.125
HPAD = 128                # head axis padded to one full lane tile


# ----------------------------------------------------------------------------
# Fused kernel: one grid step == one cross-attention (+ its folded to_out/fusion
# projection).  Only the CLS query row is computed (K/V stay full length), which
# matches MMFusion.forward exactly (it only consumes [:, 0, :]).
# ----------------------------------------------------------------------------
def _mmf_kernel(sel_ref, qcls_ref, kv_ref, wq_ref, wkv_ref, wof_ref, o_ref):
    B = qcls_ref.shape[1]
    BN = kv_ref.shape[1]
    N = BN // B

    sel = sel_ref[...]          # (768, 128) bf16 head-selector (shared across steps)
    qcls = qcls_ref[0]          # (B, 768)   bf16
    kvx = kv_ref[0]             # (B*N, 768) bf16

    # Projections: Q for the CLS token only; K and V fused in one matmul.
    q = jnp.dot(qcls, wq_ref[0], preferred_element_type=jnp.float32)     # (B, 768)   f32
    kvp = jnp.dot(kvx, wkv_ref[0], preferred_element_type=jnp.float32)   # (B*N,1536) f32

    k = kvp[:, :DIM].reshape(B, N, DIM)                                  # (B, N, 768)
    v = kvp[:, DIM:].reshape(B, N, DIM)                                  # (B, N, 768)

    # Per-head scores for the single CLS query (batched over B):
    #   scores[b, n, h] = scale * sum_d q[b, d] * k[b, n, d] * sel[d, h]
    prod = (k * q[:, None, :]).astype(jnp.bfloat16).reshape(B * N, DIM)  # (B*N, 768) bf16
    scores = jnp.dot(prod, sel,
                     preferred_element_type=jnp.float32).reshape(B, N, HPAD) * SCALE

    # Softmax over the key axis (axis=1), f32 throughout.  The 116 zero-padded head
    # columns give scores=0 -> attn=1/N and are annihilated by the second sel matmul.
    m = jnp.max(scores, axis=1, keepdims=True)
    e = jnp.exp(scores - m)
    denom = jnp.sum(e, axis=1, keepdims=True)
    attn = e * pl.reciprocal(denom, approx=True)                         # (B, N, 128)

    # Expand head weights back to channels (contract sel on its head axis; no explicit
    # transpose) and reduce over keys:  cls[b, d] = sum_n attn[b, n, head(d)] * v[b, n, d]
    attn_full = lax.dot_general(
        attn.astype(jnp.bfloat16).reshape(B * N, HPAD), sel,
        (((1,), (1,)), ((), ())),
        preferred_element_type=jnp.float32).reshape(B, N, DIM)
    cls_out = jnp.sum(attn_full * v, axis=1)                             # (B, 768) f32

    # Folded (to_out o fusion-half) projection; all biases live in the wrapper.
    o_ref[0] = jnp.dot(cls_out.astype(jnp.bfloat16), wof_ref[0],
                       preferred_element_type=jnp.float32)               # (B, 768)

    # TODO(synk): tile the key axis with an online-softmax accumulator if N grows
    # beyond a few hundred tokens (kvp is (B*N, 1536) f32 in VMEM today).


# ----------------------------------------------------------------------------
# One-time parameter packing (outside the hot path): transpose to (in, out),
# fuse K/V weights, fold Wo with its fusion half (f32 compose, bf16 cast),
# fold bo @ Wf_half into the fusion bias, build the head-selector matrix.
# ----------------------------------------------------------------------------
def pack_params(params):
    wq1, wk1, wv1, wo1, bo1 = params["attn1"]
    wq2, wk2, wv2, wo2, bo2 = params["attn2"]
    ww, bw = params["w"]  # ww: (768, 1536) torch Linear layout (out, in), bw: (768,)

    wf1 = ww[:, :DIM].T   # (768, 768): maps attn1 CLS -> output
    wf2 = ww[:, DIM:].T   # (768, 768): maps attn2 CLS -> output

    wq = jnp.stack([wq1.T, wq2.T]).astype(jnp.bfloat16)                       # (2, 768, 768)
    wkv = jnp.stack([jnp.concatenate([wk1.T, wv1.T], axis=1),
                     jnp.concatenate([wk2.T, wv2.T], axis=1)]).astype(jnp.bfloat16)  # (2, 768, 1536)
    # mixed = (cls1 @ Wo1^T + bo1) @ wf1 + (cls2 @ Wo2^T + bo2) @ wf2 + bw
    #       =  cls1 @ (Wo1^T @ wf1) + cls2 @ (Wo2^T @ wf2) + [bo1@wf1 + bo2@wf2 + bw]
    wof = jnp.stack([wo1.T @ wf1, wo2.T @ wf2]).astype(jnp.bfloat16)          # (2, 768, 768)
    bias = (bo1 @ wf1 + bo2 @ wf2 + bw).astype(jnp.float32)                   # (768,)

    # Head selector: sel[d, h] = 1 iff channel d belongs to head h (h < 12; cols
    # 12..127 are zero padding).  Exact 0/1 values -> lossless in bf16.
    sel = (jnp.arange(DIM)[:, None] // DIM_HEAD
           == jnp.arange(HPAD)[None, :]).astype(jnp.bfloat16)                 # (768, 128)

    return {"wq": wq, "wkv": wkv, "wof": wof, "bias": bias, "sel": sel}


# ----------------------------------------------------------------------------
# MMFusion forward (single pallas_call launch)
# ----------------------------------------------------------------------------
def mmfusion_forward(packed, rgb, seg):
    B, N, C = rgb.shape
    assert C == DIM

    # Step 0: attn1(q=rgb, kv=seg); step 1: attn2(q=seg, kv=rgb).  Only the CLS
    # query row is ever consumed, so only it is shipped to the kernel.
    q_cls = jnp.stack([rgb[:, 0, :], seg[:, 0, :]], axis=0).astype(jnp.bfloat16)   # (2, B, 768)
    kv = jnp.stack([seg, rgb], axis=0).reshape(2, B * N, C).astype(jnp.bfloat16)   # (2, B*N, 768)

    y = pl.pallas_call(
        _mmf_kernel,
        out_shape=jax.ShapeDtypeStruct((2, B, DIM), jnp.float32),
        grid=(2,),
        in_specs=[
            pl.BlockSpec((DIM, HPAD), lambda i: (0, 0)),             # sel (shared, bf16)
            pl.BlockSpec((1, B, DIM), lambda i: (i, 0, 0)),          # q_cls
            pl.BlockSpec((1, B * N, DIM), lambda i: (i, 0, 0)),      # kv
            pl.BlockSpec((1, DIM, DIM), lambda i: (i, 0, 0)),        # Wq^T            (bf16)
            pl.BlockSpec((1, DIM, 2 * DIM), lambda i: (i, 0, 0)),    # [Wk|Wv]^T       (bf16)
            pl.BlockSpec((1, DIM, DIM), lambda i: (i, 0, 0)),        # Wo^T @ Wf_half  (bf16)
        ],
        out_specs=pl.BlockSpec((1, B, DIM), lambda i: (i, 0, 0)),
        compiler_params=pltpu.CompilerParams(
            dimension_semantics=("parallel",),   # one attention per TensorCore on v7x
        ),
    )(packed["sel"], q_cls, kv, packed["wq"], packed["wkv"], packed["wof"])

    # Combine the two partial fusion results + the fully folded fusion bias.
    return y[0] + y[1] + packed["bias"]


# ----------------------------------------------------------------------------
# Pure-JAX f32 reference (mirrors the PyTorch module exactly)
# ----------------------------------------------------------------------------
def _ref_attention(xq, xk, xv, wq, wk, wv, wo, bo):
    q = xq @ wq.T
    k = xk @ wk.T
    v = xv @ wv.T
    B, N, _ = q.shape

    def split(t):
        return t.reshape(B, N, HEADS, DIM_HEAD).transpose(0, 2, 1, 3)

    q, k, v = split(q), split(k), split(v)
    dots = jnp.einsum("bhnd,bhmd->bhnm", q, k) * SCALE
    attn = jax.nn.softmax(dots, axis=-1)
    out = jnp.einsum("bhnm,bhmd->bhnd", attn, v)
    out = out.transpose(0, 2, 1, 3).reshape(B, N, HEADS * DIM_HEAD)
    return out @ wo.T + bo


def _ref_forward(params, rgb, seg):
    r2s = _ref_attention(rgb, seg, seg, *params["attn1"])
    s2r = _ref_attention(seg, rgb, rgb, *params["attn2"])
    cat = jnp.concatenate((r2s[:, 0, :], s2r[:, 0, :]), axis=1)
    ww, bw = params["w"]
    return cat @ ww.T + bw


# ----------------------------------------------------------------------------
def _init_params(key):
    ks = jax.random.split(key, 11)
    s = 0.02

    def lin(k, out_dim, in_dim):
        return jax.random.normal(k, (out_dim, in_dim), jnp.float32) * s

    attn1 = (lin(ks[0], DIM, DIM), lin(ks[1], DIM, DIM), lin(ks[2], DIM, DIM),
             lin(ks[3], DIM, DIM), jax.random.normal(ks[4], (DIM,), jnp.float32) * s)
    attn2 = (lin(ks[5], DIM, DIM), lin(ks[6], DIM, DIM), lin(ks[7], DIM, DIM),
             lin(ks[8], DIM, DIM), jax.random.normal(ks[9], (DIM,), jnp.float32) * s)
    kw, kb = jax.random.split(ks[10])
    w = (jax.random.normal(kw, (DIM, 2 * DIM), jnp.float32) * s,
         jax.random.normal(kb, (DIM,), jnp.float32) * s)
    return {"attn1": attn1, "attn2": attn2, "w": w}


if __name__ == "__main__":
    key = jax.random.PRNGKey(0)
    kp, kr, ks = jax.random.split(key, 3)

    B, N = 2, 8  # channel dim fixed at 768 by the module
    params = _init_params(kp)
    rgb = jax.random.normal(kr, (B, N, DIM), jnp.float32)
    seg = jax.random.normal(ks, (B, N, DIM), jnp.float32)

    packed = pack_params(params)  # one-time weight packing (transpose/fuse/fold/bf16)
    fwd = jax.jit(mmfusion_forward)

    out = jax.block_until_ready(fwd(packed, rgb, seg))
    ref = _ref_forward(params, rgb, seg)

    assert out.shape == (B, DIM)
    assert bool(jnp.all(jnp.isfinite(out))), "non-finite output"
    # bf16 weights/activations on the MXU path -> loose tolerance vs the f32 reference.
    assert jnp.allclose(out, ref, atol=2e-2, rtol=2e-2), "mismatch vs reference"

    print("KERNEL_OK")
</pallas_src>

<mosaic_0001>
module attributes {stable_mosaic.version = 11 : i64} {
  func.func @_mmf_kernel(%arg0: i32, %arg1: memref<768x128xbf16, #tpu.memory_space<vmem>>, %arg2: memref<1x2x768xbf16, #tpu.memory_space<vmem>>, %arg3: memref<1x16x768xbf16, #tpu.memory_space<vmem>>, %arg4: memref<1x768x768xbf16, #tpu.memory_space<vmem>>, %arg5: memref<1x768x1536xbf16, #tpu.memory_space<vmem>>, %arg6: memref<1x768x768xbf16, #tpu.memory_space<vmem>>, %arg7: memref<1x2x768xf32, #tpu.memory_space<vmem>>) attributes {dimension_semantics = [#tpu.dimension_semantics<parallel>], iteration_bounds = array<i64: 2>, scalar_prefetch = 0 : i64, scratch_operands = 0 : i64, tpu.core_type = #tpu.core_type<tc>, window_params = [{pipeline_mode = #tpu.pipeline_mode<synchronous>, transform_indices = @transform_0, window_bounds = array<i64: 768, 128>}, {transform_indices = @transform_1, window_bounds = array<i64: 1, 2, 768>}, {transform_indices = @transform_2, window_bounds = array<i64: 1, 16, 768>}, {transform_indices = @transform_3, window_bounds = array<i64: 1, 768, 768>}, {transform_indices = @transform_4, window_bounds = array<i64: 1, 768, 1536>}, {transform_indices = @transform_5, window_bounds = array<i64: 1, 768, 768>}, {transform_indices = @transform_6, window_bounds = array<i64: 1, 2, 768>}]} {
    %c0 = arith.constant 0 : index
    %c0_0 = arith.constant 0 : index
    %0 = vector.load %arg1[%c0, %c0_0] : memref<768x128xbf16, #tpu.memory_space<vmem>>, vector<768x128xbf16>
    %c0_1 = arith.constant 0 : index
    %c0_2 = arith.constant 0 : index
    %c0_3 = arith.constant 0 : index
    %1 = vector.load %arg2[%c0_1, %c0_2, %c0_3] : memref<1x2x768xbf16, #tpu.memory_space<vmem>>, vector<1x2x768xbf16>
    %2 = vector.shape_cast %1 : vector<1x2x768xbf16> to vector<2x768xbf16>
    %c0_4 = arith.constant 0 : index
    %c0_5 = arith.constant 0 : index
    %c0_6 = arith.constant 0 : index
    %3 = vector.load %arg3[%c0_4, %c0_5, %c0_6] : memref<1x16x768xbf16, #tpu.memory_space<vmem>>, vector<1x16x768xbf16>
    %4 = vector.shape_cast %3 : vector<1x16x768xbf16> to vector<16x768xbf16>
    %c0_7 = arith.constant 0 : index
    %c0_8 = arith.constant 0 : index
    %c0_9 = arith.constant 0 : index
    %5 = vector.load %arg4[%c0_7, %c0_8, %c0_9] : memref<1x768x768xbf16, #tpu.memory_space<vmem>>, vector<1x768x768xbf16>
    %6 = vector.shape_cast %5 : vector<1x768x768xbf16> to vector<768x768xbf16>
    %cst = arith.constant dense<0.000000e+00> : vector<2x768xf32>
    %7 = tpu.matmul %2, %6, %cst {dimension_numbers = #tpu.dot_dimension_numbers<[1], [0], [0], [1], [0, 0, 1, 1], [], []>} : vector<2x768xbf16>, vector<768x768xbf16>, vector<2x768xf32> -> vector<2x768xf32>
    %c0_10 = arith.constant 0 : index
    %c0_11 = arith.constant 0 : index
    %c0_12 = arith.constant 0 : index
    %8 = vector.load %arg5[%c0_10, %c0_11, %c0_12] : memref<1x768x1536xbf16, #tpu.memory_space<vmem>>, vector<1x768x1536xbf16>
    %9 = vector.shape_cast %8 : vector<1x768x1536xbf16> to vector<768x1536xbf16>
    %cst_13 = arith.constant dense<0.000000e+00> : vector<16x1536xf32>
    %10 = tpu.matmul %4, %9, %cst_13 {dimension_numbers = #tpu.dot_dimension_numbers<[1], [0], [0], [1], [0, 0, 1, 1], [], []>} : vector<16x768xbf16>, vector<768x1536xbf16>, vector<16x1536xf32> -> vector<16x1536xf32>
    %11 = vector.extract_strided_slice %10 {offsets = [0, 0], sizes = [16, 768], strides = [1, 1]} : vector<16x1536xf32> to vector<16x768xf32>
    %12 = vector.shape_cast %11 : vector<16x768xf32> to vector<2x8x768xf32>
    %13 = vector.extract_strided_slice %10 {offsets = [0, 768], sizes = [16, 768], strides = [1, 1]} : vector<16x1536xf32> to vector<16x768xf32>
    %14 = vector.shape_cast %13 : vector<16x768xf32> to vector<2x8x768xf32>
    %15 = vector.shape_cast %7 : vector<2x768xf32> to vector<2x1x768xf32>
    %16 = vector.broadcast %15 : vector<2x1x768xf32> to vector<2x8x768xf32>
    %17 = arith.mulf %12, %16 : vector<2x8x768xf32>
    %18 = arith.truncf %17 : vector<2x8x768xf32> to vector<2x8x768xbf16>
    %19 = vector.shape_cast %18 : vector<2x8x768xbf16> to vector<16x768xbf16>
    %cst_14 = arith.constant dense<0.000000e+00> : vector<16x128xf32>
    %20 = tpu.matmul %19, %0, %cst_14 {dimension_numbers = #tpu.dot_dimension_numbers<[1], [0], [0], [1], [0, 0, 1, 1], [], []>} : vector<16x768xbf16>, vector<768x128xbf16>, vector<16x128xf32> -> vector<16x128xf32>
    %21 = vector.shape_cast %20 : vector<16x128xf32> to vector<2x8x128xf32>
    %cst_15 = arith.constant 1.250000e-01 : f32
    %22 = vector.broadcast %cst_15 : f32 to vector<2x8x128xf32>
    %23 = arith.mulf %21, %22 : vector<2x8x128xf32>
    %cst_16 = arith.constant dense<0xFF800000> : vector<2x128xf32>
    %24 = vector.multi_reduction <maximumf>, %23, %cst_16 [1] : vector<2x8x128xf32> to vector<2x128xf32>
    %25 = vector.shape_cast %24 : vector<2x128xf32> to vector<2x1x128xf32>
    %26 = vector.broadcast %25 : vector<2x1x128xf32> to vector<2x8x128xf32>
    %27 = arith.subf %23, %26 : vector<2x8x128xf32>
    %28 = math.exp %27 : vector<2x8x128xf32>
    %cst_17 = arith.constant dense<0.000000e+00> : vector<2x128xf32>
    %29 = vector.multi_reduction <add>, %28, %cst_17 [1] : vector<2x8x128xf32> to vector<2x128xf32>
    %30 = vector.shape_cast %29 : vector<2x128xf32> to vector<2x1x128xf32>
    %31 = tpu.reciprocal %30 {approx = true} : vector<2x1x128xf32> -> vector<2x1x128xf32>
    %32 = vector.broadcast %31 : vector<2x1x128xf32> to vector<2x8x128xf32>
    %33 = arith.mulf %28, %32 : vector<2x8x128xf32>
    %34 = arith.truncf %33 : vector<2x8x128xf32> to vector<2x8x128xbf16>
    %35 = vector.shape_cast %34 : vector<2x8x128xbf16> to vector<16x128xbf16>
    %cst_18 = arith.constant dense<0.000000e+00> : vector<16x768xf32>
    %36 = tpu.matmul %35, %0, %cst_18 {dimension_numbers = #tpu.dot_dimension_numbers<[1], [1], [0], [0], [0, 0, 1, 0], [], []>} : vector<16x128xbf16>, vector<768x128xbf16>, vector<16x768xf32> -> vector<16x768xf32>
    %37 = vector.shape_cast %36 : vector<16x768xf32> to vector<2x8x768xf32>
    %38 = arith.mulf %37, %14 : vector<2x8x768xf32>
    %cst_19 = arith.constant dense<0.000000e+00> : vector<2x768xf32>
    %39 = vector.multi_reduction <add>, %38, %cst_19 [1] : vector<2x8x768xf32> to vector<2x768xf32>
    %40 = arith.truncf %39 : vector<2x768xf32> to vector<2x768xbf16>
    %c0_20 = arith.constant 0 : index
    %c0_21 = arith.constant 0 : index
    %c0_22 = arith.constant 0 : index
    %41 = vector.load %arg6[%c0_20, %c0_21, %c0_22] : memref<1x768x768xbf16, #tpu.memory_space<vmem>>, vector<1x768x768xbf16>
    %42 = vector.shape_cast %41 : vector<1x768x768xbf16> to vector<768x768xbf16>
    %cst_23 = arith.constant dense<0.000000e+00> : vector<2x768xf32>
    %43 = tpu.matmul %40, %42, %cst_23 {dimension_numbers = #tpu.dot_dimension_numbers<[1], [0], [0], [1], [0, 0, 1, 1], [], []>} : vector<2x768xbf16>, vector<768x768xbf16>, vector<2x768xf32> -> vector<2x768xf32>
    %c0_24 = arith.constant 0 : index
    %c0_25 = arith.constant 0 : index
    %c0_26 = arith.constant 0 : index
    %44 = vector.load %arg7[%c0_24, %c0_25, %c0_26] : memref<1x2x768xf32, #tpu.memory_space<vmem>>, vector<1x2x768xf32>
    %45 = vector.shape_cast %44 : vector<1x2x768xf32> to vector<2x768xf32>
    %46 = vector.shape_cast %43 : vector<2x768xf32> to vector<1x2x768xf32>
    tpu.vector_store %arg7[%c0_24, %c0_25, %c0_26], %46 {strides = array<i32>} : memref<1x2x768xf32, #tpu.memory_space<vmem>>, vector<1x2x768xf32>,
    return
  }
  func.func @transform_0(%arg0: i32) -> (i32, i32) {
    %c0_i32 = arith.constant 0 : i32
    %c0_i32_0 = arith.constant 0 : i32
    %c0_i32_1 = arith.constant 0 : i32
    return %c0_i32, %c0_i32_0 : i32, i32
  }
  func.func @transform_1(%arg0: i32) -> (i32, i32, i32) {
    %c0_i32 = arith.constant 0 : i32
    %c0_i32_0 = arith.constant 0 : i32
    %c0_i32_1 = arith.constant 0 : i32
    return %arg0, %c0_i32, %c0_i32_0 : i32, i32, i32
  }
  func.func @transform_2(%arg0: i32) -> (i32, i32, i32) {
    %c0_i32 = arith.constant 0 : i32
    %c0_i32_0 = arith.constant 0 : i32
    %c0_i32_1 = arith.constant 0 : i32
    return %arg0, %c0_i32, %c0_i32_0 : i32, i32, i32
  }
  func.func @transform_3(%arg0: i32) -> (i32, i32, i32) {
    %c0_i32 = arith.constant 0 : i32
    %c0_i32_0 = arith.constant 0 : i32
    %c0_i32_1 = arith.constant 0 : i32
    return %arg0, %c0_i32, %c0_i32_0 : i32, i32, i32
  }
  func.func @transform_4(%arg0: i32) -> (i32, i32, i32) {
    %c0_i32 = arith.constant 0 : i32
    %c0_i32_0 = arith.constant 0 : i32
    %c0_i32_1 = arith.constant 0 : i32
    return %arg0, %c0_i32, %c0_i32_0 : i32, i32, i32
  }
  func.func @transform_5(%arg0: i32) -> (i32, i32, i32) {
    %c0_i32 = arith.constant 0 : i32
    %c0_i32_0 = arith.constant 0 : i32
    %c0_i32_1 = arith.constant 0 : i32
    return %arg0, %c0_i32, %c0_i32_0 : i32, i32, i32
  }
  func.func @transform_6(%arg0: i32) -> (i32, i32, i32) {
    %c0_i32 = arith.constant 0 : i32
    %c0_i32_0 = arith.constant 0 : i32
    %c0_i32_1 = arith.constant 0 : i32
    return %arg0, %c0_i32, %c0_i32_0 : i32, i32, i32
  }
}

</mosaic_0001>

<bundles_post_ra>
// kernel: mmfusion_forward.1
= control target key start
LH: loop header
LB: loop body
LE: loop exit
PB: predicated region body
PF: predicated region fallthrough
CT: control target
= control target key end

     0   :  { %s15552_s0 = inlined_call_operand.hbm [shape: bf16[768,128], index: 0, kind: input, shape index: {}]   ;;  %s15553_s1 = inlined_call_operand.vmem [shape: bf16[2,2,768], index: 1, kind: input, shape index: {}]   ;;  %s15554_s2 = inlined_call_operand.vmem [shape: bf16[2,16,768], index: 2, kind: input, shape index: {}]   ;;  %s15555_s3 = inlined_call_operand.hbm [shape: bf16[2,768,768], index: 3, kind: input, shape index: {}]   ;;  %s15556_s4 = inlined_call_operand.hbm [shape: bf16[2,768,1536], index: 4, kind: input, shape index: {}]   ;;  %s15557_s5 = inlined_call_operand.hbm [shape: bf16[2,768,768], index: 5, kind: input, shape index: {}]   ;;  %s15558_s6 = inlined_call_operand.vmem [shape: f32[2,2,768], index: 6, kind: output, shape index: {}]  }
   0x1   :  { %15573 = sst [smem:[#allocation15_spill]] %s15555_s3 }
   0x2   :  { %11 = vsyncpa [#allocation3], 0 }
   0x3   :  { %12 = vsyncpa [#allocation5], 0 }
   0x4   :  { %14 = vsyncpa [#allocation5 + $0x1], 0 }
   0x5   :  { %15 = vsyncpa [#allocation8], 0 }
   0x6   :  { %17 = vsyncpa [#allocation8 + $0x1], 0  ;;  %s13648_s21 = smov 0   ;;  %s13650_s22 = smov 0  }
   0x7   :  { %s13652_s23 = smov 0   ;;  %s13654_s24 = smov 0  }
   0x8 LB: > { %15574 = sst [smem:[#allocation12_spill]] %s13595_s23  ;;  %s13669_s25 = sadd.s32 1, %s13599_s24   ;;  %s13599_s24 = sphi %s13654_s24, %s15594_s24   ;;  %s13595_s23 = sphi %s13652_s23, %s15596_s23   ;;  %s13591_s22 = sphi %s13650_s22, %s15598_s22   ;;  %s13587_s21 = sphi %s13648_s21, %s15597_s21  }
   0x9   : > { %15575 = sst [smem:[#allocation13_spill]] %s13669_s25  ;;  %s103_s26 = sadd.s32 1, %s13595_s23 }
   0xa   : > { %s100_s27 = ssub.s32 %s13599_s24, %s13669_s25  ;;  %p110_p0 = scmp.ne.s32.totalorder %s13595_s23, %s13591_s22 }
   0xb   : > { %p101_p1 = scmp.eq.s32.totalorder %s100_s27, 0  ;;  %p111_p2 = scmp.eq.s32.totalorder %s13599_s24, 0 }
   0xc   : > { %p11584_p3 = scmp.lt.s32.totalorder %s13599_s24, 2  ;;  %s246_s29 = sand.u32 1, %s13599_s24  }
   0xd   : > { %s13679_s28 = scalar_select %p101_p1, %s13595_s23, %s103_s26  }
   0xe   : > { %p112_p4 = por %p111_p2, %p110_p0  ;;  %s13683_s30 = sand.u32 1, %s13595_s23  }
   0xf   : > { %15576 = sst [smem:[#allocation14_spill]] %s13679_s28  ;;  %s15561_s7 = smul.u32 2304, %s13683_s30 }
  0x10   : > { %p13686_p5 = pnand %p11584_p3, %p112_p4  ;;  %s15562_s9 = smul.u32 36864, %s13599_s24 }
  0x11   : > { %s15578_s3 = sld [smem:[#allocation15_spill]]  ;;  %s250_s13 = scalar_lea.vmem [#allocation4], %s15561_s7 }
  0x12   : > { %s15577_s8 = scalar_select %p13686_p5, 1, 0 }
  0x13   : > { %s257_s14 = sshll.u32 %s250_s13, 4  ;;  %s13702_s15 = scalar_lea.sflag [#allocation5], %s246_s29  ;;  %s13700_s14 = int_to_ptr.vmem [resolvable:$true] %s257_s14 }
  0x14   : > { %p13708_p7 = pneg %p13686_p5 }
  0x16   : > { %s15579_s17 = scalar_select %p13708_p7, 1, 0 }
  0x17   : > { %s13696_s12 = scalar_lea.hbm %s15578_s3, %s15562_s9  ;;  %s13444_s20 = scalar_lea.hbm %s15578_s3, 73728 }
  0x18   : > { %s13439_s16 = scalar_lea.hbm %s13696_s12, 36864  ;;  %p13445_p10 = scmp.lt.u32.totalorder %s13696_s12, %s15578_s3 }
  0x19   : > { %p13440_p6 = scmp.ne.s32.totalorder %s13696_s12, %s13439_s16  ;;  %p13446_p11 = scmp.lt.u32.totalorder %s13444_s20, %s13439_s16 }
  0x1a   : > { %p13448_p13 = scmp.lt.u32.totalorder %s13439_s16, %s13696_s12 }
  0x1b   : > { %p13442_p8 = pnand %p13708_p7, %p13440_p6  ;;  %p13447_p12 = por %p13446_p11, %p13445_p10 }
  0x1d   : > { %p13443_p9 = pneg %p13442_p8  ;;  %p13449_p0 = por %p13448_p13, %p13447_p12 }
  0x1f   : > { %p13450_p1 = pnand %p13449_p0, %p13443_p9 }
  0x21   : > { %13453 = shalt.err (!%p13450_p1)
}
  0x22   : > { %s13454_s29 = scalar_lea.vmem %s13700_s14, 36864  ;;  %s13601_s10 = smov [#allocation4]  }
  0x23   : > { %p13455_p2 = scmp.ne.s32.totalorder %s13700_s14, %s13454_s29  ;;  %s13459_s11 = sshll.u32 %s13601_s10, 4  ;;  %s13460_s11 = int_to_ptr.vmem [resolvable:$false] %s13459_s11 }
  0x24   : > { %s13461_s13 = scalar_lea.vmem %s13460_s11, 73728  ;;  %p13462_p6 = scmp.lt.s32.totalorder %s13700_s14, %s13460_s11 }
  0x25   : > { %p13457_p3 = pnand %p13455_p2, %p13708_p7  ;;  %p13463_p8 = scmp.lt.s32.totalorder %s13461_s13, %s13454_s29 }
  0x27   : > { %p13458_p4 = pneg %p13457_p3  ;;  %p13464_p10 = por %p13463_p8, %p13462_p6 }
  0x29   : > { %p13465_p11 = pnand %p13464_p10, %p13458_p4 }
  0x2b   : > { %13468 = shalt.err (!%p13465_p11)
}
  0x2c   : > { %s15559_s16 = smov 384   ;;  %s15560_s18 = smov 24  }
  0x2d   : > { %11576 = dma.hbm_to_vmem [thread:$0]  (!%p13686_p5), %s13696_s12, 36864, %s13700_s14, %s13702_s15, %s15559_s16, %s15559_s16, %s15560_s18  }
  0x2e   : > { %s13736_s19 = sadd.s32 4294967295, %s13599_s24   ;;  %p116_p12 = scmp.ne.s32.totalorder %s13591_s22, %s13587_s21 }
  0x2f   : > { %p15563_p9 = scmp.eq.s32.totalorder %s13736_s19, 0  ;;  %p10101_p13 = scmp.ge.s32.totalorder %s13599_s24, 1 }
  0x30   : > { %p205_p0 = scmp.lt.s32.totalorder %s13599_s24, 3  ;;  %s13604_s12 = smov [#allocation2]  }
  0x31   : > { %p13745_p1 = por %p15563_p9, %p116_p12  ;;  %s217_s14 = sshll.u32 %s13604_s12, 4  ;;  %s218_s14 = int_to_ptr.vmem [resolvable:$true] %s217_s14 }
  0x32   : > { %p13749_p2 = pnand %p10101_p13, %p205_p0  ;;  %s11550_s27 = smul.u32 4608, %s13683_s30 }
  0x33   : > { %s15580_s20 = scalar_select %p13745_p1, 1, 0 }
  0x34   : > { %s15581_s26 = scalar_select %p13749_p2, 1, 0 }
  0x35   : > { %p11569_p3 = pneg %p13749_p2  ;;  %s11551_s29 = smul.u32 73728, %s13599_s24 }
  0x36   : > { %s13469_s12 = scalar_lea.hbm %s15552_s0, 6144 }
  0x37   : > { %p13758_p4 = pnand %p11569_p3, %p15563_p9  ;;  %s13766_s13 = scalar_lea.hbm %s15556_s4, %s11551_s29 }
  0x38   : > { %p13470_p6 = scmp.ne.s32.totalorder %s15552_s0, %s13469_s12  ;;  %p13476_p12 = scmp.lt.u32.totalorder %s13469_s12, %s15552_s0 }
  0x39   : > { %p13471_p8 = pneg %p13758_p4 }
  0x3b   : > { %p13472_p10 = pnand %p13471_p8, %p13470_p6 }
  0x3d   : > { %p13473_p11 = pneg %p13472_p10 }
  0x3f   : > { %p13478_p13 = pnand %p13476_p12, %p13473_p11 }
  0x41   : > { %13481 = shalt.err (!%p13478_p13)
}
  0x42   : > { %s13482_s29 = scalar_lea.vmem %s218_s14, 6144  ;;  %p13490_p1 = scmp.lt.s32.totalorder %s218_s14, %s218_s14 }
  0x43   : > { %p13483_p0 = scmp.ne.s32.totalorder %s218_s14, %s13482_s29  ;;  %p13491_p2 = scmp.lt.s32.totalorder %s13482_s29, %s13482_s29 }
  0x45   : > { %p13485_p3 = pnand %p13483_p0, %p13471_p8  ;;  %p13492_p5 = por %p13491_p2, %p13490_p1 }
  0x47   : > { %p13486_p9 = pneg %p13485_p3 }
  0x49   : > { %p13493_p7 = pnand %p13492_p5, %p13486_p9 }
  0x4b   : > { %13496 = shalt.err (!%p13493_p7)
}
  0x4c   : > { %s13605_s7 = smov 64   ;;  %s13606_s3 = smov 4  }
  0x4d   : > { %11572 = dma.hbm_to_vmem [thread:$0]  (!%p13758_p4), %s15552_s0, 6144, %s218_s14, [#allocation3], %s13605_s7, %s13605_s7, %s13606_s3  }
  0x4e   : > { %s271_s16 = scalar_lea.vmem [#allocation6], %s11550_s27  ;;  %s13497_s10 = scalar_lea.hbm %s13766_s13, 73728 }
  0x4f   : > { %s278_s18 = sshll.u32 %s271_s16, 4  ;;  %p13498_p5 = scmp.ne.s32.totalorder %s13766_s13, %s13497_s10  ;;  %s13784_s18 = int_to_ptr.vmem [resolvable:$true] %s278_s18 }
  0x50   : > { %p15583_p7 = scmp.ne.s32.totalorder %s15579_s17, 0  ;;  %s13502_s29 = scalar_lea.hbm %s15556_s4, 147456 }
  0x51   : > { %p13503_p2 = scmp.lt.u32.totalorder %s13766_s13, %s15556_s4  ;;  %p13504_p6 = scmp.lt.u32.totalorder %s13502_s29, %s13497_s10 }
  0x52   : > { %p13500_p9 = pnand %p13498_p5, %p15583_p7  ;;  %p13506_p4 = scmp.lt.u32.totalorder %s13497_s10, %s13766_s13 }
  0x53   : > { %p13505_p8 = por %p13504_p6, %p13503_p2 }
  0x54   : > { %p13501_p1 = pneg %p13500_p9 }
  0x55   : > { %p13507_p10 = por %p13506_p4, %p13505_p8 }
  0x57   : > { %p13508_p11 = pnand %p13507_p10, %p13501_p1 }
  0x59   : > { %13511 = shalt.err (!%p13508_p11)
}
  0x5a   : > { %s13512_s14 = scalar_lea.vmem %s13784_s18, 73728  ;;  %s13607_s27 = smov [#allocation6]  }
  0x5b   : > { %p13513_p12 = scmp.ne.s32.totalorder %s13784_s18, %s13512_s14  ;;  %s13517_s21 = sshll.u32 %s13607_s27, 4  ;;  %s13518_s21 = int_to_ptr.vmem [resolvable:$false] %s13517_s21 }
  0x5c   : > { %s13519_s23 = scalar_lea.vmem %s13518_s21, 147456  ;;  %p13520_p3 = scmp.lt.s32.totalorder %s13784_s18, %s13518_s21 }
  0x5d   : > { %p13515_p13 = pnand %p13513_p12, %p15583_p7  ;;  %p13521_p5 = scmp.lt.s32.totalorder %s13519_s23, %s13512_s14 }
  0x5f   : > { %p13516_p0 = pneg %p13515_p13  ;;  %p13522_p9 = por %p13521_p5, %p13520_p3 }
  0x61   : > { %p13523_p2 = pnand %p13522_p9, %p13516_p0 }
  0x63   : > { %13526 = shalt.err (!%p13523_p2)
}
  0x64   : > { %s13608_s25 = smov 768   ;;  %s13609_s7 = smov 48  }
  0x65   : > { %p15584_p1 = scmp.ne.s32.totalorder %s15577_s8, 0  ;;  %s15585_s3 = smul.u32 36864, %s13599_s24 }
  0x66   : > { %s15586_s10 = smul.u32 2304, %s13683_s30  ;;  %s289_s29 = scalar_lea.sflag [#allocation8], %s13683_s30 }
  0x67   : > { %11579 = dma.hbm_to_vmem [thread:$0]  (!%p15584_p1), %s13766_s13, 73728, %s13784_s18, %s13702_s15, %s13608_s25, %s13608_s25, %s13609_s7  }
  0x68   : > { %s13813_s16 = scalar_lea.hbm %s15557_s5, %s15585_s3  ;;  %s292_s11 = scalar_lea.vmem [#allocation7], %s15586_s10 }
  0x69   : > { %s299_s12 = sshll.u32 %s292_s11, 4  ;;  %s13527_s14 = scalar_lea.hbm %s13813_s16, 36864  ;;  %s13817_s12 = int_to_ptr.vmem [resolvable:$true] %s299_s12 }
  0x6a   : > { %p13528_p6 = scmp.ne.s32.totalorder %s13813_s16, %s13527_s14  ;;  %s13532_s13 = scalar_lea.hbm %s15557_s5, 73728 }
  0x6b   : > { %p13533_p10 = scmp.lt.u32.totalorder %s13813_s16, %s15557_s5  ;;  %p13534_p11 = scmp.lt.u32.totalorder %s13532_s13, %s13527_s14 }
  0x6c   : > { %p13530_p8 = pnand %p13528_p6, %p15583_p7  ;;  %p13536_p13 = scmp.lt.u32.totalorder %s13527_s14, %s13813_s16 }
  0x6d   : > { %p13535_p12 = por %p13534_p11, %p13533_p10 }
  0x6e   : > { %p13531_p4 = pneg %p13530_p8 }
  0x6f   : > { %p13537_p0 = por %p13536_p13, %p13535_p12 }
  0x71   : > { %p13538_p3 = pnand %p13537_p0, %p13531_p4 }
  0x73   : > { %13541 = shalt.err (!%p13538_p3)
}
  0x74   : > { %s13542_s21 = scalar_lea.vmem %s13817_s12, 36864  ;;  %s13610_s23 = smov [#allocation7]  }
  0x75   : > { %p13543_p5 = scmp.ne.s32.totalorder %s13817_s12, %s13542_s21  ;;  %s13547_s25 = sshll.u32 %s13610_s23, 4  ;;  %s13548_s25 = int_to_ptr.vmem [resolvable:$false] %s13547_s25 }
  0x76   : > { %s13549_s7 = scalar_lea.vmem %s13548_s25, 73728  ;;  %p13550_p6 = scmp.lt.s32.totalorder %s13817_s12, %s13548_s25 }
  0x77   : > { %p13545_p9 = pnand %p13543_p5, %p15583_p7  ;;  %p13551_p8 = scmp.lt.s32.totalorder %s13549_s7, %s13542_s21 }
  0x79   : > { %p13546_p2 = pneg %p13545_p9  ;;  %p13552_p10 = por %p13551_p8, %p13550_p6 }
  0x7b   : > { %p13553_p11 = pnand %p13552_p10, %p13546_p2 }
  0x7d   : > { %13556 = shalt.err (!%p13553_p11)
}
  0x7e   : > { %s15587_s3 = smov 24   ;;  %s15588_s28 = smov 384  }
  0x7f   : > { %11582 = dma.hbm_to_vmem [thread:$0]  (!%p15584_p1), %s13813_s16, 36864, %s13817_s12, %s289_s29, %s15588_s28, %s15588_s28, %s15587_s3  }
  0x80   : > { %p15589_p7 = scmp.ne.s32.totalorder %s15581_s26, 0 }
  0x81   : > { %p15590_p4 = scmp.eq.s32.totalorder (!%p15589_p7), %s13736_s19, 0 }
  0x82   : > { %311 = sbr.rel (%p15589_p7) target bundleno = 2089 (0x829), region = 44 }
  0x89   : > { %13574 = dma.done.wait (%p15590_p4), [#allocation3], 6144   ;;  %p15591_p12 = pmov %p15590_p4 }
  0x8a   : > { %s317_s8 = sand.u32 1, %s13736_s19   ;;  %s319_s17 = sand.u32 1, %s13591_s22  }
  0x8b   : > { %13576 = vsyncadd (%p15591_p12), [#allocation3], 4294961152  ;;  %s11554_s9 = smul.u32 2304, %s319_s17  ;;  %s318_s10 = scalar_lea.sflag [#allocation5], %s317_s8 }
  0x8c   : > { %p15592_p13 = scmp.ne.s32.totalorder %s15580_s20, 0 }
  0x8d   : > { %s13854_s30 = scalar_lea.vmem [#allocation4], %s11554_s9 }
  0x8e   : > { %13578 = dma.done.wait (%p15592_p13), %s318_s10, 110592  }
  0x8f   : > { %13580 = vsyncadd (%p15592_p13), %s318_s10, 4294856704  ;;  %s11555_s26 = smul.u32 4608, %s319_s17  ;;  %s336_s11 = scalar_lea.sflag [#allocation8], %s319_s17 }
  0x90   : > { %s13862_s12 = scalar_lea.vmem [#allocation7], %s11554_s9 }
  0x91   : > { %s13860_s16 = scalar_lea.vmem [#allocation6], %s11555_s26 }
  0x92   : > { %13582 = dma.done.wait (%p15592_p13), %s336_s11, 36864  }
  0x93   : > { %13584 = vsyncadd (%p15592_p13), %s336_s11, 4294930432  ;;  %v11627_v0 = vld [vmem:[%s13854_s30 + $0x4] ss:$24 sps:$4 sm:$0xff]   ;;  %v11631_v2 = vld [vmem:[%s13854_s30] ss:$24 sps:$4 sm:$0xff]   ;;  %p387_p1 = scmp.lt.s32.totalorder %s13736_s19, 1  ;;  %v798_v38 = vlaneseq }
  0x94   : > { %v11629_v1 = vld [vmem:[%s13854_s30 + $0x30c] ss:$24 sps:$4 sm:$0xff]   ;;  %2287 = vmatprep.subr.bf16.mxu0 %v11627_v0  ;;  %v11632_v3 = vld [vmem:[%s13854_s30 + $0x308] ss:$24 sps:$4 sm:$0xff]   ;;  %v11635_v5 = vld [vmem:[%s13854_s30 + $0x33c] ss:$24 sps:$4 sm:$0xff]  }
  0x95   : > { %2451 = vmatprep.subr.bf16.mxu1 %v11629_v1  ;;  %v11633_v4 = vld [vmem:[%s13854_s30 + $0x34] ss:$24 sps:$4 sm:$0xff]   ;;  %2288 = vmatpush1.bf16.msra.mxu0 %v11631_v2  ;;  %v11637_v6 = vld [vmem:[%s13854_s30 + $0x30] ss:$24 sps:$4 sm:$0xff]   ;;  %v11639_v8 = vld [vmem:[%s13854_s30 + $0x64] ss:$24 sps:$4 sm:$0xff]  }
  0x96   : > { %2452 = vmatpush1.bf16.msra.mxu1 %v11632_v3  ;;  %2289 = vmatprep.subr.bf16.mxu0 %v11633_v4  ;;  %v11638_v7 = vld [vmem:[%s13854_s30 + $0x338] ss:$24 sps:$4 sm:$0xff]   ;;  %v11641_v9 = vld [vmem:[%s13854_s30 + $0x36c] ss:$24 sps:$4 sm:$0xff]   ;;  %v11644_v11 = vld [vmem:[%s13854_s30 + $0x368] ss:$24 sps:$4 sm:$0xff]  }
  0x97   : > { %2453 = vmatprep.subr.bf16.mxu1 %v11635_v5  ;;  %v11643_v10 = vld [vmem:[%s13854_s30 + $0x60] ss:$24 sps:$4 sm:$0xff]   ;;  %v11645_v12 = vld [vmem:[%s13854_s30 + $0x94] ss:$24 sps:$4 sm:$0xff]   ;;  %v11649_v14 = vld [vmem:[%s13854_s30 + $0x90] ss:$24 sps:$4 sm:$0xff]  }
  0x98   : > { %v11647_v13 = vld [vmem:[%s13854_s30 + $0x39c] ss:$24 sps:$4 sm:$0xff]   ;;  %v11650_v15 = vld [vmem:[%s13854_s30 + $0x398] ss:$24 sps:$4 sm:$0xff]   ;;  %v11653_v17 = vld [vmem:[%s13854_s30 + $0x3cc] ss:$24 sps:$4 sm:$0xff]  }
  0x99   : > { %2290 = vmatpush1.bf16.msra.mxu0 %v11637_v6  ;;  %v11651_v16 = vld [vmem:[%s13854_s30 + $0xc4] ss:$24 sps:$4 sm:$0xff]   ;;  %v11655_v18 = vld [vmem:[%s13854_s30 + $0xc0] ss:$24 sps:$4 sm:$0xff]   ;;  %v11657_v20 = vld [vmem:[%s13854_s30 + $0xf4] ss:$24 sps:$4 sm:$0xff]  }
  0x9a   : > { %2454 = vmatpush1.bf16.msra.mxu1 %v11638_v7  ;;  %2291 = vmatprep.subr.bf16.mxu0 %v11639_v8  ;;  %v11656_v19 = vld [vmem:[%s13854_s30 + $0x3c8] ss:$24 sps:$4 sm:$0xff]   ;;  %v11659_v21 = vld [vmem:[%s13854_s30 + $0x3fc] ss:$24 sps:$4 sm:$0xff]   ;;  %v11662_v23 = vld [vmem:[%s13854_s30 + $0x3f8] ss:$24 sps:$4 sm:$0xff]  }
  0x9b   : > { %2455 = vmatprep.subr.bf16.mxu1 %v11641_v9  ;;  %v11661_v22 = vld [vmem:[%s13854_s30 + $0xf0] ss:$24 sps:$4 sm:$0xff]   ;;  %v11663_v24 = vld [vmem:[%s13854_s30 + $0x124] ss:$24 sps:$4 sm:$0xff]   ;;  %v11667_v26 = vld [vmem:[%s13854_s30 + $0x120] ss:$24 sps:$4 sm:$0xff]  }
  0x9c   : > { %v11665_v25 = vld [vmem:[%s13854_s30 + $0x42c] ss:$24 sps:$4 sm:$0xff]   ;;  %v11668_v27 = vld [vmem:[%s13854_s30 + $0x428] ss:$24 sps:$4 sm:$0xff]   ;;  %v11671_v29 = vld [vmem:[%s13854_s30 + $0x45c] ss:$24 sps:$4 sm:$0xff]  }
  0x9d   : > { %2292 = vmatpush1.bf16.msra.mxu0 %v11643_v10  ;;  %v11669_v28 = vld [vmem:[%s13854_s30 + $0x154] ss:$24 sps:$4 sm:$0xff]   ;;  %v11673_v30 = vld [vmem:[%s13854_s30 + $0x150] ss:$24 sps:$4 sm:$0xff]   ;;  %v11675_v32 = vld [vmem:[%s13854_s30 + $0x184] ss:$24 sps:$4 sm:$0xff]  }
  0x9e   : > { %2456 = vmatpush1.bf16.msra.mxu1 %v11644_v11  ;;  %2293 = vmatprep.subr.bf16.mxu0 %v11645_v12  ;;  %v11674_v31 = vld [vmem:[%s13854_s30 + $0x458] ss:$24 sps:$4 sm:$0xff]   ;;  %v11677_v33 = vld [vmem:[%s13854_s30 + $0x48c] ss:$24 sps:$4 sm:$0xff]   ;;  %v11680_v35 = vld [vmem:[%s13854_s30 + $0x488] ss:$24 sps:$4 sm:$0xff]  }
  0x9f   : > { %2457 = vmatprep.subr.bf16.mxu1 %v11647_v13  ;;  %v11679_v34 = vld [vmem:[%s13854_s30 + $0x180] ss:$24 sps:$4 sm:$0xff]   ;;  %s15600_s19 = smov (!%p387_p1, %s13736_s19), 1  ;;  %v13611_v36 = vmov 1966171168   ;;  %v13912_v43 = vshrl.u32 %v798_v38, 7 }
  0xa0   : > { %v796_v37 = vunpack.c.l.s4 %v13611_v36  ;;  %v11681_v39 = vld [vmem:[%s13854_s30 + $0x1b4] ss:$24 sps:$4 sm:$0xff]   ;;  %v11685_v41 = vld [vmem:[%s13854_s30 + $0x1b0] ss:$24 sps:$4 sm:$0xff]   ;;  %s11556_s20 = smul.u32 6, %s15600_s19  ;;  %vm8091_vm0 = vcmask 1041409  }
  0xa1   : > { %2294 = vmatpush1.bf16.msra.mxu0 %v11649_v14  ;;  %v11683_v40 = vld [vmem:[%s13854_s30 + $0x4bc] ss:$24 sps:$4 sm:$0xff]   ;;  %v11686_v44 = vld [vmem:[%s13854_s30 + $0x4b8] ss:$24 sps:$4 sm:$0xff]   ;;  %v11689_v46 = vld [vmem:[%s13854_s30 + $0x4ec] ss:$24 sps:$4 sm:$0xff]  }
  0xa2   : > { %2458 = vmatpush1.bf16.msra.mxu1 %v11650_v15  ;;  %2295 = vmatprep.subr.bf16.mxu0 %v11651_v16  ;;  %v797_v42 = vunpack.c.0.s8 %v796_v37  ;;  %v11687_v45 = vld [vmem:[%s13854_s30 + $0x1e4] ss:$24 sps:$4 sm:$0xff]   ;;  %v11691_v47 = vld [vmem:[%s13854_s30 + $0x1e0] ss:$24 sps:$4 sm:$0xff]   ;;  %s390_s24 = scalar_lea.vmem %s15553_s1, %s11556_s20  ;;  %v11693_v50 = vld [vmem:[%s13854_s30 + $0x214] ss:$24 sps:$4 sm:$0xff]  }
  0xa3   : > { %2459 = vmatprep.subr.bf16.mxu1 %v11653_v17  ;;  %v11692_v48 = vld [vmem:[%s13854_s30 + $0x4e8] ss:$24 sps:$4 sm:$0xff]   ;;  %v11695_v51 = vld [vmem:[%s13854_s30 + $0x51c] ss:$24 sps:$4 sm:$0xff]   ;;  %v11698_v55 = vld [vmem:[%s13854_s30 + $0x518] ss:$24 sps:$4 sm:$0xff]  }
  0xa4   : > { %v13923_v49 = vsub.s32 %v797_v42, %v13912_v43  ;;  %v498_v52 = vld [vmem:[%s390_s24] sm:$0x3f]  ;;  %v11697_v53 = vld [vmem:[%s13854_s30 + $0x210] ss:$24 sps:$4 sm:$0xff]   ;;  %v11705_v62 = vld [vmem:[%s13854_s30 + $0x274] ss:$24 sps:$4 sm:$0xff]  }
  0xa5   : > { %2296 = vmatpush1.bf16.msra.mxu0 %v11655_v18  ;;  %v11699_v56 = vld [vmem:[%s13854_s30 + $0x244] ss:$24 sps:$4 sm:$0xff]   ;;  %v11703_v59 = vld [vmem:[%s13854_s30 + $0x240] ss:$24 sps:$4 sm:$0xff]   ;;  %v11709_v1 = vld [vmem:[%s13854_s30 + $0x270] ss:$24 sps:$4 sm:$0xff]   ;;  %v794_v5 = vcombine.high %v498_v52, %v498_v52 }
  0xa6   : > { %2460 = vmatpush1.bf16.msra.mxu1 %v11656_v19  ;;  %2297 = vmatprep.subr.bf16.mxu0 %v11657_v20  ;;  %v801_v54 = vrot.slane %v498_v52, %v13923_v49  ;;  %v11701_v57 = vld [vmem:[%s13854_s30 + $0x54c] ss:$24 sps:$4 sm:$0xff]   ;;  %v11704_v61 = vld [vmem:[%s13854_s30 + $0x548] ss:$24 sps:$4 sm:$0xff]   ;;  %v11707_v63 = vld [vmem:[%s13854_s30 + $0x57c] ss:$24 sps:$4 sm:$0xff]  }
  0xa7   : > { %2461 = vmatprep.subr.bf16.mxu1 %v11659_v21  ;;  %v11710_v2 = vld [vmem:[%s13854_s30 + $0x578] ss:$24 sps:$4 sm:$0xff]   ;;  %v11711_v3 = vld [vmem:[%s13854_s30 + $0x2a4] ss:$24 sps:$4 sm:$0xff]   ;;  %v11716_v7 = vld [vmem:[%s13854_s30 + $0x5a8] ss:$24 sps:$4 sm:$0xff]   ;;  %v13954_v10 = vrot.slane %v794_v5, %v13923_v49 }
  0xa8   : > { %v809_v58 = vcombine.high %v801_v54, %v801_v54  ;;  %v11713_v4 = vld [vmem:[%s13854_s30 + $0x5ac] ss:$24 sps:$4 sm:$0xff]   ;;  %v11715_v6 = vld [vmem:[%s13854_s30 + $0x2a0] ss:$24 sps:$4 sm:$0xff]   ;;  %v11719_v9 = vld [vmem:[%s13854_s30 + $0x5dc] ss:$24 sps:$4 sm:$0xff]   ;;  %v13958_v12 = vrot.slane %v801_v54, %v13923_v49 }
  0xa9   : > { %2298 = vmatpush1.bf16.msra.mxu0 %v11661_v22  ;;  %v11717_v8 = vld [vmem:[%s13854_s30 + $0x2d4] ss:$24 sps:$4 sm:$0xff]   ;;  %v11721_v11 = vld [vmem:[%s13854_s30 + $0x2d0] ss:$24 sps:$4 sm:$0xff]   ;;  %v11725_v14 = vld [vmem:[%s13854_s30 + $0x304] ss:$24 sps:$4 sm:$0xff]   ;;  %v810_v16 = vcombine.high %v13954_v10, %v13954_v10 }
  0xaa   : > { %2462 = vmatpush1.bf16.msra.mxu1 %v11662_v23  ;;  %2299 = vmatprep.subr.bf16.mxu0 %v11663_v24  ;;  %v13934_v60 = vrot.slane %v809_v58, %v13923_v49  ;;  %v11722_v13 = vld [vmem:[%s13854_s30 + $0x5d8] ss:$24 sps:$4 sm:$0xff]   ;;  %v11728_v15 = vld [vmem:[%s13854_s30 + $0x60c] ss:$24 sps:$4 sm:$0xff]   ;;  %v13968_v18 = vcombine.high %v13958_v12, %v13958_v12  ;;  %v11726_v19 = vld [vmem:[%s13854_s30 + $0x608] ss:$24 sps:$4 sm:$0xff]  }
  0xab   : > { %2463 = vmatprep.subr.bf16.mxu1 %v11665_v25  ;;  %v11723_v17 = vld [vmem:[%s13854_s30 + $0x300] ss:$24 sps:$4 sm:$0xff]   ;;  %v11731_v20 = vld [vmem:[%s13854_s30 + $0x334] ss:$24 sps:$4 sm:$0xff]   ;;  %v13974_v22 = vrot.slane %v810_v16, %v13923_v49  ;;  %v11729_v23 = vld [vmem:[%s13854_s30 + $0x330] ss:$24 sps:$4 sm:$0xff]  }
  0xac   : > { %v13941_v0 = vcombine.high %v13934_v60, %v13934_v60  ;;  %2319 = vmatprep.mubr.bf16.mxu0 %v13934_v60  ;;  %v11734_v21 = vld [vmem:[%s13854_s30 + $0x63c] ss:$24 sps:$4 sm:$0xff]   ;;  %v11732_v24 = vld [vmem:[%s13854_s30 + $0x638] ss:$24 sps:$4 sm:$0xff]   ;;  %v11750_v36 = vld [vmem:[%s13854_s30 + $0x6c8] ss:$24 sps:$4 sm:$0xff]  }
  0xad   : > { %2300 = vmatpush1.bf16.msra.mxu0 %v11667_v26  ;;  %v11737_v25 = vld [vmem:[%s13854_s30 + $0x364] ss:$24 sps:$4 sm:$0xff]   ;;  %v11755_v37 = vld [vmem:[%s13854_s30 + $0x3f4] ss:$24 sps:$4 sm:$0xff]   ;;  %v11774_v54 = vld [vmem:[%s13854_s30 + $0x788] ss:$24 sps:$4 sm:$0xff]  }
  0xae   : > { %2464 = vmatpush1.bf16.msra.mxu1 %v11668_v27  ;;  %2301 = vmatprep.subr.bf16.mxu0 %v11669_v28  ;;  %v11740_v26 = vld [vmem:[%s13854_s30 + $0x66c] ss:$24 sps:$4 sm:$0xff]   ;;  %v11735_v27 = vld [vmem:[%s13854_s30 + $0x360] ss:$24 sps:$4 sm:$0xff]   ;;  %v11758_v38 = vld [vmem:[%s13854_s30 + $0x6fc] ss:$24 sps:$4 sm:$0xff]  }
  0xaf   : > { %2465 = vmatprep.subr.bf16.mxu1 %v11671_v29  ;;  %2483 = vmatprep.mubr.bf16.mxu1 %v13941_v0  ;;  %v11738_v28 = vld [vmem:[%s13854_s30 + $0x668] ss:$24 sps:$4 sm:$0xff]   ;;  %v11743_v29 = vld [vmem:[%s13854_s30 + $0x394] ss:$24 sps:$4 sm:$0xff]   ;;  %v11780_v58 = vld [vmem:[%s13854_s30 + $0x7b8] ss:$24 sps:$4 sm:$0xff]  }
  0xb0   : > { %v11764_v42 = vld [vmem:[%s13854_s30 + $0x72c] ss:$24 sps:$4 sm:$0xff]   ;;  %s11557_s15 = smul.u32 48, %s15600_s19 }
  0xb1   : > { %2302 = vmatpush1.bf16.msra.mxu0 %v11673_v30  ;;  %v11746_v30 = vld [vmem:[%s13854_s30 + $0x69c] ss:$24 sps:$4 sm:$0xff]   ;;  %v11776_v52 = vld [vmem:[%s13854_s30 + $0x78c] ss:$24 sps:$4 sm:$0xff]   ;;  %s11558_s21 = smul.u32 12, %s15600_s19 }
  0xb2   : > { %2466 = vmatpush1.bf16.msra.mxu1 %v11674_v31  ;;  %2303 = vmatprep.subr.bf16.mxu0 %v11675_v32  ;;  %v11741_v31 = vld [vmem:[%s13854_s30 + $0x390] ss:$24 sps:$4 sm:$0xff]   ;;  %v11797_v5 = vld [vmem:[%s13854_s30 + $0x544] ss:$24 sps:$4 sm:$0xff]   ;;  %s14044_s27 = scalar_lea.vmem %s15554_s2, %s11557_s15 }
  0xb3   : > { %2467 = vmatprep.subr.bf16.mxu1 %v11677_v33  ;;  %v11744_v32 = vld [vmem:[%s13854_s30 + $0x698] ss:$24 sps:$4 sm:$0xff]   ;;  %v11749_v33 = vld [vmem:[%s13854_s30 + $0x3c4] ss:$24 sps:$4 sm:$0xff]   ;;  %s400_s7 = scalar_lea.vmem %s15558_s6, %s11558_s21 }
  0xb4   : > { %v11812_v16 = vld [vmem:[%s13854_s30 + $0x8ac] ss:$24 sps:$4 sm:$0xff]  }
  0xb5   : > { %2304 = vmatpush1.bf16.msra.mxu0 %v11679_v34  ;;  %v11752_v34 = vld [vmem:[%s13854_s30 + $0x6cc] ss:$24 sps:$4 sm:$0xff]  }
  0xb6   : > { %2468 = vmatpush1.bf16.msra.mxu1 %v11680_v35  ;;  %2305 = vmatprep.subr.bf16.mxu0 %v11681_v39  ;;  %v11747_v35 = vld [vmem:[%s13854_s30 + $0x3c0] ss:$24 sps:$4 sm:$0xff]   ;;  %v11753_v39 = vld [vmem:[%s13854_s30 + $0x3f0] ss:$24 sps:$4 sm:$0xff]  }
  0xb7   : > { %2469 = vmatprep.subr.bf16.mxu1 %v11683_v40  ;;  %v11756_v40 = vld [vmem:[%s13854_s30 + $0x6f8] ss:$24 sps:$4 sm:$0xff]  }
  0xb9   : > { %2306 = vmatpush1.bf16.msra.mxu0 %v11685_v41  ;;  %v11761_v41 = vld [vmem:[%s13854_s30 + $0x424] ss:$24 sps:$4 sm:$0xff]  }
  0xba   : > { %2470 = vmatpush1.bf16.msra.mxu1 %v11686_v44  ;;  %2307 = vmatprep.subr.bf16.mxu0 %v11687_v45  ;;  %v11759_v44 = vld [vmem:[%s13854_s30 + $0x420] ss:$24 sps:$4 sm:$0xff]  }
  0xbb   : > { %2471 = vmatprep.subr.bf16.mxu1 %v11689_v46  ;;  %v11762_v45 = vld [vmem:[%s13854_s30 + $0x728] ss:$24 sps:$4 sm:$0xff]   ;;  %v11767_v46 = vld [vmem:[%s13854_s30 + $0x454] ss:$24 sps:$4 sm:$0xff]  }
  0xbd   : > { %2308 = vmatpush1.bf16.msra.mxu0 %v11691_v47  ;;  %v11770_v47 = vld [vmem:[%s13854_s30 + $0x75c] ss:$24 sps:$4 sm:$0xff]  }
  0xbe   : > { %2472 = vmatpush1.bf16.msra.mxu1 %v11692_v48  ;;  %2309 = vmatprep.subr.bf16.mxu0 %v11693_v50  ;;  %v11765_v48 = vld [vmem:[%s13854_s30 + $0x450] ss:$24 sps:$4 sm:$0xff]  }
  0xbf   : > { %2473 = vmatprep.subr.bf16.mxu1 %v11695_v51  ;;  %v11768_v50 = vld [vmem:[%s13854_s30 + $0x758] ss:$24 sps:$4 sm:$0xff]   ;;  %v11773_v51 = vld [vmem:[%s13854_s30 + $0x484] ss:$24 sps:$4 sm:$0xff]  }
  0xc1   : > { %2310 = vmatpush1.bf16.msra.mxu0 %v11697_v53  ;;  %v11771_v53 = vld [vmem:[%s13854_s30 + $0x480] ss:$24 sps:$4 sm:$0xff]  }
  0xc2   : > { %2474 = vmatpush1.bf16.msra.mxu1 %v11698_v55  ;;  %2311 = vmatprep.subr.bf16.mxu0 %v11699_v56  ;;  %v11779_v55 = vld [vmem:[%s13854_s30 + $0x4b4] ss:$24 sps:$4 sm:$0xff]  }
  0xc3   : > { %2475 = vmatprep.subr.bf16.mxu1 %v11701_v57  ;;  %v11782_v56 = vld [vmem:[%s13854_s30 + $0x7bc] ss:$24 sps:$4 sm:$0xff]   ;;  %v11777_v57 = vld [vmem:[%s13854_s30 + $0x4b0] ss:$24 sps:$4 sm:$0xff]  }
  0xc5   : > { %2312 = vmatpush1.bf16.msra.mxu0 %v11703_v59  ;;  %v11785_v59 = vld [vmem:[%s13854_s30 + $0x4e4] ss:$24 sps:$4 sm:$0xff]  }
  0xc6   : > { %2476 = vmatpush1.bf16.msra.mxu1 %v11704_v61  ;;  %2313 = vmatprep.subr.bf16.mxu0 %v11705_v62  ;;  %v11788_v61 = vld [vmem:[%s13854_s30 + $0x7ec] ss:$24 sps:$4 sm:$0xff]   ;;  %v11783_v62 = vld [vmem:[%s13854_s30 + $0x4e0] ss:$24 sps:$4 sm:$0xff]  }
  0xc7   : > { %2477 = vmatprep.subr.bf16.mxu1 %v11707_v63  ;;  %v11786_v63 = vld [vmem:[%s13854_s30 + $0x7e8] ss:$24 sps:$4 sm:$0xff]  }
  0xc9   : > { %2314 = vmatpush1.bf16.msra.mxu0 %v11709_v1  ;;  %v11791_v1 = vld [vmem:[%s13854_s30 + $0x514] ss:$24 sps:$4 sm:$0xff]  }
  0xca   : > { %2478 = vmatpush1.bf16.msra.mxu1 %v11710_v2  ;;  %2315 = vmatprep.subr.bf16.mxu0 %v11711_v3  ;;  %v11794_v2 = vld [vmem:[%s13854_s30 + $0x81c] ss:$24 sps:$4 sm:$0xff]   ;;  %v11789_v3 = vld [vmem:[%s13854_s30 + $0x510] ss:$24 sps:$4 sm:$0xff]  }
  0xcb   : > { %2479 = vmatprep.subr.bf16.mxu1 %v11713_v4  ;;  %v11792_v4 = vld [vmem:[%s13854_s30 + $0x818] ss:$24 sps:$4 sm:$0xff]  }
  0xcd   : > { %2316 = vmatpush1.bf16.msra.mxu0 %v11715_v6  ;;  %v11800_v6 = vld [vmem:[%s13854_s30 + $0x84c] ss:$24 sps:$4 sm:$0xff]  }
  0xce   : > { %2480 = vmatpush1.bf16.msra.mxu1 %v11716_v7  ;;  %2317 = vmatprep.subr.bf16.mxu0 %v11717_v8  ;;  %v11795_v7 = vld [vmem:[%s13854_s30 + $0x540] ss:$24 sps:$4 sm:$0xff]  }
  0xcf   : > { %2481 = vmatprep.subr.bf16.mxu1 %v11719_v9  ;;  %v11798_v8 = vld [vmem:[%s13854_s30 + $0x848] ss:$24 sps:$4 sm:$0xff]   ;;  %v11803_v9 = vld [vmem:[%s13854_s30 + $0x574] ss:$24 sps:$4 sm:$0xff]  }
  0xd1   : > { %2318 = vmatpush1.bf16.msra.mxu0 %v11721_v11  ;;  %v11806_v11 = vld [vmem:[%s13854_s30 + $0x87c] ss:$24 sps:$4 sm:$0xff]  }
  0xd2   : > { %2482 = vmatpush1.bf16.msra.mxu1 %v11722_v13  ;;  %2328 = vmatprep.subr.bf16.mxu0 %v11725_v14  ;;  %v11801_v13 = vld [vmem:[%s13854_s30 + $0x570] ss:$24 sps:$4 sm:$0xff]  }
  0xd3   : > { %2492 = vmatprep.subr.bf16.mxu1 %v11728_v15  ;;  %v11804_v14 = vld [vmem:[%s13854_s30 + $0x878] ss:$24 sps:$4 sm:$0xff]   ;;  %v11809_v15 = vld [vmem:[%s13854_s30 + $0x5a4] ss:$24 sps:$4 sm:$0xff]  }
  0xd4   : > { %2320 = vmatmul.mubr.bf16.vlgmr.msra.gmra.mrb[0].mxu0 %v13958_v12 }
  0xd5   : > { %2484 = vmatmul.mubr.bf16.vlgmr.msra.gmra.mrb[0].mxu1 %v13968_v18  ;;  %2329 = vmatpush1.bf16.msra.mxu0 %v11723_v17  ;;  %v11807_v17 = vld [vmem:[%s13854_s30 + $0x5a0] ss:$24 sps:$4 sm:$0xff]  }
  0xd6   : > { %2493 = vmatpush1.bf16.msra.mxu1 %v11726_v19  ;;  %2330 = vmatprep.subr.bf16.mxu0 %v11731_v20  ;;  %v11810_v19 = vld [vmem:[%s13854_s30 + $0x8a8] ss:$24 sps:$4 sm:$0xff]   ;;  %v11815_v20 = vld [vmem:[%s13854_s30 + $0x5d4] ss:$24 sps:$4 sm:$0xff]  }
  0xd7   : > { %2494 = vmatprep.subr.bf16.mxu1 %v11734_v21  ;;  %2360 = vmatprep.mubr.bf16.mxu0 %v13941_v0  ;;  %v11818_v21 = vld [vmem:[%s13854_s30 + $0x8dc] ss:$24 sps:$4 sm:$0xff]  }
  0xd8   : > { %2524 = vmatprep.mubr.bf16.mxu1 %v13974_v22 }
  0xd9   : > { %2331 = vmatpush1.bf16.msra.mxu0 %v11729_v23  ;;  %v11813_v23 = vld [vmem:[%s13854_s30 + $0x5d0] ss:$24 sps:$4 sm:$0xff]  }
  0xda   : > { %2495 = vmatpush1.bf16.msra.mxu1 %v11732_v24  ;;  %2332 = vmatprep.subr.bf16.mxu0 %v11737_v25  ;;  %v11816_v24 = vld [vmem:[%s13854_s30 + $0x8d8] ss:$24 sps:$4 sm:$0xff]   ;;  %v11821_v25 = vld [vmem:[%s13854_s30 + $0x604] ss:$24 sps:$4 sm:$0xff]  }
  0xdb   : > { %2496 = vmatprep.subr.bf16.mxu1 %v11740_v26  ;;  %v11825_v26 = vld [vmem:[%s13860_s16 + $0x4] ss:$48 sps:$4 sm:$0xff]  }
  0xdd   : > { %2333 = vmatpush1.bf16.msra.mxu0 %v11735_v27  ;;  %v11819_v27 = vld [vmem:[%s13854_s30 + $0x600] ss:$24 sps:$4 sm:$0xff]  }
  0xde   : > { %2497 = vmatpush1.bf16.msra.mxu1 %v11738_v28  ;;  %2334 = vmatprep.subr.bf16.mxu0 %v11743_v29  ;;  %v14049_v28 = vrot.slane %v13954_v10, %v13923_v49  ;;  %v11823_v29 = vld [vmem:[%s13860_s16] ss:$48 sps:$4 sm:$0xff]  }
  0xdf   : > { %2498 = vmatprep.subr.bf16.mxu1 %v11746_v30  ;;  %v11828_v30 = vld [vmem:[%s13854_s30 + $0x634] ss:$24 sps:$4 sm:$0xff]   ;;  %v11829_v10 = vld [vmem:[%s13860_s16 + $0x60] ss:$48 sps:$4 sm:$0xff]  }
  0xe1   : > { %2335 = vmatpush1.bf16.msra.mxu0 %v11741_v31  ;;  %v11831_v31 = vld [vmem:[%s13860_s16 + $0x64] ss:$48 sps:$4 sm:$0xff]  }
  0xe2   : > { %2499 = vmatpush1.bf16.msra.mxu1 %v11744_v32  ;;  %2336 = vmatprep.subr.bf16.mxu0 %v11749_v33  ;;  %v11919_v32 = vld [vmem:[%s14044_s27 + $0x4] ss:$24 sps:$4 sm:$0xff]   ;;  %v11826_v33 = vld [vmem:[%s13854_s30 + $0x630] ss:$24 sps:$4 sm:$0xff]  }
  0xe3   : > { %2500 = vmatprep.subr.bf16.mxu1 %v11752_v34  ;;  %v11834_v34 = vld [vmem:[%s13854_s30 + $0x664] ss:$24 sps:$4 sm:$0xff]  }
  0xe5   : > { %2337 = vmatpush1.bf16.msra.mxu0 %v11747_v35  ;;  %v11837_v35 = vld [vmem:[%s13860_s16 + $0xc4] ss:$48 sps:$4 sm:$0xff]  }
  0xe6   : > { %2501 = vmatpush1.bf16.msra.mxu1 %v11750_v36  ;;  %2338 = vmatprep.subr.bf16.mxu0 %v11755_v37  ;;  %v11832_v36 = vld [vmem:[%s13854_s30 + $0x660] ss:$24 sps:$4 sm:$0xff]  }
  0xe7   : > { %2502 = vmatprep.subr.bf16.mxu1 %v11758_v38  ;;  %v11835_v37 = vld [vmem:[%s13860_s16 + $0xc0] ss:$48 sps:$4 sm:$0xff]   ;;  %v11840_v38 = vld [vmem:[%s13854_s30 + $0x694] ss:$24 sps:$4 sm:$0xff]  }
  0xe9   : > { %2339 = vmatpush1.bf16.msra.mxu0 %v11753_v39  ;;  %v11843_v39 = vld [vmem:[%s13860_s16 + $0x124] ss:$48 sps:$4 sm:$0xff]  }
  0xea   : > { %2503 = vmatpush1.bf16.msra.mxu1 %v11756_v40  ;;  %2340 = vmatprep.subr.bf16.mxu0 %v11761_v41  ;;  %v11838_v40 = vld [vmem:[%s13854_s30 + $0x690] ss:$24 sps:$4 sm:$0xff]  }
  0xeb   : > { %2504 = vmatprep.subr.bf16.mxu1 %v11764_v42  ;;  %v11841_v41 = vld [vmem:[%s13860_s16 + $0x120] ss:$48 sps:$4 sm:$0xff]   ;;  %v11846_v42 = vld [vmem:[%s13854_s30 + $0x6c4] ss:$24 sps:$4 sm:$0xff]  }
  0xed   : > { %2341 = vmatpush1.bf16.msra.mxu0 %v11759_v44  ;;  %v11849_v44 = vld [vmem:[%s13860_s16 + $0x184] ss:$48 sps:$4 sm:$0xff]  }
  0xee   : > { %2505 = vmatpush1.bf16.msra.mxu1 %v11762_v45  ;;  %2342 = vmatprep.subr.bf16.mxu0 %v11767_v46  ;;  %v11844_v45 = vld [vmem:[%s13854_s30 + $0x6c0] ss:$24 sps:$4 sm:$0xff]  }
  0xef   : > { %2506 = vmatprep.subr.bf16.mxu1 %v11770_v47  ;;  %v11847_v46 = vld [vmem:[%s13860_s16 + $0x180] ss:$48 sps:$4 sm:$0xff]   ;;  %v11852_v47 = vld [vmem:[%s13854_s30 + $0x6f4] ss:$24 sps:$4 sm:$0xff]  }
  0xf1   : > { %2343 = vmatpush1.bf16.msra.mxu0 %v11765_v48  ;;  %v11855_v48 = vld [vmem:[%s13860_s16 + $0x1e4] ss:$48 sps:$4 sm:$0xff]  }
  0xf2   : > { %2507 = vmatpush1.bf16.msra.mxu1 %v11768_v50  ;;  %2344 = vmatprep.subr.bf16.mxu0 %v11773_v51  ;;  %v11850_v50 = vld [vmem:[%s13854_s30 + $0x6f0] ss:$24 sps:$4 sm:$0xff]  }
  0xf3   : > { %2508 = vmatprep.subr.bf16.mxu1 %v11776_v52  ;;  %v11853_v51 = vld [vmem:[%s13860_s16 + $0x1e0] ss:$48 sps:$4 sm:$0xff]   ;;  %v11858_v52 = vld [vmem:[%s13854_s30 + $0x724] ss:$24 sps:$4 sm:$0xff]  }
  0xf5   : > { %2345 = vmatpush1.bf16.msra.mxu0 %v11771_v53  ;;  %v11861_v53 = vld [vmem:[%s13860_s16 + $0x244] ss:$48 sps:$4 sm:$0xff]  }
  0xf6   : > { %2509 = vmatpush1.bf16.msra.mxu1 %v11774_v54  ;;  %2346 = vmatprep.subr.bf16.mxu0 %v11779_v55  ;;  %v11856_v54 = vld [vmem:[%s13854_s30 + $0x720] ss:$24 sps:$4 sm:$0xff]  }
  0xf7   : > { %2510 = vmatprep.subr.bf16.mxu1 %v11782_v56  ;;  %v11859_v55 = vld [vmem:[%s13860_s16 + $0x240] ss:$48 sps:$4 sm:$0xff]   ;;  %v11864_v56 = vld [vmem:[%s13854_s30 + $0x754] ss:$24 sps:$4 sm:$0xff]  }
  0xf9   : > { %2347 = vmatpush1.bf16.msra.mxu0 %v11777_v57  ;;  %v11867_v57 = vld [vmem:[%s13860_s16 + $0x2a4] ss:$48 sps:$4 sm:$0xff]  }
  0xfa   : > { %2511 = vmatpush1.bf16.msra.mxu1 %v11780_v58  ;;  %2348 = vmatprep.subr.bf16.mxu0 %v11785_v59  ;;  %v11862_v58 = vld [vmem:[%s13854_s30 + $0x750] ss:$24 sps:$4 sm:$0xff]  }
  0xfb   : > { %2512 = vmatprep.subr.bf16.mxu1 %v11788_v61  ;;  %v11865_v59 = vld [vmem:[%s13860_s16 + $0x2a0] ss:$48 sps:$4 sm:$0xff]   ;;  %v11870_v61 = vld [vmem:[%s13854_s30 + $0x784] ss:$24 sps:$4 sm:$0xff]  }
  0xfd   : > { %2349 = vmatpush1.bf16.msra.mxu0 %v11783_v62  ;;  %v11873_v62 = vld [vmem:[%s13860_s16 + $0x304] ss:$48 sps:$4 sm:$0xff]  }
  0xfe   : > { %2513 = vmatpush1.bf16.msra.mxu1 %v11786_v63  ;;  %2350 = vmatprep.subr.bf16.mxu0 %v11791_v1  ;;  %v11868_v63 = vld [vmem:[%s13854_s30 + $0x780] ss:$24 sps:$4 sm:$0xff]  }
  0xff   : > { %2514 = vmatprep.subr.bf16.mxu1 %v11794_v2  ;;  %v11871_v1 = vld [vmem:[%s13860_s16 + $0x300] ss:$48 sps:$4 sm:$0xff]   ;;  %v11876_v2 = vld [vmem:[%s13854_s30 + $0x7b4] ss:$24 sps:$4 sm:$0xff]  }
 0x101   : > { %2351 = vmatpush1.bf16.msra.mxu0 %v11789_v3  ;;  %v11879_v3 = vld [vmem:[%s13860_s16 + $0x364] ss:$48 sps:$4 sm:$0xff]  }
 0x102   : > { %2515 = vmatpush1.bf16.msra.mxu1 %v11792_v4  ;;  %2352 = vmatprep.subr.bf16.mxu0 %v11797_v5  ;;  %v11874_v4 = vld [vmem:[%s13854_s30 + $0x7b0] ss:$24 sps:$4 sm:$0xff]  }
 0x103   : > { %2516 = vmatprep.subr.bf16.mxu1 %v11800_v6  ;;  %v11877_v5 = vld [vmem:[%s13860_s16 + $0x360] ss:$48 sps:$4 sm:$0xff]   ;;  %v11882_v6 = vld [vmem:[%s13854_s30 + $0x7e4] ss:$24 sps:$4 sm:$0xff]  }
 0x105   : > { %2353 = vmatpush1.bf16.msra.mxu0 %v11795_v7  ;;  %v11885_v7 = vld [vmem:[%s13860_s16 + $0x3c4] ss:$48 sps:$4 sm:$0xff]  }
 0x106   : > { %2517 = vmatpush1.bf16.msra.mxu1 %v11798_v8  ;;  %2354 = vmatprep.subr.bf16.mxu0 %v11803_v9  ;;  %v11880_v8 = vld [vmem:[%s13854_s30 + $0x7e0] ss:$24 sps:$4 sm:$0xff]  }
 0x107   : > { %2518 = vmatprep.subr.bf16.mxu1 %v11806_v11  ;;  %v11883_v9 = vld [vmem:[%s13860_s16 + $0x3c0] ss:$48 sps:$4 sm:$0xff]   ;;  %v11888_v11 = vld [vmem:[%s13854_s30 + $0x814] ss:$24 sps:$4 sm:$0xff]  }
 0x109   : > { %2355 = vmatpush1.bf16.msra.mxu0 %v11801_v13  ;;  %v11891_v13 = vld [vmem:[%s13860_s16 + $0x424] ss:$48 sps:$4 sm:$0xff]  }
 0x10a   : > { %2519 = vmatpush1.bf16.msra.mxu1 %v11804_v14  ;;  %2356 = vmatprep.subr.bf16.mxu0 %v11809_v15  ;;  %v11886_v14 = vld [vmem:[%s13854_s30 + $0x810] ss:$24 sps:$4 sm:$0xff]  }
 0x10b   : > { %2520 = vmatprep.subr.bf16.mxu1 %v11812_v16  ;;  %v11889_v15 = vld [vmem:[%s13860_s16 + $0x420] ss:$48 sps:$4 sm:$0xff]   ;;  %v11894_v16 = vld [vmem:[%s13854_s30 + $0x844] ss:$24 sps:$4 sm:$0xff]  }
 0x10d   : > { %2357 = vmatpush1.bf16.msra.mxu0 %v11807_v17  ;;  %v11897_v17 = vld [vmem:[%s13860_s16 + $0x484] ss:$48 sps:$4 sm:$0xff]  }
 0x10e   : > { %2521 = vmatpush1.bf16.msra.mxu1 %v11810_v19  ;;  %2358 = vmatprep.subr.bf16.mxu0 %v11815_v20  ;;  %v11892_v19 = vld [vmem:[%s13854_s30 + $0x840] ss:$24 sps:$4 sm:$0xff]  }
 0x10f   : > { %2522 = vmatprep.subr.bf16.mxu1 %v11818_v21  ;;  %v11895_v20 = vld [vmem:[%s13860_s16 + $0x480] ss:$48 sps:$4 sm:$0xff]   ;;  %v11900_v21 = vld [vmem:[%s13854_s30 + $0x874] ss:$24 sps:$4 sm:$0xff]  }
 0x111   : > { %2359 = vmatpush1.bf16.msra.mxu0 %v11813_v23  ;;  %v11903_v23 = vld [vmem:[%s13860_s16 + $0x4e4] ss:$48 sps:$4 sm:$0xff]  }
 0x112   : > { %2523 = vmatpush1.bf16.msra.mxu1 %v11816_v24  ;;  %2369 = vmatprep.subr.bf16.mxu0 %v11821_v25  ;;  %v11898_v24 = vld [vmem:[%s13854_s30 + $0x870] ss:$24 sps:$4 sm:$0xff]  }
 0x113   : > { %6142 = vmatprep.subr.bf16.mxu1 %v11825_v26  ;;  %v11901_v25 = vld [vmem:[%s13860_s16 + $0x4e0] ss:$48 sps:$4 sm:$0xff]   ;;  %v11906_v26 = vld [vmem:[%s13854_s30 + $0x8a4] ss:$24 sps:$4 sm:$0xff]  }
 0x114   : > { %2361 = vmatmul.mubr.bf16.vlgmr.msra.gmra.mrb[0].mxu0 %v13968_v18 }
 0x115   : > { %2525 = vmatmul.mubr.bf16.vlgmr.msra.gmra.mrb[0].mxu1 %v14049_v28  ;;  %2370 = vmatpush1.bf16.msra.mxu0 %v11819_v27  ;;  %v11909_v27 = vld [vmem:[%s13860_s16 + $0x544] ss:$48 sps:$4 sm:$0xff]  }
 0x116   : > { %6143 = vmatpush1.bf16.msra.mxu1 %v11823_v29  ;;  %2371 = vmatprep.subr.bf16.mxu0 %v11828_v30  ;;  %v11904_v29 = vld [vmem:[%s13854_s30 + $0x8a0] ss:$24 sps:$4 sm:$0xff]  }
 0x117   : > { %6144 = vmatprep.subr.bf16.mxu1 %v11831_v31  ;;  %2401 = vmatprep.mubr.bf16.mxu0 %v13974_v22  ;;  %v11907_v30 = vld [vmem:[%s13860_s16 + $0x540] ss:$48 sps:$4 sm:$0xff]   ;;  %v11912_v31 = vld [vmem:[%s13854_s30 + $0x8d4] ss:$24 sps:$4 sm:$0xff]  }
 0x118   : > { %6174 = vmatprep.mubr.bf16.mxu1 %v11919_v32  ;;  %v11915_v32 = vld [vmem:[%s13860_s16 + $0x5a4] ss:$48 sps:$4 sm:$0xff]  }
 0x119   : > { %2372 = vmatpush1.bf16.msra.mxu0 %v11826_v33  ;;  %v11910_v33 = vld [vmem:[%s13854_s30 + $0x8d0] ss:$24 sps:$4 sm:$0xff]  }
 0x11a   : > { %6145 = vmatpush1.bf16.msra.mxu1 %v11829_v10  ;;  %2373 = vmatprep.subr.bf16.mxu0 %v11834_v34  ;;  %v11913_v10 = vld [vmem:[%s13860_s16 + $0x5a0] ss:$48 sps:$4 sm:$0xff]   ;;  %v11918_v34 = vld [vmem:[%s13854_s30 + $0xc] ss:$24 sps:$4 sm:$0xff]  }
 0x11b   : > { %6146 = vmatprep.subr.bf16.mxu1 %v11837_v35  ;;  %v11923_v35 = vld [vmem:[%s13860_s16 + $0x604] ss:$48 sps:$4 sm:$0xff]  }
 0x11d   : > { %2374 = vmatpush1.bf16.msra.mxu0 %v11832_v36  ;;  %v11916_v36 = vld [vmem:[%s13854_s30 + $0x8] ss:$24 sps:$4 sm:$0xff]  }
 0x11e   : > { %6147 = vmatpush1.bf16.msra.mxu1 %v11835_v37  ;;  %2375 = vmatprep.subr.bf16.mxu0 %v11840_v38  ;;  %v11924_v37 = vld [vmem:[%s14044_s27] ss:$24 sps:$4 sm:$0xff]  }
 0x11f   : > { %6148 = vmatprep.subr.bf16.mxu1 %v11843_v39  ;;  %v11921_v38 = vld [vmem:[%s13860_s16 + $0x600] ss:$48 sps:$4 sm:$0xff]   ;;  %v11927_v39 = vld [vmem:[%s13854_s30 + $0x3c] ss:$24 sps:$4 sm:$0xff]  }
 0x121   : > { %2376 = vmatpush1.bf16.msra.mxu0 %v11838_v40  ;;  %v11930_v40 = vld [vmem:[%s13860_s16 + $0x664] ss:$48 sps:$4 sm:$0xff]  }
 0x122   : > { %6149 = vmatpush1.bf16.msra.mxu1 %v11841_v41  ;;  %2377 = vmatprep.subr.bf16.mxu0 %v11846_v42  ;;  %v12018_v41 = vld [vmem:[%s14044_s27 + $0xc] ss:$24 sps:$4 sm:$0xff]   ;;  %v11925_v42 = vld [vmem:[%s13854_s30 + $0x38] ss:$24 sps:$4 sm:$0xff]  }
 0x123   : > { %6150 = vmatprep.subr.bf16.mxu1 %v11849_v44  ;;  %v11928_v44 = vld [vmem:[%s13860_s16 + $0x660] ss:$48 sps:$4 sm:$0xff]  }
 0x125   : > { %2378 = vmatpush1.bf16.msra.mxu0 %v11844_v45  ;;  %v11933_v45 = vld [vmem:[%s13854_s30 + $0x6c] ss:$24 sps:$4 sm:$0xff]  }
 0x126   : > { %6151 = vmatpush1.bf16.msra.mxu1 %v11847_v46  ;;  %2379 = vmatprep.subr.bf16.mxu0 %v11852_v47  ;;  %v11936_v46 = vld [vmem:[%s13860_s16 + $0x6c4] ss:$48 sps:$4 sm:$0xff]   ;;  %v11931_v47 = vld [vmem:[%s13854_s30 + $0x68] ss:$24 sps:$4 sm:$0xff]  }
 0x127   : > { %6152 = vmatprep.subr.bf16.mxu1 %v11855_v48  ;;  %v11934_v48 = vld [vmem:[%s13860_s16 + $0x6c0] ss:$48 sps:$4 sm:$0xff]  }
 0x129   : > { %2380 = vmatpush1.bf16.msra.mxu0 %v11850_v50  ;;  %v11939_v50 = vld [vmem:[%s13854_s30 + $0x9c] ss:$24 sps:$4 sm:$0xff]  }
 0x12a   : > { %6153 = vmatpush1.bf16.msra.mxu1 %v11853_v51  ;;  %2381 = vmatprep.subr.bf16.mxu0 %v11858_v52  ;;  %v11942_v51 = vld [vmem:[%s13860_s16 + $0x724] ss:$48 sps:$4 sm:$0xff]   ;;  %v11937_v52 = vld [vmem:[%s13854_s30 + $0x98] ss:$24 sps:$4 sm:$0xff]  }
 0x12b   : > { %6154 = vmatprep.subr.bf16.mxu1 %v11861_v53  ;;  %v11940_v53 = vld [vmem:[%s13860_s16 + $0x720] ss:$48 sps:$4 sm:$0xff]  }
 0x12d   : > { %2382 = vmatpush1.bf16.msra.mxu0 %v11856_v54  ;;  %v11945_v54 = vld [vmem:[%s13854_s30 + $0xcc] ss:$24 sps:$4 sm:$0xff]  }
 0x12e   : > { %6155 = vmatpush1.bf16.msra.mxu1 %v11859_v55  ;;  %2383 = vmatprep.subr.bf16.mxu0 %v11864_v56  ;;  %v11948_v55 = vld [vmem:[%s13860_s16 + $0x784] ss:$48 sps:$4 sm:$0xff]   ;;  %v11943_v56 = vld [vmem:[%s13854_s30 + $0xc8] ss:$24 sps:$4 sm:$0xff]  }
 0x12f   : > { %6156 = vmatprep.subr.bf16.mxu1 %v11867_v57  ;;  %v11946_v57 = vld [vmem:[%s13860_s16 + $0x780] ss:$48 sps:$4 sm:$0xff]  }
 0x131   : > { %2384 = vmatpush1.bf16.msra.mxu0 %v11862_v58  ;;  %v11951_v58 = vld [vmem:[%s13854_s30 + $0xfc] ss:$24 sps:$4 sm:$0xff]  }
 0x132   : > { %6157 = vmatpush1.bf16.msra.mxu1 %v11865_v59  ;;  %2385 = vmatprep.subr.bf16.mxu0 %v11870_v61  ;;  %v11954_v59 = vld [vmem:[%s13860_s16 + $0x7e4] ss:$48 sps:$4 sm:$0xff]   ;;  %v11949_v61 = vld [vmem:[%s13854_s30 + $0xf8] ss:$24 sps:$4 sm:$0xff]  }
 0x133   : > { %6158 = vmatprep.subr.bf16.mxu1 %v11873_v62  ;;  %v11952_v62 = vld [vmem:[%s13860_s16 + $0x7e0] ss:$48 sps:$4 sm:$0xff]  }
 0x135   : > { %2386 = vmatpush1.bf16.msra.mxu0 %v11868_v63  ;;  %v11957_v63 = vld [vmem:[%s13854_s30 + $0x12c] ss:$24 sps:$4 sm:$0xff]  }
 0x136   : > { %6159 = vmatpush1.bf16.msra.mxu1 %v11871_v1  ;;  %2387 = vmatprep.subr.bf16.mxu0 %v11876_v2  ;;  %v11960_v1 = vld [vmem:[%s13860_s16 + $0x844] ss:$48 sps:$4 sm:$0xff]   ;;  %v11955_v2 = vld [vmem:[%s13854_s30 + $0x128] ss:$24 sps:$4 sm:$0xff]  }
 0x137   : > { %6160 = vmatprep.subr.bf16.mxu1 %v11879_v3  ;;  %v11958_v3 = vld [vmem:[%s13860_s16 + $0x840] ss:$48 sps:$4 sm:$0xff]  }
 0x139   : > { %2388 = vmatpush1.bf16.msra.mxu0 %v11874_v4  ;;  %v11963_v4 = vld [vmem:[%s13854_s30 + $0x15c] ss:$24 sps:$4 sm:$0xff]  }
 0x13a   : > { %6161 = vmatpush1.bf16.msra.mxu1 %v11877_v5  ;;  %2389 = vmatprep.subr.bf16.mxu0 %v11882_v6  ;;  %v11966_v5 = vld [vmem:[%s13860_s16 + $0x8a4] ss:$48 sps:$4 sm:$0xff]   ;;  %v11961_v6 = vld [vmem:[%s13854_s30 + $0x158] ss:$24 sps:$4 sm:$0xff]  }
 0x13b   : > { %6162 = vmatprep.subr.bf16.mxu1 %v11885_v7  ;;  %v11964_v7 = vld [vmem:[%s13860_s16 + $0x8a0] ss:$48 sps:$4 sm:$0xff]  }
 0x13d   : > { %2390 = vmatpush1.bf16.msra.mxu0 %v11880_v8  ;;  %v11969_v8 = vld [vmem:[%s13854_s30 + $0x18c] ss:$24 sps:$4 sm:$0xff]  }
 0x13e   : > { %6163 = vmatpush1.bf16.msra.mxu1 %v11883_v9  ;;  %2391 = vmatprep.subr.bf16.mxu0 %v11888_v11  ;;  %v11972_v9 = vld [vmem:[%s13860_s16 + $0x904] ss:$48 sps:$4 sm:$0xff]   ;;  %v11967_v11 = vld [vmem:[%s13854_s30 + $0x188] ss:$24 sps:$4 sm:$0xff]  }
 0x13f   : > { %6164 = vmatprep.subr.bf16.mxu1 %v11891_v13  ;;  %v11970_v13 = vld [vmem:[%s13860_s16 + $0x900] ss:$48 sps:$4 sm:$0xff]  }
 0x141   : > { %2392 = vmatpush1.bf16.msra.mxu0 %v11886_v14  ;;  %v11975_v14 = vld [vmem:[%s13854_s30 + $0x1bc] ss:$24 sps:$4 sm:$0xff]  }
 0x142   : > { %6165 = vmatpush1.bf16.msra.mxu1 %v11889_v15  ;;  %2393 = vmatprep.subr.bf16.mxu0 %v11894_v16  ;;  %v11978_v15 = vld [vmem:[%s13860_s16 + $0x964] ss:$48 sps:$4 sm:$0xff]   ;;  %v11973_v16 = vld [vmem:[%s13854_s30 + $0x1b8] ss:$24 sps:$4 sm:$0xff]  }
 0x143   : > { %6166 = vmatprep.subr.bf16.mxu1 %v11897_v17  ;;  %v11976_v17 = vld [vmem:[%s13860_s16 + $0x960] ss:$48 sps:$4 sm:$0xff]  }
 0x145   : > { %2394 = vmatpush1.bf16.msra.mxu0 %v11892_v19  ;;  %v11981_v19 = vld [vmem:[%s13854_s30 + $0x1ec] ss:$24 sps:$4 sm:$0xff]  }
 0x146   : > { %6167 = vmatpush1.bf16.msra.mxu1 %v11895_v20  ;;  %2395 = vmatprep.subr.bf16.mxu0 %v11900_v21  ;;  %v11984_v20 = vld [vmem:[%s13860_s16 + $0x9c4] ss:$48 sps:$4 sm:$0xff]   ;;  %v11979_v21 = vld [vmem:[%s13854_s30 + $0x1e8] ss:$24 sps:$4 sm:$0xff]  }
 0x147   : > { %6168 = vmatprep.subr.bf16.mxu1 %v11903_v23  ;;  %v11982_v23 = vld [vmem:[%s13860_s16 + $0x9c0] ss:$48 sps:$4 sm:$0xff]  }
 0x149   : > { %2396 = vmatpush1.bf16.msra.mxu0 %v11898_v24  ;;  %v11987_v24 = vld [vmem:[%s13854_s30 + $0x21c] ss:$24 sps:$4 sm:$0xff]  }
 0x14a   : > { %6169 = vmatpush1.bf16.msra.mxu1 %v11901_v25  ;;  %2397 = vmatprep.subr.bf16.mxu0 %v11906_v26  ;;  %v11990_v25 = vld [vmem:[%s13860_s16 + $0xa24] ss:$48 sps:$4 sm:$0xff]   ;;  %v11985_v26 = vld [vmem:[%s13854_s30 + $0x218] ss:$24 sps:$4 sm:$0xff]  }
 0x14b   : > { %6170 = vmatprep.subr.bf16.mxu1 %v11909_v27  ;;  %v11988_v27 = vld [vmem:[%s13860_s16 + $0xa20] ss:$48 sps:$4 sm:$0xff]  }
 0x14d   : > { %2398 = vmatpush1.bf16.msra.mxu0 %v11904_v29  ;;  %v11993_v29 = vld [vmem:[%s13854_s30 + $0x24c] ss:$24 sps:$4 sm:$0xff]  }
 0x14e   : > { %6171 = vmatpush1.bf16.msra.mxu1 %v11907_v30  ;;  %2399 = vmatprep.subr.bf16.mxu0 %v11912_v31  ;;  %v11996_v30 = vld [vmem:[%s13860_s16 + $0xa84] ss:$48 sps:$4 sm:$0xff]   ;;  %v11991_v31 = vld [vmem:[%s13854_s30 + $0x248] ss:$24 sps:$4 sm:$0xff]  }
 0x14f   : > { %6172 = vmatprep.subr.bf16.mxu1 %v11915_v32  ;;  %v11994_v32 = vld [vmem:[%s13860_s16 + $0xa80] ss:$48 sps:$4 sm:$0xff]  }
 0x151   : > { %2400 = vmatpush1.bf16.msra.mxu0 %v11910_v33  ;;  %v11999_v33 = vld [vmem:[%s13854_s30 + $0x27c] ss:$24 sps:$4 sm:$0xff]  }
 0x152   : > { %6173 = vmatpush1.bf16.msra.mxu1 %v11913_v10  ;;  %2410 = vmatprep.subr.bf16.mxu0 %v11918_v34  ;;  %v12002_v10 = vld [vmem:[%s13860_s16 + $0xae4] ss:$48 sps:$4 sm:$0xff]   ;;  %v11997_v34 = vld [vmem:[%s13854_s30 + $0x278] ss:$24 sps:$4 sm:$0xff]  }
 0x153   : > { %6185 = vmatprep.subr.bf16.mxu1 %v11923_v35  ;;  %v12000_v35 = vld [vmem:[%s13860_s16 + $0xae0] ss:$48 sps:$4 sm:$0xff]  }
 0x154   : > { %2402 = vmatmul.mubr.bf16.vlgmr.msra.gmra.mrb[0].mxu0 %v14049_v28 }
 0x155   : > { %6175 = vmatmul.mubr.bf16.vlgmr.msra.gmra.mrb[4].mxu1 %v11924_v37  ;;  %2411 = vmatpush1.bf16.msra.mxu0 %v11916_v36  ;;  %v12005_v36 = vld [vmem:[%s13854_s30 + $0x2ac] ss:$24 sps:$4 sm:$0xff]  }
 0x156   : > { %6186 = vmatpush1.bf16.msra.mxu1 %v11921_v38  ;;  %2412 = vmatprep.subr.bf16.mxu0 %v11927_v39  ;;  %v12008_v37 = vld [vmem:[%s13860_s16 + $0xb44] ss:$48 sps:$4 sm:$0xff]   ;;  %v12003_v38 = vld [vmem:[%s13854_s30 + $0x2a8] ss:$24 sps:$4 sm:$0xff]  }
 0x157   : > { %6187 = vmatprep.subr.bf16.mxu1 %v11930_v40  ;;  %2442 = vmatprep.mubr.bf16.mxu0 %v13934_v60  ;;  %v12006_v39 = vld [vmem:[%s13860_s16 + $0xb40] ss:$48 sps:$4 sm:$0xff]   ;;  %v12011_v40 = vld [vmem:[%s13854_s30 + $0x2dc] ss:$24 sps:$4 sm:$0xff]  }
 0x158   : > { %6217 = vmatprep.mubr.bf16.mxu1 %v12018_v41  ;;  %v12014_v41 = vld [vmem:[%s13860_s16 + $0xba4] ss:$48 sps:$4 sm:$0xff]  }
 0x159   : > { %2413 = vmatpush1.bf16.msra.mxu0 %v11925_v42  ;;  %v12009_v42 = vld [vmem:[%s13854_s30 + $0x2d8] ss:$24 sps:$4 sm:$0xff]  }
 0x15a   : > { %6188 = vmatpush1.bf16.msra.mxu1 %v11928_v44  ;;  %2414 = vmatprep.subr.bf16.mxu0 %v11933_v45  ;;  %v12012_v44 = vld [vmem:[%s13860_s16 + $0xba0] ss:$48 sps:$4 sm:$0xff]   ;;  %v12017_v45 = vld [vmem:[%s13854_s30 + $0x14] ss:$24 sps:$4 sm:$0xff]  }
 0x15b   : > { %6189 = vmatprep.subr.bf16.mxu1 %v11936_v46  ;;  %v12022_v46 = vld [vmem:[%s13860_s16 + $0xc04] ss:$48 sps:$4 sm:$0xff]  }
 0x15d   : > { %2415 = vmatpush1.bf16.msra.mxu0 %v11931_v47  ;;  %v12015_v47 = vld [vmem:[%s13854_s30 + $0x10] ss:$24 sps:$4 sm:$0xff]  }
 0x15e   : > { %6190 = vmatpush1.bf16.msra.mxu1 %v11934_v48  ;;  %2416 = vmatprep.subr.bf16.mxu0 %v11939_v50  ;;  %v12023_v48 = vld [vmem:[%s14044_s27 + $0x8] ss:$24 sps:$4 sm:$0xff]  }
 0x15f   : > { %6191 = vmatprep.subr.bf16.mxu1 %v11942_v51  ;;  %v12020_v50 = vld [vmem:[%s13860_s16 + $0xc00] ss:$48 sps:$4 sm:$0xff]   ;;  %v12026_v51 = vld [vmem:[%s13854_s30 + $0x44] ss:$24 sps:$4 sm:$0xff]  }
 0x161   : > { %2417 = vmatpush1.bf16.msra.mxu0 %v11937_v52  ;;  %v12029_v52 = vld [vmem:[%s13860_s16 + $0xc64] ss:$48 sps:$4 sm:$0xff]  }
 0x162   : > { %6192 = vmatpush1.bf16.msra.mxu1 %v11940_v53  ;;  %2418 = vmatprep.subr.bf16.mxu0 %v11945_v54  ;;  %v12114_v53 = vld [vmem:[%s14044_s27 + $0x14] ss:$24 sps:$4 sm:$0xff]   ;;  %v12024_v54 = vld [vmem:[%s13854_s30 + $0x40] ss:$24 sps:$4 sm:$0xff]  }
 0x163   : > { %6193 = vmatprep.subr.bf16.mxu1 %v11948_v55  ;;  %v12027_v55 = vld [vmem:[%s13860_s16 + $0xc60] ss:$48 sps:$4 sm:$0xff]  }
 0x165   : > { %2419 = vmatpush1.bf16.msra.mxu0 %v11943_v56  ;;  %v12032_v56 = vld [vmem:[%s13854_s30 + $0x74] ss:$24 sps:$4 sm:$0xff]  }
 0x166   : > { %6194 = vmatpush1.bf16.msra.mxu1 %v11946_v57  ;;  %2420 = vmatprep.subr.bf16.mxu0 %v11951_v58  ;;  %v12035_v57 = vld [vmem:[%s13860_s16 + $0xcc4] ss:$48 sps:$4 sm:$0xff]   ;;  %v12030_v58 = vld [vmem:[%s13854_s30 + $0x70] ss:$24 sps:$4 sm:$0xff]  }
 0x167   : > { %6195 = vmatprep.subr.bf16.mxu1 %v11954_v59  ;;  %v12033_v59 = vld [vmem:[%s13860_s16 + $0xcc0] ss:$48 sps:$4 sm:$0xff]  }
 0x169   : > { %2421 = vmatpush1.bf16.msra.mxu0 %v11949_v61  ;;  %v12038_v61 = vld [vmem:[%s13854_s30 + $0xa4] ss:$24 sps:$4 sm:$0xff]  }
 0x16a   : > { %6196 = vmatpush1.bf16.msra.mxu1 %v11952_v62  ;;  %2422 = vmatprep.subr.bf16.mxu0 %v11957_v63  ;;  %v12041_v62 = vld [vmem:[%s13860_s16 + $0xd24] ss:$48 sps:$4 sm:$0xff]   ;;  %v12036_v63 = vld [vmem:[%s13854_s30 + $0xa0] ss:$24 sps:$4 sm:$0xff]  }
 0x16b   : > { %6197 = vmatprep.subr.bf16.mxu1 %v11960_v1  ;;  %v12039_v1 = vld [vmem:[%s13860_s16 + $0xd20] ss:$48 sps:$4 sm:$0xff]  }
 0x16d   : > { %2423 = vmatpush1.bf16.msra.mxu0 %v11955_v2  ;;  %v12047_v2 = vld [vmem:[%s13860_s16 + $0xd84] ss:$48 sps:$4 sm:$0xff]  }
 0x16e   : > { %6198 = vmatpush1.bf16.msra.mxu1 %v11958_v3  ;;  %2424 = vmatprep.subr.bf16.mxu0 %v11963_v4  ;;  %v12042_v3 = vld [vmem:[%s13854_s30 + $0xd0] ss:$24 sps:$4 sm:$0xff]  }
 0x16f   : > { %6199 = vmatprep.subr.bf16.mxu1 %v11966_v5  ;;  %v12045_v4 = vld [vmem:[%s13860_s16 + $0xd80] ss:$48 sps:$4 sm:$0xff]   ;;  %v12050_v5 = vld [vmem:[%s13854_s30 + $0x104] ss:$24 sps:$4 sm:$0xff]  }
 0x171   : > { %2425 = vmatpush1.bf16.msra.mxu0 %v11961_v6  ;;  %v12053_v6 = vld [vmem:[%s13860_s16 + $0xde4] ss:$48 sps:$4 sm:$0xff]  }
 0x172   : > { %6200 = vmatpush1.bf16.msra.mxu1 %v11964_v7  ;;  %2426 = vmatprep.subr.bf16.mxu0 %v11969_v8  ;;  %v12048_v7 = vld [vmem:[%s13854_s30 + $0x100] ss:$24 sps:$4 sm:$0xff]  }
 0x173   : > { %6201 = vmatprep.subr.bf16.mxu1 %v11972_v9  ;;  %v12051_v8 = vld [vmem:[%s13860_s16 + $0xde0] ss:$48 sps:$4 sm:$0xff]   ;;  %v12056_v9 = vld [vmem:[%s13854_s30 + $0x134] ss:$24 sps:$4 sm:$0xff]  }
 0x175   : > { %2427 = vmatpush1.bf16.msra.mxu0 %v11967_v11  ;;  %v12059_v11 = vld [vmem:[%s13860_s16 + $0xe44] ss:$48 sps:$4 sm:$0xff]  }
 0x176   : > { %6202 = vmatpush1.bf16.msra.mxu1 %v11970_v13  ;;  %2428 = vmatprep.subr.bf16.mxu0 %v11975_v14  ;;  %v12054_v13 = vld [vmem:[%s13854_s30 + $0x130] ss:$24 sps:$4 sm:$0xff]  }
 0x177   : > { %6203 = vmatprep.subr.bf16.mxu1 %v11978_v15  ;;  %v12057_v14 = vld [vmem:[%s13860_s16 + $0xe40] ss:$48 sps:$4 sm:$0xff]   ;;  %v12062_v15 = vld [vmem:[%s13854_s30 + $0x164] ss:$24 sps:$4 sm:$0xff]  }
 0x179   : > { %2429 = vmatpush1.bf16.msra.mxu0 %v11973_v16  ;;  %v12065_v16 = vld [vmem:[%s13860_s16 + $0xea4] ss:$48 sps:$4 sm:$0xff]  }
 0x17a   : > { %6204 = vmatpush1.bf16.msra.mxu1 %v11976_v17  ;;  %2430 = vmatprep.subr.bf16.mxu0 %v11981_v19  ;;  %v12060_v17 = vld [vmem:[%s13854_s30 + $0x160] ss:$24 sps:$4 sm:$0xff]  }
 0x17b   : > { %6205 = vmatprep.subr.bf16.mxu1 %v11984_v20  ;;  %v12063_v19 = vld [vmem:[%s13860_s16 + $0xea0] ss:$48 sps:$4 sm:$0xff]   ;;  %v12068_v20 = vld [vmem:[%s13854_s30 + $0x194] ss:$24 sps:$4 sm:$0xff]  }
 0x17d   : > { %2431 = vmatpush1.bf16.msra.mxu0 %v11979_v21  ;;  %v12071_v21 = vld [vmem:[%s13860_s16 + $0xf04] ss:$48 sps:$4 sm:$0xff]  }
 0x17e   : > { %6206 = vmatpush1.bf16.msra.mxu1 %v11982_v23  ;;  %2432 = vmatprep.subr.bf16.mxu0 %v11987_v24  ;;  %v12066_v23 = vld [vmem:[%s13854_s30 + $0x190] ss:$24 sps:$4 sm:$0xff]  }
 0x17f   : > { %6207 = vmatprep.subr.bf16.mxu1 %v11990_v25  ;;  %v12069_v24 = vld [vmem:[%s13860_s16 + $0xf00] ss:$48 sps:$4 sm:$0xff]   ;;  %v12074_v25 = vld [vmem:[%s13854_s30 + $0x1c4] ss:$24 sps:$4 sm:$0xff]  }
 0x181   : > { %2433 = vmatpush1.bf16.msra.mxu0 %v11985_v26  ;;  %v12077_v26 = vld [vmem:[%s13860_s16 + $0xf64] ss:$48 sps:$4 sm:$0xff]  }
 0x182   : > { %6208 = vmatpush1.bf16.msra.mxu1 %v11988_v27  ;;  %2434 = vmatprep.subr.bf16.mxu0 %v11993_v29  ;;  %v12072_v27 = vld [vmem:[%s13854_s30 + $0x1c0] ss:$24 sps:$4 sm:$0xff]  }
 0x183   : > { %6209 = vmatprep.subr.bf16.mxu1 %v11996_v30  ;;  %v12075_v29 = vld [vmem:[%s13860_s16 + $0xf60] ss:$48 sps:$4 sm:$0xff]   ;;  %v12080_v30 = vld [vmem:[%s13854_s30 + $0x1f4] ss:$24 sps:$4 sm:$0xff]  }
 0x185   : > { %2435 = vmatpush1.bf16.msra.mxu0 %v11991_v31  ;;  %v12083_v31 = vld [vmem:[%s13860_s16 + $0xfc4] ss:$48 sps:$4 sm:$0xff]  }
 0x186   : > { %6210 = vmatpush1.bf16.msra.mxu1 %v11994_v32  ;;  %2436 = vmatprep.subr.bf16.mxu0 %v11999_v33  ;;  %v12078_v32 = vld [vmem:[%s13854_s30 + $0x1f0] ss:$24 sps:$4 sm:$0xff]  }
 0x187   : > { %6211 = vmatprep.subr.bf16.mxu1 %v12002_v10  ;;  %v12081_v33 = vld [vmem:[%s13860_s16 + $0xfc0] ss:$48 sps:$4 sm:$0xff]   ;;  %v12086_v10 = vld [vmem:[%s13854_s30 + $0x224] ss:$24 sps:$4 sm:$0xff]  }
 0x189   : > { %2437 = vmatpush1.bf16.msra.mxu0 %v11997_v34  ;;  %v12089_v34 = vld [vmem:[%s13860_s16 + $0x1024] ss:$48 sps:$4 sm:$0xff]  }
 0x18a   : > { %6212 = vmatpush1.bf16.msra.mxu1 %v12000_v35  ;;  %2438 = vmatprep.subr.bf16.mxu0 %v12005_v36  ;;  %v12084_v35 = vld [vmem:[%s13854_s30 + $0x220] ss:$24 sps:$4 sm:$0xff]  }
 0x18b   : > { %6213 = vmatprep.subr.bf16.mxu1 %v12008_v37  ;;  %v12087_v36 = vld [vmem:[%s13860_s16 + $0x1020] ss:$48 sps:$4 sm:$0xff]   ;;  %v12092_v37 = vld [vmem:[%s13854_s30 + $0x254] ss:$24 sps:$4 sm:$0xff]  }
 0x18d   : > { %2439 = vmatpush1.bf16.msra.mxu0 %v12003_v38  ;;  %v12095_v38 = vld [vmem:[%s13860_s16 + $0x1084] ss:$48 sps:$4 sm:$0xff]  }
 0x18e   : > { %6214 = vmatpush1.bf16.msra.mxu1 %v12006_v39  ;;  %2440 = vmatprep.subr.bf16.mxu0 %v12011_v40  ;;  %v12090_v39 = vld [vmem:[%s13854_s30 + $0x250] ss:$24 sps:$4 sm:$0xff]  }
 0x18f   : > { %6215 = vmatprep.subr.bf16.mxu1 %v12014_v41  ;;  %v12093_v40 = vld [vmem:[%s13860_s16 + $0x1080] ss:$48 sps:$4 sm:$0xff]   ;;  %v12098_v41 = vld [vmem:[%s13854_s30 + $0x284] ss:$24 sps:$4 sm:$0xff]  }
 0x191   : > { %2441 = vmatpush1.bf16.msra.mxu0 %v12009_v42  ;;  %v12101_v42 = vld [vmem:[%s13860_s16 + $0x10e4] ss:$48 sps:$4 sm:$0xff]  }
 0x192   : > { %6216 = vmatpush1.bf16.msra.mxu1 %v12012_v44  ;;  %2533 = vmatprep.subr.bf16.mxu0 %v12017_v45  ;;  %v12096_v44 = vld [vmem:[%s13854_s30 + $0x280] ss:$24 sps:$4 sm:$0xff]  }
 0x193   : > { %6228 = vmatprep.subr.bf16.mxu1 %v12022_v46  ;;  %v12099_v45 = vld [vmem:[%s13860_s16 + $0x10e0] ss:$48 sps:$4 sm:$0xff]   ;;  %v12104_v46 = vld [vmem:[%s13854_s30 + $0x2b4] ss:$24 sps:$4 sm:$0xff]  }
 0x194   : > { %2443 = vmatmul.mubr.bf16.vlgmr.msra.gmra.mrb[4].mxu0 %v13958_v12 }
 0x195   : > { %6218 = vmatmul.mubr.bf16.vlgmr.msra.gmra.mrb[4].mxu1 %v12023_v48  ;;  %2534 = vmatpush1.bf16.msra.mxu0 %v12015_v47  ;;  %v12107_v47 = vld [vmem:[%s13860_s16 + $0x1144] ss:$48 sps:$4 sm:$0xff]   ;;  %v12102_v48 = vld [vmem:[%s13854_s30 + $0x2b0] ss:$24 sps:$4 sm:$0xff]  }
 0x196   : > { %6229 = vmatpush1.bf16.msra.mxu1 %v12020_v50  ;;  %2535 = vmatprep.subr.bf16.mxu0 %v12026_v51  ;;  %v12105_v50 = vld [vmem:[%s13860_s16 + $0x1140] ss:$48 sps:$4 sm:$0xff]   ;;  %v12110_v51 = vld [vmem:[%s13854_s30 + $0x2e4] ss:$24 sps:$4 sm:$0xff]  }
 0x197   : > { %6230 = vmatprep.subr.bf16.mxu1 %v12029_v52  ;;  %6260 = vmatprep.mubr.bf16.mxu1 %v12114_v53  ;;  %v12113_v52 = vld [vmem:[%s13860_s16 + $0x11a4] ss:$48 sps:$4 sm:$0xff]   ;;  %v12108_v53 = vld [vmem:[%s13854_s30 + $0x2e0] ss:$24 sps:$4 sm:$0xff]  }
 0x198   : > { %2565 = vmatprep.mubr.bf16.mxu0 %v13934_v60  ;;  %v12044_v60 = vld [vmem:[%s13854_s30 + $0xd4] ss:$24 sps:$4 sm:$0xff]  }
 0x199   : > { %2536 = vmatpush1.bf16.msra.mxu0 %v12024_v54  ;;  %v12111_v54 = vld [vmem:[%s13860_s16 + $0x11a0] ss:$48 sps:$4 sm:$0xff]  }
 0x19a   : > { %6231 = vmatpush1.bf16.msra.mxu1 %v12027_v55  ;;  %2537 = vmatprep.subr.bf16.mxu0 %v12032_v56  ;;  %v12118_v55 = vld [vmem:[%s13854_s30 + $0x314] ss:$24 sps:$4 sm:$0xff]   ;;  %v12119_v56 = vld [vmem:[%s14044_s27 + $0x10] ss:$24 sps:$4 sm:$0xff]  }
 0x19b   : > { %6232 = vmatprep.subr.bf16.mxu1 %v12035_v57  ;;  %v12122_v57 = vld [vmem:[%s13860_s16 + $0x14] ss:$48 sps:$4 sm:$0xff]  }
 0x19d   : > { %2538 = vmatpush1.bf16.msra.mxu0 %v12030_v58  ;;  %v12116_v58 = vld [vmem:[%s13854_s30 + $0x310] ss:$24 sps:$4 sm:$0xff]  }
 0x19e   : > { %6233 = vmatpush1.bf16.msra.mxu1 %v12033_v59  ;;  %2539 = vmatprep.subr.bf16.mxu0 %v12038_v61  ;;  %v12120_v59 = vld [vmem:[%s13860_s16 + $0x10] ss:$48 sps:$4 sm:$0xff]   ;;  %v12125_v61 = vld [vmem:[%s13854_s30 + $0x344] ss:$24 sps:$4 sm:$0xff]  }
 0x19f   : > { %6234 = vmatprep.subr.bf16.mxu1 %v12041_v62  ;;  %v12128_v62 = vld [vmem:[%s13860_s16 + $0x74] ss:$48 sps:$4 sm:$0xff]  }
 0x1a1   : > { %2540 = vmatpush1.bf16.msra.mxu0 %v12036_v63  ;;  %v12123_v63 = vld [vmem:[%s13854_s30 + $0x340] ss:$24 sps:$4 sm:$0xff]  }
 0x1a2   : > { %6235 = vmatpush1.bf16.msra.mxu1 %v12039_v1  ;;  %2541 = vmatprep.subr.bf16.mxu0 %v12044_v60  ;;  %v12126_v1 = vld [vmem:[%s13860_s16 + $0x70] ss:$48 sps:$4 sm:$0xff]   ;;  %v12131_v60 = vld [vmem:[%s13854_s30 + $0x374] ss:$24 sps:$4 sm:$0xff]  }
 0x1a3   : > { %6236 = vmatprep.subr.bf16.mxu1 %v12047_v2  ;;  %v12134_v2 = vld [vmem:[%s13860_s16 + $0xd4] ss:$48 sps:$4 sm:$0xff]  }
 0x1a5   : > { %2542 = vmatpush1.bf16.msra.mxu0 %v12042_v3  ;;  %v13421_v3 = vld [vmem:[%s14044_s27 + $0x4] ss:$24 sps:$4 sm:$0xff]  }
 0x1a6   : > { %6237 = vmatpush1.bf16.msra.mxu1 %v12045_v4  ;;  %2543 = vmatprep.subr.bf16.mxu0 %v12050_v5  ;;  %v12132_v4 = vld [vmem:[%s13860_s16 + $0xd0] ss:$48 sps:$4 sm:$0xff]   ;;  %v12137_v5 = vld [vmem:[%s13854_s30 + $0x3a4] ss:$24 sps:$4 sm:$0xff]  }
 0x1a7   : > { %6238 = vmatprep.subr.bf16.mxu1 %v12053_v6  ;;  %v12140_v6 = vld [vmem:[%s13860_s16 + $0x134] ss:$48 sps:$4 sm:$0xff]  }
 0x1a9   : > { %2544 = vmatpush1.bf16.msra.mxu0 %v12048_v7  ;;  %v12138_v7 = vld [vmem:[%s13860_s16 + $0x130] ss:$48 sps:$4 sm:$0xff]  }
 0x1aa   : > { %6239 = vmatpush1.bf16.msra.mxu1 %v12051_v8  ;;  %2545 = vmatprep.subr.bf16.mxu0 %v12056_v9  ;;  %v12143_v8 = vld [vmem:[%s13854_s30 + $0x3d4] ss:$24 sps:$4 sm:$0xff]  }
 0x1ab   : > { %6240 = vmatprep.subr.bf16.mxu1 %v12059_v11  ;;  %v12146_v9 = vld [vmem:[%s13860_s16 + $0x194] ss:$48 sps:$4 sm:$0xff]   ;;  %v12141_v11 = vld [vmem:[%s13854_s30 + $0x3d0] ss:$24 sps:$4 sm:$0xff]  }
 0x1ad   : > { %2546 = vmatpush1.bf16.msra.mxu0 %v12054_v13  ;;  %v12144_v13 = vld [vmem:[%s13860_s16 + $0x190] ss:$48 sps:$4 sm:$0xff]  }
 0x1ae   : > { %6241 = vmatpush1.bf16.msra.mxu1 %v12057_v14  ;;  %2547 = vmatprep.subr.bf16.mxu0 %v12062_v15  ;;  %v12149_v14 = vld [vmem:[%s13854_s30 + $0x404] ss:$24 sps:$4 sm:$0xff]  }
 0x1af   : > { %6242 = vmatprep.subr.bf16.mxu1 %v12065_v16  ;;  %v12152_v15 = vld [vmem:[%s13860_s16 + $0x1f4] ss:$48 sps:$4 sm:$0xff]   ;;  %v12147_v16 = vld [vmem:[%s13854_s30 + $0x400] ss:$24 sps:$4 sm:$0xff]  }
 0x1b1   : > { %2548 = vmatpush1.bf16.msra.mxu0 %v12060_v17  ;;  %v12150_v17 = vld [vmem:[%s13860_s16 + $0x1f0] ss:$48 sps:$4 sm:$0xff]  }
 0x1b2   : > { %6243 = vmatpush1.bf16.msra.mxu1 %v12063_v19  ;;  %2549 = vmatprep.subr.bf16.mxu0 %v12068_v20  ;;  %v12155_v19 = vld [vmem:[%s13854_s30 + $0x434] ss:$24 sps:$4 sm:$0xff]  }
 0x1b3   : > { %6244 = vmatprep.subr.bf16.mxu1 %v12071_v21  ;;  %v12158_v20 = vld [vmem:[%s13860_s16 + $0x254] ss:$48 sps:$4 sm:$0xff]   ;;  %v12153_v21 = vld [vmem:[%s13854_s30 + $0x430] ss:$24 sps:$4 sm:$0xff]  }
 0x1b5   : > { %2550 = vmatpush1.bf16.msra.mxu0 %v12066_v23  ;;  %v12156_v23 = vld [vmem:[%s13860_s16 + $0x250] ss:$48 sps:$4 sm:$0xff]  }
 0x1b6   : > { %6245 = vmatpush1.bf16.msra.mxu1 %v12069_v24  ;;  %2551 = vmatprep.subr.bf16.mxu0 %v12074_v25 }
 0x1b7   : > { %6246 = vmatprep.subr.bf16.mxu1 %v12077_v26 }
 0x1b9   : > { %2552 = vmatpush1.bf16.msra.mxu0 %v12072_v27  ;;  %v12161_v27 = vld [vmem:[%s13854_s30 + $0x464] ss:$24 sps:$4 sm:$0xff]  }
 0x1ba   : > { %6247 = vmatpush1.bf16.msra.mxu1 %v12075_v29  ;;  %2553 = vmatprep.subr.bf16.mxu0 %v12080_v30  ;;  %v12164_v29 = vld [vmem:[%s13860_s16 + $0x2b4] ss:$48 sps:$4 sm:$0xff]  }
 0x1bb   : > { %6248 = vmatprep.subr.bf16.mxu1 %v12083_v31  ;;  %v12159_v31 = vld [vmem:[%s13854_s30 + $0x460] ss:$24 sps:$4 sm:$0xff]  }
 0x1bd   : > { %2554 = vmatpush1.bf16.msra.mxu0 %v12078_v32  ;;  %v12162_v32 = vld [vmem:[%s13860_s16 + $0x2b0] ss:$48 sps:$4 sm:$0xff]  }
 0x1be   : > { %6249 = vmatpush1.bf16.msra.mxu1 %v12081_v33  ;;  %2555 = vmatprep.subr.bf16.mxu0 %v12086_v10  ;;  %v12167_v33 = vld [vmem:[%s13854_s30 + $0x494] ss:$24 sps:$4 sm:$0xff]  }
 0x1bf   : > { %6250 = vmatprep.subr.bf16.mxu1 %v12089_v34  ;;  %v12170_v10 = vld [vmem:[%s13860_s16 + $0x314] ss:$48 sps:$4 sm:$0xff]   ;;  %v12165_v34 = vld [vmem:[%s13854_s30 + $0x490] ss:$24 sps:$4 sm:$0xff]  }
 0x1c1   : > { %2556 = vmatpush1.bf16.msra.mxu0 %v12084_v35  ;;  %v12168_v35 = vld [vmem:[%s13860_s16 + $0x310] ss:$48 sps:$4 sm:$0xff]  }
 0x1c2   : > { %6251 = vmatpush1.bf16.msra.mxu1 %v12087_v36  ;;  %2557 = vmatprep.subr.bf16.mxu0 %v12092_v37  ;;  %v12173_v36 = vld [vmem:[%s13854_s30 + $0x4c4] ss:$24 sps:$4 sm:$0xff]  }
 0x1c3   : > { %6252 = vmatprep.subr.bf16.mxu1 %v12095_v38  ;;  %v12176_v37 = vld [vmem:[%s13860_s16 + $0x374] ss:$48 sps:$4 sm:$0xff]   ;;  %v12171_v38 = vld [vmem:[%s13854_s30 + $0x4c0] ss:$24 sps:$4 sm:$0xff]  }
 0x1c5   : > { %2558 = vmatpush1.bf16.msra.mxu0 %v12090_v39  ;;  %v12174_v39 = vld [vmem:[%s13860_s16 + $0x370] ss:$48 sps:$4 sm:$0xff]  }
 0x1c6   : > { %6253 = vmatpush1.bf16.msra.mxu1 %v12093_v40  ;;  %2559 = vmatprep.subr.bf16.mxu0 %v12098_v41  ;;  %v12179_v40 = vld [vmem:[%s13854_s30 + $0x4f4] ss:$24 sps:$4 sm:$0xff]  }
 0x1c7   : > { %6254 = vmatprep.subr.bf16.mxu1 %v12101_v42  ;;  %v12182_v41 = vld [vmem:[%s13860_s16 + $0x3d4] ss:$48 sps:$4 sm:$0xff]   ;;  %v12177_v42 = vld [vmem:[%s13854_s30 + $0x4f0] ss:$24 sps:$4 sm:$0xff]  }
 0x1c9   : > { %2560 = vmatpush1.bf16.msra.mxu0 %v12096_v44  ;;  %v12180_v44 = vld [vmem:[%s13860_s16 + $0x3d0] ss:$48 sps:$4 sm:$0xff]  }
 0x1ca   : > { %6255 = vmatpush1.bf16.msra.mxu1 %v12099_v45  ;;  %2561 = vmatprep.subr.bf16.mxu0 %v12104_v46  ;;  %v12185_v45 = vld [vmem:[%s13854_s30 + $0x524] ss:$24 sps:$4 sm:$0xff]  }
 0x1cb   : > { %6256 = vmatprep.subr.bf16.mxu1 %v12107_v47  ;;  %v12188_v46 = vld [vmem:[%s13860_s16 + $0x434] ss:$48 sps:$4 sm:$0xff]   ;;  %v12183_v47 = vld [vmem:[%s13854_s30 + $0x520] ss:$24 sps:$4 sm:$0xff]  }
 0x1cd   : > { %2562 = vmatpush1.bf16.msra.mxu0 %v12102_v48  ;;  %v12186_v48 = vld [vmem:[%s13860_s16 + $0x430] ss:$48 sps:$4 sm:$0xff]  }
 0x1ce   : > { %6257 = vmatpush1.bf16.msra.mxu1 %v12105_v50  ;;  %2563 = vmatprep.subr.bf16.mxu0 %v12110_v51  ;;  %v12191_v50 = vld [vmem:[%s13854_s30 + $0x554] ss:$24 sps:$4 sm:$0xff]  }
 0x1cf   : > { %6258 = vmatprep.subr.bf16.mxu1 %v12113_v52  ;;  %v12194_v51 = vld [vmem:[%s13860_s16 + $0x494] ss:$48 sps:$4 sm:$0xff]   ;;  %v12189_v52 = vld [vmem:[%s13854_s30 + $0x550] ss:$24 sps:$4 sm:$0xff]  }
 0x1d1   : > { %2564 = vmatpush1.bf16.msra.mxu0 %v12108_v53  ;;  %v12192_v53 = vld [vmem:[%s13860_s16 + $0x490] ss:$48 sps:$4 sm:$0xff]  }
 0x1d2   : > { %6259 = vmatpush1.bf16.msra.mxu1 %v12111_v54  ;;  %2574 = vmatprep.subr.bf16.mxu0 %v12118_v55  ;;  %v12197_v54 = vld [vmem:[%s13854_s30 + $0x584] ss:$24 sps:$4 sm:$0xff]  }
 0x1d3   : > { %6400 = vmatprep.subr.bf16.mxu1 %v12122_v57  ;;  %v12200_v55 = vld [vmem:[%s13860_s16 + $0x4f4] ss:$48 sps:$4 sm:$0xff]   ;;  %v12198_v57 = vld [vmem:[%s13860_s16 + $0x4f0] ss:$48 sps:$4 sm:$0xff]  }
 0x1d4   : > { %2566 = vmatmul.mubr.bf16.vlgmr.msra.gmra.mrb[8].mxu0 %v13958_v12  ;;  %v12129_v12 = vld [vmem:[%s13854_s30 + $0x370] ss:$24 sps:$4 sm:$0xff]  }
 0x1d5   : > { %6261 = vmatmul.mubr.bf16.vlgmr.msra.gmra.mrb[4].mxu1 %v12119_v56  ;;  %2575 = vmatpush1.bf16.msra.mxu0 %v12116_v58  ;;  %v12195_v56 = vld [vmem:[%s13854_s30 + $0x580] ss:$24 sps:$4 sm:$0xff]   ;;  %v12203_v58 = vld [vmem:[%s13854_s30 + $0x5b4] ss:$24 sps:$4 sm:$0xff]  }
 0x1d6   : > { %6401 = vmatpush1.bf16.msra.mxu1 %v12120_v59  ;;  %2576 = vmatprep.subr.bf16.mxu0 %v12125_v61  ;;  %v12206_v59 = vld [vmem:[%s13860_s16 + $0x554] ss:$48 sps:$4 sm:$0xff]   ;;  %v12201_v61 = vld [vmem:[%s13854_s30 + $0x5b0] ss:$24 sps:$4 sm:$0xff]  }
 0x1d7   : > { %6402 = vmatprep.subr.bf16.mxu1 %v12128_v62  ;;  %2606 = vmatprep.mubr.bf16.mxu0 %v13941_v0  ;;  %v12135_v0 = vld [vmem:[%s13854_s30 + $0x3a0] ss:$24 sps:$4 sm:$0xff]  }
 0x1d8   : > { %6432 = vmatprep.mubr.bf16.mxu1 %v13421_v3  ;;  %v12204_v62 = vld [vmem:[%s13860_s16 + $0x550] ss:$48 sps:$4 sm:$0xff]   ;;  %v12215_v3 = vld [vmem:[%s13854_s30 + $0x614] ss:$24 sps:$4 sm:$0xff]  }
 0x1d9   : > { %2577 = vmatpush1.bf16.msra.mxu0 %v12123_v63  ;;  %v12209_v63 = vld [vmem:[%s13854_s30 + $0x5e4] ss:$24 sps:$4 sm:$0xff]  }
 0x1da   : > { %6403 = vmatpush1.bf16.msra.mxu1 %v12126_v1  ;;  %2578 = vmatprep.subr.bf16.mxu0 %v12131_v60  ;;  %v12212_v1 = vld [vmem:[%s13860_s16 + $0x5b4] ss:$48 sps:$4 sm:$0xff]   ;;  %v12207_v60 = vld [vmem:[%s13854_s30 + $0x5e0] ss:$24 sps:$4 sm:$0xff]  }
 0x1db   : > { %6404 = vmatprep.subr.bf16.mxu1 %v12134_v2  ;;  %v12210_v2 = vld [vmem:[%s13860_s16 + $0x5b0] ss:$48 sps:$4 sm:$0xff]  }
 0x1dd   : > { %2579 = vmatpush1.bf16.msra.mxu0 %v12129_v12  ;;  %v12218_v12 = vld [vmem:[%s13860_s16 + $0x614] ss:$48 sps:$4 sm:$0xff]  }
 0x1de   : > { %6405 = vmatpush1.bf16.msra.mxu1 %v12132_v4  ;;  %2580 = vmatprep.subr.bf16.mxu0 %v12137_v5  ;;  %v12213_v4 = vld [vmem:[%s13854_s30 + $0x610] ss:$24 sps:$4 sm:$0xff]  }
 0x1df   : > { %6406 = vmatprep.subr.bf16.mxu1 %v12140_v6  ;;  %v12216_v5 = vld [vmem:[%s13860_s16 + $0x610] ss:$48 sps:$4 sm:$0xff]   ;;  %v12221_v6 = vld [vmem:[%s13854_s30 + $0x644] ss:$24 sps:$4 sm:$0xff]  }
 0x1e1   : > { %2581 = vmatpush1.bf16.msra.mxu0 %v12135_v0  ;;  %v12224_v0 = vld [vmem:[%s13860_s16 + $0x674] ss:$48 sps:$4 sm:$0xff]  }
 0x1e2   : > { %6407 = vmatpush1.bf16.msra.mxu1 %v12138_v7  ;;  %2582 = vmatprep.subr.bf16.mxu0 %v12143_v8  ;;  %v13422_v7 = vld [vmem:[%s14044_s27] ss:$24 sps:$4 sm:$0xff]  }
 0x1e3   : > { %6408 = vmatprep.subr.bf16.mxu1 %v12146_v9  ;;  %v12219_v8 = vld [vmem:[%s13854_s30 + $0x640] ss:$24 sps:$4 sm:$0xff]  }
 0x1e4   : > { %v12222_v9 = vld [vmem:[%s13860_s16 + $0x670] ss:$48 sps:$4 sm:$0xff]  }
 0x1e5   : > { %2583 = vmatpush1.bf16.msra.mxu0 %v12141_v11  ;;  %v12227_v11 = vld [vmem:[%s13854_s30 + $0x674] ss:$24 sps:$4 sm:$0xff]  }
 0x1e6   : > { %6409 = vmatpush1.bf16.msra.mxu1 %v12144_v13  ;;  %2584 = vmatprep.subr.bf16.mxu0 %v12149_v14  ;;  %v12230_v13 = vld [vmem:[%s13860_s16 + $0x6d4] ss:$48 sps:$4 sm:$0xff]  }
 0x1e7   : > { %6410 = vmatprep.subr.bf16.mxu1 %v12152_v15  ;;  %v13423_v14 = vld [vmem:[%s14044_s27 + $0xc] ss:$24 sps:$4 sm:$0xff]   ;;  %v12228_v15 = vld [vmem:[%s13860_s16 + $0x6d0] ss:$48 sps:$4 sm:$0xff]  }
 0x1e8   : > { %v14284_v24 = vpop.f32.mrb[0].mxu1 }
 0x1e9   : > { %v14286_v25 = vpop.f32.mrb[1].mxu1  ;;  %2585 = vmatpush1.bf16.msra.mxu0 %v12147_v16  ;;  %v12233_v16 = vld [vmem:[%s13854_s30 + $0x6a4] ss:$24 sps:$4 sm:$0xff]  }
 0x1ea   : > { %6411 = vmatpush1.bf16.msra.mxu1 %v12150_v17  ;;  %v2530_v26 = vpop.f32.mrb[2].mxu1  ;;  %2586 = vmatprep.subr.bf16.mxu0 %v12155_v19  ;;  %v12236_v17 = vld [vmem:[%s13860_s16 + $0x734] ss:$48 sps:$4 sm:$0xff]   ;;  %v12234_v19 = vld [vmem:[%s13860_s16 + $0x730] ss:$48 sps:$4 sm:$0xff]  }
 0x1eb   : > { %6412 = vmatprep.subr.bf16.mxu1 %v12158_v20  ;;  %v2531_v30 = vpop.f32.mrb[3].mxu1  ;;  %v12239_v20 = vld [vmem:[%s13854_s30 + $0x6d4] ss:$24 sps:$4 sm:$0xff]   ;;  %v12240_v26 = vld [vmem:[%s13860_s16 + $0x790] ss:$48 sps:$4 sm:$0xff]  }
 0x1ec   : > { %v12243_v30 = vld [vmem:[%s13854_s30 + $0x700] ss:$24 sps:$4 sm:$0xff]  }
 0x1ed   : > { %2587 = vmatpush1.bf16.msra.mxu0 %v12153_v21  ;;  %v12242_v21 = vld [vmem:[%s13860_s16 + $0x794] ss:$48 sps:$4 sm:$0xff]  }
 0x1ee   : > { %6413 = vmatpush1.bf16.msra.mxu1 %v12156_v23  ;;  %2588 = vmatprep.subr.bf16.mxu0 %v12161_v27  ;;  %v12237_v23 = vld [vmem:[%s13854_s30 + $0x6d0] ss:$24 sps:$4 sm:$0xff]   ;;  %v12245_v27 = vld [vmem:[%s13854_s30 + $0x704] ss:$24 sps:$4 sm:$0xff]  }
 0x1ef   : > { %6414 = vmatprep.subr.bf16.mxu1 %v12164_v29  ;;  %v12248_v29 = vld [vmem:[%s13860_s16 + $0x7f4] ss:$48 sps:$4 sm:$0xff]  }
 0x1f1   : > { %2589 = vmatpush1.bf16.msra.mxu0 %v12159_v31  ;;  %v12246_v31 = vld [vmem:[%s13860_s16 + $0x7f0] ss:$48 sps:$4 sm:$0xff]  }
 0x1f2   : > { %6415 = vmatpush1.bf16.msra.mxu1 %v12162_v32  ;;  %2590 = vmatprep.subr.bf16.mxu0 %v12167_v33  ;;  %v12251_v32 = vld [vmem:[%s13854_s30 + $0x734] ss:$24 sps:$4 sm:$0xff]  }
 0x1f3   : > { %6416 = vmatprep.subr.bf16.mxu1 %v12170_v10  ;;  %v12254_v33 = vld [vmem:[%s13860_s16 + $0x854] ss:$48 sps:$4 sm:$0xff]  }
 0x1f5   : > { %2591 = vmatpush1.bf16.msra.mxu0 %v12165_v34  ;;  %v12249_v34 = vld [vmem:[%s13854_s30 + $0x730] ss:$24 sps:$4 sm:$0xff]  }
 0x1f6   : > { %6417 = vmatpush1.bf16.msra.mxu1 %v12168_v35  ;;  %2592 = vmatprep.subr.bf16.mxu0 %v12173_v36  ;;  %v12252_v35 = vld [vmem:[%s13860_s16 + $0x850] ss:$48 sps:$4 sm:$0xff]  }
 0x1f7   : > { %6418 = vmatprep.subr.bf16.mxu1 %v12176_v37 }
 0x1f9   : > { %2593 = vmatpush1.bf16.msra.mxu0 %v12171_v38 }
 0x1fa   : > { %6419 = vmatpush1.bf16.msra.mxu1 %v12174_v39  ;;  %2594 = vmatprep.subr.bf16.mxu0 %v12179_v40  ;;  %v12257_v40 = vld [vmem:[%s13854_s30 + $0x764] ss:$24 sps:$4 sm:$0xff]  }
 0x1fb   : > { %6420 = vmatprep.subr.bf16.mxu1 %v12182_v41  ;;  %v12260_v41 = vld [vmem:[%s13860_s16 + $0x8b4] ss:$48 sps:$4 sm:$0xff]  }
 0x1fd   : > { %2595 = vmatpush1.bf16.msra.mxu0 %v12177_v42  ;;  %v12255_v42 = vld [vmem:[%s13854_s30 + $0x760] ss:$24 sps:$4 sm:$0xff]  }
 0x1fe   : > { %6421 = vmatpush1.bf16.msra.mxu1 %v12180_v44  ;;  %2596 = vmatprep.subr.bf16.mxu0 %v12185_v45  ;;  %v12258_v44 = vld [vmem:[%s13860_s16 + $0x8b0] ss:$48 sps:$4 sm:$0xff]   ;;  %v12263_v45 = vld [vmem:[%s13854_s30 + $0x794] ss:$24 sps:$4 sm:$0xff]  }
 0x1ff   : > { %6422 = vmatprep.subr.bf16.mxu1 %v12188_v46  ;;  %v12266_v46 = vld [vmem:[%s13860_s16 + $0x914] ss:$48 sps:$4 sm:$0xff]  }
 0x201   : > { %2597 = vmatpush1.bf16.msra.mxu0 %v12183_v47  ;;  %v12261_v47 = vld [vmem:[%s13854_s30 + $0x790] ss:$24 sps:$4 sm:$0xff]  }
 0x202   : > { %6423 = vmatpush1.bf16.msra.mxu1 %v12186_v48  ;;  %2598 = vmatprep.subr.bf16.mxu0 %v12191_v50  ;;  %v12264_v48 = vld [vmem:[%s13860_s16 + $0x910] ss:$48 sps:$4 sm:$0xff]   ;;  %v12269_v50 = vld [vmem:[%s13854_s30 + $0x7c4] ss:$24 sps:$4 sm:$0xff]  }
 0x203   : > { %6424 = vmatprep.subr.bf16.mxu1 %v12194_v51  ;;  %v12272_v51 = vld [vmem:[%s13860_s16 + $0x974] ss:$48 sps:$4 sm:$0xff]  }
 0x205   : > { %2599 = vmatpush1.bf16.msra.mxu0 %v12189_v52  ;;  %v12267_v52 = vld [vmem:[%s13854_s30 + $0x7c0] ss:$24 sps:$4 sm:$0xff]  }
 0x206   : > { %6425 = vmatpush1.bf16.msra.mxu1 %v12192_v53  ;;  %2600 = vmatprep.subr.bf16.mxu0 %v12197_v54  ;;  %v12270_v53 = vld [vmem:[%s13860_s16 + $0x970] ss:$48 sps:$4 sm:$0xff]   ;;  %v12275_v54 = vld [vmem:[%s13854_s30 + $0x7f4] ss:$24 sps:$4 sm:$0xff]  }
 0x207   : > { %6426 = vmatprep.subr.bf16.mxu1 %v12200_v55  ;;  %v12278_v55 = vld [vmem:[%s13860_s16 + $0x9d4] ss:$48 sps:$4 sm:$0xff]  }
 0x209   : > { %2601 = vmatpush1.bf16.msra.mxu0 %v12195_v56  ;;  %v12273_v56 = vld [vmem:[%s13854_s30 + $0x7f0] ss:$24 sps:$4 sm:$0xff]  }
 0x20a   : > { %6427 = vmatpush1.bf16.msra.mxu1 %v12198_v57  ;;  %2602 = vmatprep.subr.bf16.mxu0 %v12203_v58  ;;  %v12276_v57 = vld [vmem:[%s13860_s16 + $0x9d0] ss:$48 sps:$4 sm:$0xff]   ;;  %v12281_v58 = vld [vmem:[%s13854_s30 + $0x824] ss:$24 sps:$4 sm:$0xff]  }
 0x20b   : > { %6428 = vmatprep.subr.bf16.mxu1 %v12206_v59  ;;  %v12284_v59 = vld [vmem:[%s13860_s16 + $0xa34] ss:$48 sps:$4 sm:$0xff]  }
 0x20d   : > { %2603 = vmatpush1.bf16.msra.mxu0 %v12201_v61  ;;  %v12279_v61 = vld [vmem:[%s13854_s30 + $0x820] ss:$24 sps:$4 sm:$0xff]  }
 0x20e   : > { %6429 = vmatpush1.bf16.msra.mxu1 %v12204_v62  ;;  %2604 = vmatprep.subr.bf16.mxu0 %v12209_v63  ;;  %v12282_v62 = vld [vmem:[%s13860_s16 + $0xa30] ss:$48 sps:$4 sm:$0xff]   ;;  %v12287_v63 = vld [vmem:[%s13854_s30 + $0x854] ss:$24 sps:$4 sm:$0xff]  }
 0x20f   : > { %6430 = vmatprep.subr.bf16.mxu1 %v12212_v1  ;;  %v12290_v1 = vld [vmem:[%s13860_s16 + $0xa94] ss:$48 sps:$4 sm:$0xff]  }
 0x211   : > { %2605 = vmatpush1.bf16.msra.mxu0 %v12207_v60  ;;  %v12285_v60 = vld [vmem:[%s13854_s30 + $0x850] ss:$24 sps:$4 sm:$0xff]  }
 0x212   : > { %6431 = vmatpush1.bf16.msra.mxu1 %v12210_v2  ;;  %2615 = vmatprep.subr.bf16.mxu0 %v12215_v3  ;;  %v12288_v2 = vld [vmem:[%s13860_s16 + $0xa90] ss:$48 sps:$4 sm:$0xff]   ;;  %v12293_v3 = vld [vmem:[%s13854_s30 + $0x884] ss:$24 sps:$4 sm:$0xff]  }
 0x213   : > { %6443 = vmatprep.subr.bf16.mxu1 %v12218_v12  ;;  %v12296_v12 = vld [vmem:[%s13860_s16 + $0xaf4] ss:$48 sps:$4 sm:$0xff]  }
 0x214   : > { %2607 = vmatmul.mubr.bf16.vlgmr.msra.gmra.mrb[8].mxu0 %v13968_v18  ;;  %v12225_v18 = vld [vmem:[%s13854_s30 + $0x670] ss:$24 sps:$4 sm:$0xff]  }
 0x215   : > { %6433 = vmatmul.mubr.bf16.vlgmr.msra.gmra.mrb[8].mxu1 %v13422_v7  ;;  %2616 = vmatpush1.bf16.msra.mxu0 %v12213_v4  ;;  %v12291_v4 = vld [vmem:[%s13854_s30 + $0x880] ss:$24 sps:$4 sm:$0xff]   ;;  %v12297_v7 = vld [vmem:[%s13854_s30 + $0x8b0] ss:$24 sps:$4 sm:$0xff]  }
 0x216   : > { %6444 = vmatpush1.bf16.msra.mxu1 %v12216_v5  ;;  %2617 = vmatprep.subr.bf16.mxu0 %v12221_v6  ;;  %v12294_v5 = vld [vmem:[%s13860_s16 + $0xaf0] ss:$48 sps:$4 sm:$0xff]   ;;  %v12299_v6 = vld [vmem:[%s13854_s30 + $0x8b4] ss:$24 sps:$4 sm:$0xff]  }
 0x217   : > { %6445 = vmatprep.subr.bf16.mxu1 %v12224_v0  ;;  %2647 = vmatprep.mubr.bf16.mxu0 %v13974_v22  ;;  %v12231_v22 = vld [vmem:[%s13854_s30 + $0x6a0] ss:$24 sps:$4 sm:$0xff]   ;;  %v12302_v0 = vld [vmem:[%s13860_s16 + $0xb54] ss:$48 sps:$4 sm:$0xff]  }
 0x218   : > { %6475 = vmatprep.mubr.bf16.mxu1 %v13423_v14  ;;  %v12306_v14 = vld [vmem:[%s13860_s16 + $0xbb0] ss:$48 sps:$4 sm:$0xff]  }
 0x219   : > { %2618 = vmatpush1.bf16.msra.mxu0 %v12219_v8  ;;  %v12300_v8 = vld [vmem:[%s13860_s16 + $0xb50] ss:$48 sps:$4 sm:$0xff]  }
 0x21a   : > { %6446 = vmatpush1.bf16.msra.mxu1 %v12222_v9  ;;  %2619 = vmatprep.subr.bf16.mxu0 %v12227_v11  ;;  %v12305_v9 = vld [vmem:[%s13854_s30 + $0x8e4] ss:$24 sps:$4 sm:$0xff]  }
 0x21b   : > { %6447 = vmatprep.subr.bf16.mxu1 %v12230_v13  ;;  %v12308_v11 = vld [vmem:[%s13860_s16 + $0xbb4] ss:$48 sps:$4 sm:$0xff]   ;;  %v12303_v13 = vld [vmem:[%s13854_s30 + $0x8e0] ss:$24 sps:$4 sm:$0xff]  }
 0x21d   : > { %2620 = vmatpush1.bf16.msra.mxu0 %v12225_v18  ;;  %v12311_v18 = vld [vmem:[%s13860_s16 + $0xc] ss:$48 sps:$4 sm:$0xff]  }
 0x21e   : > { %6448 = vmatpush1.bf16.msra.mxu1 %v12228_v15  ;;  %2621 = vmatprep.subr.bf16.mxu0 %v12233_v16  ;;  %v12314_v15 = vld [vmem:[%s13860_s16 + $0xc14] ss:$48 sps:$4 sm:$0xff]   ;;  %v12309_v16 = vld [vmem:[%s13860_s16 + $0x8] ss:$48 sps:$4 sm:$0xff]  }
 0x21f   : > { %6449 = vmatprep.subr.bf16.mxu1 %v12236_v17  ;;  %v12312_v17 = vld [vmem:[%s13860_s16 + $0xc10] ss:$48 sps:$4 sm:$0xff]  }
 0x221   : > { %2622 = vmatpush1.bf16.msra.mxu0 %v12231_v22  ;;  %v12317_v22 = vld [vmem:[%s13860_s16 + $0x6c] ss:$48 sps:$4 sm:$0xff]  }
 0x222   : > { %6450 = vmatpush1.bf16.msra.mxu1 %v12234_v19  ;;  %2623 = vmatprep.subr.bf16.mxu0 %v12239_v20  ;;  %v12320_v19 = vld [vmem:[%s13860_s16 + $0xc74] ss:$48 sps:$4 sm:$0xff]   ;;  %v13424_v20 = vld [vmem:[%s14044_s27 + $0x8] ss:$24 sps:$4 sm:$0xff]  }
 0x223   : > { %6451 = vmatprep.subr.bf16.mxu1 %v12242_v21  ;;  %v12315_v21 = vld [vmem:[%s13860_s16 + $0x68] ss:$48 sps:$4 sm:$0xff]  }
 0x225   : > { %2624 = vmatpush1.bf16.msra.mxu0 %v12237_v23  ;;  %v12318_v23 = vld [vmem:[%s13860_s16 + $0xc70] ss:$48 sps:$4 sm:$0xff]  }
 0x226   : > { %6452 = vmatpush1.bf16.msra.mxu1 %v12240_v26  ;;  %2625 = vmatprep.subr.bf16.mxu0 %v12245_v27  ;;  %v12323_v26 = vld [vmem:[%s13860_s16 + $0xcc] ss:$48 sps:$4 sm:$0xff]   ;;  %v12326_v27 = vld [vmem:[%s13860_s16 + $0xcd4] ss:$48 sps:$4 sm:$0xff]  }
 0x227   : > { %6453 = vmatprep.subr.bf16.mxu1 %v12248_v29  ;;  %v14354_v10 = vpop.f32.mrb[0].mxu0  ;;  %v13425_v29 = vld [vmem:[%s14044_s27 + $0x14] ss:$24 sps:$4 sm:$0xff]  }
 0x228   : > { %v14358_v36 = vpop.f32.mrb[1].mxu0 }
 0x229   : > { %v6922_v37 = vcombine.low %v14354_v10, %v14358_v36  ;;  %v2407_v38 = vpop.f32.mrb[2].mxu0  ;;  %2626 = vmatpush1.bf16.msra.mxu0 %v12243_v30  ;;  %v14412_v30 = vld [vmem:[%s14044_s27 + $0x4] ss:$24 sps:$4 sm:$0xff]  }
 0x22a   : > { %6454 = vmatpush1.bf16.msra.mxu1 %v12246_v31  ;;  %v2408_v39 = vpop.f32.mrb[3].mxu0  ;;  %2627 = vmatprep.subr.bf16.mxu0 %v12251_v32  ;;  %v12324_v31 = vld [vmem:[%s13860_s16 + $0xcd0] ss:$48 sps:$4 sm:$0xff]   ;;  %v12329_v32 = vld [vmem:[%s13860_s16 + $0x12c] ss:$48 sps:$4 sm:$0xff]  }
 0x22b   : > { %6455 = vmatprep.subr.bf16.mxu1 %v12254_v33  ;;  %v12332_v33 = vld [vmem:[%s13860_s16 + $0xd34] ss:$48 sps:$4 sm:$0xff]   ;;  %v12335_v38 = vld [vmem:[%s13860_s16 + $0x18c] ss:$48 sps:$4 sm:$0xff]  }
 0x22c   : > { %v12338_v39 = vld [vmem:[%s13860_s16 + $0xd94] ss:$48 sps:$4 sm:$0xff]  }
 0x22d   : > { %2628 = vmatpush1.bf16.msra.mxu0 %v12249_v34  ;;  %v12327_v34 = vld [vmem:[%s13860_s16 + $0x128] ss:$48 sps:$4 sm:$0xff]  }
 0x22e   : > { %6456 = vmatpush1.bf16.msra.mxu1 %v12252_v35  ;;  %2629 = vmatprep.subr.bf16.mxu0 %v12257_v40  ;;  %v12330_v35 = vld [vmem:[%s13860_s16 + $0xd30] ss:$48 sps:$4 sm:$0xff]   ;;  %v12333_v40 = vld [vmem:[%s13860_s16 + $0x188] ss:$48 sps:$4 sm:$0xff]  }
 0x22f   : > { %6457 = vmatprep.subr.bf16.mxu1 %v12260_v41  ;;  %v12336_v41 = vld [vmem:[%s13860_s16 + $0xd90] ss:$48 sps:$4 sm:$0xff]  }
 0x231   : > { %2630 = vmatpush1.bf16.msra.mxu0 %v12255_v42  ;;  %v12341_v42 = vld [vmem:[%s13860_s16 + $0x1ec] ss:$48 sps:$4 sm:$0xff]  }
 0x232   : > { %6458 = vmatpush1.bf16.msra.mxu1 %v12258_v44  ;;  %2631 = vmatprep.subr.bf16.mxu0 %v12263_v45  ;;  %v12344_v44 = vld [vmem:[%s13860_s16 + $0xdf4] ss:$48 sps:$4 sm:$0xff]   ;;  %v12339_v45 = vld [vmem:[%s13860_s16 + $0x1e8] ss:$48 sps:$4 sm:$0xff]  }
 0x233   : > { %6459 = vmatprep.subr.bf16.mxu1 %v12266_v46  ;;  %v12342_v46 = vld [vmem:[%s13860_s16 + $0xdf0] ss:$48 sps:$4 sm:$0xff]  }
 0x235   : > { %2632 = vmatpush1.bf16.msra.mxu0 %v12261_v47  ;;  %v12347_v47 = vld [vmem:[%s13860_s16 + $0x24c] ss:$48 sps:$4 sm:$0xff]  }
 0x236   : > { %6460 = vmatpush1.bf16.msra.mxu1 %v12264_v48  ;;  %2633 = vmatprep.subr.bf16.mxu0 %v12269_v50  ;;  %v12350_v48 = vld [vmem:[%s13860_s16 + $0xe54] ss:$48 sps:$4 sm:$0xff]  }
 0x237   : > { %6461 = vmatprep.subr.bf16.mxu1 %v12272_v51 }
 0x239   : > { %2634 = vmatpush1.bf16.msra.mxu0 %v12267_v52 }
 0x23a   : > { %6462 = vmatpush1.bf16.msra.mxu1 %v12270_v53  ;;  %2635 = vmatprep.subr.bf16.mxu0 %v12275_v54 }
 0x23b   : > { %6463 = vmatprep.subr.bf16.mxu1 %v12278_v55  ;;  %v12345_v55 = vld [vmem:[%s13860_s16 + $0x248] ss:$48 sps:$4 sm:$0xff]  }
 0x23d   : > { %2636 = vmatpush1.bf16.msra.mxu0 %v12273_v56  ;;  %v12348_v56 = vld [vmem:[%s13860_s16 + $0xe50] ss:$48 sps:$4 sm:$0xff]  }
 0x23e   : > { %6464 = vmatpush1.bf16.msra.mxu1 %v12276_v57  ;;  %2637 = vmatprep.subr.bf16.mxu0 %v12281_v58  ;;  %v12353_v58 = vld [vmem:[%s13860_s16 + $0x2ac] ss:$48 sps:$4 sm:$0xff]  }
 0x23f   : > { %6465 = vmatprep.subr.bf16.mxu1 %v12284_v59  ;;  %v12356_v59 = vld [vmem:[%s13860_s16 + $0xeb4] ss:$48 sps:$4 sm:$0xff]  }
 0x241   : > { %2638 = vmatpush1.bf16.msra.mxu0 %v12279_v61 }
 0x242   : > { %6466 = vmatpush1.bf16.msra.mxu1 %v12282_v62  ;;  %2639 = vmatprep.subr.bf16.mxu0 %v12287_v63  ;;  %v12351_v62 = vld [vmem:[%s13860_s16 + $0x2a8] ss:$48 sps:$4 sm:$0xff]   ;;  %v12354_v63 = vld [vmem:[%s13860_s16 + $0xeb0] ss:$48 sps:$4 sm:$0xff]  }
 0x243   : > { %6467 = vmatprep.subr.bf16.mxu1 %v12290_v1  ;;  %v12359_v1 = vld [vmem:[%s13860_s16 + $0x30c] ss:$48 sps:$4 sm:$0xff]  }
 0x245   : > { %2640 = vmatpush1.bf16.msra.mxu0 %v12285_v60  ;;  %v12362_v60 = vld [vmem:[%s13860_s16 + $0xf14] ss:$48 sps:$4 sm:$0xff]  }
 0x246   : > { %6468 = vmatpush1.bf16.msra.mxu1 %v12288_v2  ;;  %2641 = vmatprep.subr.bf16.mxu0 %v12293_v3  ;;  %v12360_v2 = vld [vmem:[%s13860_s16 + $0xf10] ss:$48 sps:$4 sm:$0xff]   ;;  %v12365_v3 = vld [vmem:[%s13860_s16 + $0x36c] ss:$48 sps:$4 sm:$0xff]  }
 0x247   : > { %6469 = vmatprep.subr.bf16.mxu1 %v12296_v12  ;;  %v12368_v12 = vld [vmem:[%s13860_s16 + $0xf74] ss:$48 sps:$4 sm:$0xff]  }
 0x249   : > { %2642 = vmatpush1.bf16.msra.mxu0 %v12291_v4  ;;  %v12363_v4 = vld [vmem:[%s13860_s16 + $0x368] ss:$48 sps:$4 sm:$0xff]  }
 0x24a   : > { %6470 = vmatpush1.bf16.msra.mxu1 %v12294_v5  ;;  %2643 = vmatprep.subr.bf16.mxu0 %v12299_v6  ;;  %v12366_v5 = vld [vmem:[%s13860_s16 + $0xf70] ss:$48 sps:$4 sm:$0xff]   ;;  %v12371_v6 = vld [vmem:[%s13860_s16 + $0x3cc] ss:$48 sps:$4 sm:$0xff]  }
 0x24b   : > { %6471 = vmatprep.subr.bf16.mxu1 %v12302_v0  ;;  %v12374_v0 = vld [vmem:[%s13860_s16 + $0xfd4] ss:$48 sps:$4 sm:$0xff]  }
 0x24d   : > { %2644 = vmatpush1.bf16.msra.mxu0 %v12297_v7  ;;  %v12369_v7 = vld [vmem:[%s13860_s16 + $0x3c8] ss:$48 sps:$4 sm:$0xff]  }
 0x24e   : > { %6472 = vmatpush1.bf16.msra.mxu1 %v12300_v8  ;;  %2645 = vmatprep.subr.bf16.mxu0 %v12305_v9  ;;  %v12372_v8 = vld [vmem:[%s13860_s16 + $0xfd0] ss:$48 sps:$4 sm:$0xff]   ;;  %v12377_v9 = vld [vmem:[%s13860_s16 + $0x42c] ss:$48 sps:$4 sm:$0xff]  }
 0x24f   : > { %6473 = vmatprep.subr.bf16.mxu1 %v12308_v11  ;;  %v12380_v11 = vld [vmem:[%s13860_s16 + $0x1034] ss:$48 sps:$4 sm:$0xff]  }
 0x251   : > { %2646 = vmatpush1.bf16.msra.mxu0 %v12303_v13  ;;  %v12375_v13 = vld [vmem:[%s13860_s16 + $0x428] ss:$48 sps:$4 sm:$0xff]  }
 0x252   : > { %6474 = vmatpush1.bf16.msra.mxu1 %v12306_v14  ;;  %6271 = vmatprep.subr.bf16.mxu0 %v12311_v18  ;;  %v12378_v14 = vld [vmem:[%s13860_s16 + $0x1030] ss:$48 sps:$4 sm:$0xff]   ;;  %v12383_v18 = vld [vmem:[%s13860_s16 + $0x48c] ss:$48 sps:$4 sm:$0xff]  }
 0x253   : > { %6486 = vmatprep.subr.bf16.mxu1 %v12314_v15  ;;  %v12386_v15 = vld [vmem:[%s13860_s16 + $0x1094] ss:$48 sps:$4 sm:$0xff]  }
 0x254   : > { %2648 = vmatmul.mubr.bf16.vlgmr.msra.gmra.mrb[8].mxu0 %v14049_v28  ;;  %v12321_v28 = vld [vmem:[%s13860_s16 + $0xc8] ss:$48 sps:$4 sm:$0xff]  }
 0x255   : > { %6476 = vmatmul.mubr.bf16.vlgmr.msra.gmra.mrb[8].mxu1 %v13424_v20  ;;  %6272 = vmatpush1.bf16.msra.mxu0 %v12309_v16  ;;  %v12381_v16 = vld [vmem:[%s13860_s16 + $0x488] ss:$48 sps:$4 sm:$0xff]  }
 0x256   : > { %6487 = vmatpush1.bf16.msra.mxu1 %v12312_v17  ;;  %6273 = vmatprep.subr.bf16.mxu0 %v12317_v22  ;;  %v12384_v17 = vld [vmem:[%s13860_s16 + $0x1090] ss:$48 sps:$4 sm:$0xff]   ;;  %v12389_v22 = vld [vmem:[%s13860_s16 + $0x4ec] ss:$48 sps:$4 sm:$0xff]   ;;  %v12387_v20 = vld [vmem:[%s13860_s16 + $0x4e8] ss:$48 sps:$4 sm:$0xff]  }
 0x257   : > { %6488 = vmatprep.subr.bf16.mxu1 %v12320_v19  ;;  %6518 = vmatprep.mubr.bf16.mxu1 %v13425_v29  ;;  %v12392_v19 = vld [vmem:[%s13860_s16 + $0x10f4] ss:$48 sps:$4 sm:$0xff]   ;;  %v12396_v29 = vld [vmem:[%s13860_s16 + $0x1150] ss:$48 sps:$4 sm:$0xff]  }
 0x258   : > { %6303 = vmatprep.mubr.bf16.mxu0 %v14412_v30 }
 0x259   : > { %6274 = vmatpush1.bf16.msra.mxu0 %v12315_v21  ;;  %v12390_v21 = vld [vmem:[%s13860_s16 + $0x10f0] ss:$48 sps:$4 sm:$0xff]  }
 0x25a   : > { %6489 = vmatpush1.bf16.msra.mxu1 %v12318_v23  ;;  %6275 = vmatprep.subr.bf16.mxu0 %v12323_v26  ;;  %v12395_v23 = vld [vmem:[%s13860_s16 + $0x54c] ss:$48 sps:$4 sm:$0xff]   ;;  %v12398_v26 = vld [vmem:[%s13860_s16 + $0x1154] ss:$48 sps:$4 sm:$0xff]  }
 0x25b   : > { %6490 = vmatprep.subr.bf16.mxu1 %v12326_v27  ;;  %v12393_v27 = vld [vmem:[%s13860_s16 + $0x548] ss:$48 sps:$4 sm:$0xff]  }
 0x25d   : > { %6276 = vmatpush1.bf16.msra.mxu0 %v12321_v28  ;;  %v12401_v28 = vld [vmem:[%s13860_s16 + $0x5ac] ss:$48 sps:$4 sm:$0xff]  }
 0x25e   : > { %6491 = vmatpush1.bf16.msra.mxu1 %v12324_v31  ;;  %6277 = vmatprep.subr.bf16.mxu0 %v12329_v32  ;;  %v12404_v31 = vld [vmem:[%s13860_s16 + $0x11b4] ss:$48 sps:$4 sm:$0xff]   ;;  %v12399_v32 = vld [vmem:[%s13860_s16 + $0x5a8] ss:$48 sps:$4 sm:$0xff]  }
 0x25f   : > { %6492 = vmatprep.subr.bf16.mxu1 %v12332_v33  ;;  %v12402_v33 = vld [vmem:[%s13860_s16 + $0x11b0] ss:$48 sps:$4 sm:$0xff]  }
 0x261   : > { %6278 = vmatpush1.bf16.msra.mxu0 %v12327_v34  ;;  %v12407_v34 = vld [vmem:[%s13860_s16 + $0x60c] ss:$48 sps:$4 sm:$0xff]  }
 0x262   : > { %6493 = vmatpush1.bf16.msra.mxu1 %v12330_v35  ;;  %6279 = vmatprep.subr.bf16.mxu0 %v12335_v38  ;;  %v12410_v35 = vld [vmem:[%s13860_s16 + $0x24] ss:$48 sps:$4 sm:$0xff]   ;;  %v12405_v38 = vld [vmem:[%s13860_s16 + $0x608] ss:$48 sps:$4 sm:$0xff]  }
 0x263   : > { %6494 = vmatprep.subr.bf16.mxu1 %v12338_v39  ;;  %v12408_v39 = vld [vmem:[%s13860_s16 + $0x20] ss:$48 sps:$4 sm:$0xff]  }
 0x265   : > { %6280 = vmatpush1.bf16.msra.mxu0 %v12333_v40  ;;  %v12413_v40 = vld [vmem:[%s13860_s16 + $0x66c] ss:$48 sps:$4 sm:$0xff]  }
 0x266   : > { %6495 = vmatpush1.bf16.msra.mxu1 %v12336_v41  ;;  %6281 = vmatprep.subr.bf16.mxu0 %v12341_v42  ;;  %v12416_v41 = vld [vmem:[%s13860_s16 + $0x84] ss:$48 sps:$4 sm:$0xff]   ;;  %v12411_v42 = vld [vmem:[%s13860_s16 + $0x668] ss:$48 sps:$4 sm:$0xff]  }
 0x267   : > { %6496 = vmatprep.subr.bf16.mxu1 %v12344_v44  ;;  %v2444_v50 = vpop.f32.mrb[4].mxu0  ;;  %v12414_v44 = vld [vmem:[%s13860_s16 + $0x80] ss:$48 sps:$4 sm:$0xff]  }
 0x268   : > { %v11454_v51 = vadd.f32 %v14284_v24, %v2444_v50  ;;  %v2446_v52 = vpop.f32.mrb[5].mxu0  ;;  %v14441_v24 = vrot.slane %v6922_v37, %v13923_v49  ;;  %v12357_v37 = vld [vmem:[%s13860_s16 + $0x308] ss:$48 sps:$4 sm:$0xff]  }
 0x269   : > { %v11455_v53 = vadd.f32 %v14286_v25, %v2446_v52  ;;  %v2448_v54 = vpop.f32.mrb[6].mxu0  ;;  %6282 = vmatpush1.bf16.msra.mxu0 %v12339_v45  ;;  %v13427_v45 = vld [vmem:[%s14044_s27 + $0x10] ss:$24 sps:$4 sm:$0xff]   ;;  %v14502_v52 = vld [vmem:[%s14044_s27 + $0xc] ss:$24 sps:$4 sm:$0xff]  }
 0x26a   : > { %6497 = vmatpush1.bf16.msra.mxu1 %v12342_v46  ;;  %v2449_v57 = vpop.f32.mrb[7].mxu0  ;;  %6283 = vmatprep.subr.bf16.mxu0 %v12347_v47  ;;  %v14494_v46 = vld [vmem:[%s14044_s27] ss:$24 sps:$4 sm:$0xff]   ;;  %v12419_v47 = vld [vmem:[%s13860_s16 + $0x6cc] ss:$48 sps:$4 sm:$0xff]  }
 0x26b   : > { %6498 = vmatprep.subr.bf16.mxu1 %v12350_v48  ;;  %v6923_v61 = vcombine.low %v11454_v51, %v11455_v53  ;;  %v12422_v48 = vld [vmem:[%s13860_s16 + $0xe4] ss:$48 sps:$4 sm:$0xff]   ;;  %v12417_v50 = vld [vmem:[%s13860_s16 + $0x6c8] ss:$48 sps:$4 sm:$0xff]   ;;  %v12420_v51 = vld [vmem:[%s13860_s16 + $0xe0] ss:$48 sps:$4 sm:$0xff]  }
 0x26c   : > { %v12425_v53 = vld [vmem:[%s13860_s16 + $0x72c] ss:$48 sps:$4 sm:$0xff]   ;;  %v12428_v54 = vld [vmem:[%s13860_s16 + $0x144] ss:$48 sps:$4 sm:$0xff]  }
 0x26d   : > { %v14444_v25 = vrot.slane %v6923_v61, %v13923_v49  ;;  %6284 = vmatpush1.bf16.msra.mxu0 %v12345_v55  ;;  %v12423_v55 = vld [vmem:[%s13860_s16 + $0x728] ss:$48 sps:$4 sm:$0xff]   ;;  %v12431_v57 = vld [vmem:[%s13860_s16 + $0x78c] ss:$48 sps:$4 sm:$0xff]  }
 0x26e   : > { %6499 = vmatpush1.bf16.msra.mxu1 %v12348_v56  ;;  %6285 = vmatprep.subr.bf16.mxu0 %v12353_v58  ;;  %v12426_v56 = vld [vmem:[%s13860_s16 + $0x140] ss:$48 sps:$4 sm:$0xff]   ;;  %v12434_v58 = vld [vmem:[%s13860_s16 + $0x1a4] ss:$48 sps:$4 sm:$0xff]   ;;  %v12437_v61 = vld [vmem:[%s13860_s16 + $0x7ec] ss:$48 sps:$4 sm:$0xff]  }
 0x26f   : > { %6500 = vmatprep.subr.bf16.mxu1 %v12356_v59  ;;  %v6946_v10 = vcombine.low %v14441_v24, %v14444_v25  ;;  %v6947_v36 = vcombine.high %v14441_v24, %v14444_v25  ;;  %v12432_v59 = vld [vmem:[%s13860_s16 + $0x1a0] ss:$48 sps:$4 sm:$0xff]  }
 0x271   : > { %6286 = vmatpush1.bf16.msra.mxu0 %v12351_v62  ;;  %v12440_v62 = vld [vmem:[%s13860_s16 + $0x204] ss:$48 sps:$4 sm:$0xff]  }
 0x272   : > { %6501 = vmatpush1.bf16.msra.mxu1 %v12354_v63  ;;  %6287 = vmatprep.subr.bf16.mxu0 %v12359_v1  ;;  %v12435_v63 = vld [vmem:[%s13860_s16 + $0x7e8] ss:$48 sps:$4 sm:$0xff]   ;;  %v12438_v1 = vld [vmem:[%s13860_s16 + $0x200] ss:$48 sps:$4 sm:$0xff]  }
 0x273   : > { %6502 = vmatprep.subr.bf16.mxu1 %v12362_v60  ;;  %v12443_v60 = vld [vmem:[%s13860_s16 + $0x84c] ss:$48 sps:$4 sm:$0xff]  }
 0x275   : > { %6288 = vmatpush1.bf16.msra.mxu0 %v12357_v37  ;;  %v12446_v37 = vld [vmem:[%s13860_s16 + $0x264] ss:$48 sps:$4 sm:$0xff]  }
 0x276   : > { %6503 = vmatpush1.bf16.msra.mxu1 %v12360_v2  ;;  %6289 = vmatprep.subr.bf16.mxu0 %v12365_v3  ;;  %v12441_v3 = vld [vmem:[%s13860_s16 + $0x848] ss:$48 sps:$4 sm:$0xff]  }
 0x277   : > { %6504 = vmatprep.subr.bf16.mxu1 %v12368_v12  ;;  %v12444_v12 = vld [vmem:[%s13860_s16 + $0x260] ss:$48 sps:$4 sm:$0xff]  }
 0x279   : > { %6290 = vmatpush1.bf16.msra.mxu0 %v12363_v4 }
 0x27a   : > { %6505 = vmatpush1.bf16.msra.mxu1 %v12366_v5  ;;  %6291 = vmatprep.subr.bf16.mxu0 %v12371_v6  ;;  %v12449_v5 = vld [vmem:[%s13860_s16 + $0x8ac] ss:$48 sps:$4 sm:$0xff]  }
 0x27b   : > { %6506 = vmatprep.subr.bf16.mxu1 %v12374_v0 }
 0x27d   : > { %6292 = vmatpush1.bf16.msra.mxu0 %v12369_v7  ;;  %v12452_v7 = vld [vmem:[%s13860_s16 + $0x2c4] ss:$48 sps:$4 sm:$0xff]  }
 0x27e   : > { %6507 = vmatpush1.bf16.msra.mxu1 %v12372_v8  ;;  %6293 = vmatprep.subr.bf16.mxu0 %v12377_v9  ;;  %v12447_v8 = vld [vmem:[%s13860_s16 + $0x8a8] ss:$48 sps:$4 sm:$0xff]   ;;  %v12450_v9 = vld [vmem:[%s13860_s16 + $0x2c0] ss:$48 sps:$4 sm:$0xff]  }
 0x27f   : > { %6508 = vmatprep.subr.bf16.mxu1 %v12380_v11  ;;  %v12455_v11 = vld [vmem:[%s13860_s16 + $0x90c] ss:$48 sps:$4 sm:$0xff]  }
 0x281   : > { %6294 = vmatpush1.bf16.msra.mxu0 %v12375_v13  ;;  %v12458_v13 = vld [vmem:[%s13860_s16 + $0x324] ss:$48 sps:$4 sm:$0xff]  }
 0x282   : > { %6509 = vmatpush1.bf16.msra.mxu1 %v12378_v14  ;;  %6295 = vmatprep.subr.bf16.mxu0 %v12383_v18  ;;  %v12453_v14 = vld [vmem:[%s13860_s16 + $0x908] ss:$48 sps:$4 sm:$0xff]   ;;  %v12456_v18 = vld [vmem:[%s13860_s16 + $0x320] ss:$48 sps:$4 sm:$0xff]  }
 0x283   : > { %6510 = vmatprep.subr.bf16.mxu1 %v12386_v15  ;;  %v12461_v15 = vld [vmem:[%s13860_s16 + $0x96c] ss:$48 sps:$4 sm:$0xff]  }
 0x285   : > { %6296 = vmatpush1.bf16.msra.mxu0 %v12381_v16  ;;  %v12464_v16 = vld [vmem:[%s13860_s16 + $0x384] ss:$48 sps:$4 sm:$0xff]  }
 0x286   : > { %6511 = vmatpush1.bf16.msra.mxu1 %v12384_v17  ;;  %6297 = vmatprep.subr.bf16.mxu0 %v12389_v22  ;;  %v12459_v17 = vld [vmem:[%s13860_s16 + $0x968] ss:$48 sps:$4 sm:$0xff]   ;;  %v12462_v22 = vld [vmem:[%s13860_s16 + $0x380] ss:$48 sps:$4 sm:$0xff]  }
 0x287   : > { %6512 = vmatprep.subr.bf16.mxu1 %v12392_v19  ;;  %v12467_v19 = vld [vmem:[%s13860_s16 + $0x9cc] ss:$48 sps:$4 sm:$0xff]  }
 0x289   : > { %6298 = vmatpush1.bf16.msra.mxu0 %v12387_v20  ;;  %v12470_v20 = vld [vmem:[%s13860_s16 + $0x3e4] ss:$48 sps:$4 sm:$0xff]  }
 0x28a   : > { %6513 = vmatpush1.bf16.msra.mxu1 %v12390_v21  ;;  %6299 = vmatprep.subr.bf16.mxu0 %v12395_v23  ;;  %v12465_v21 = vld [vmem:[%s13860_s16 + $0x9c8] ss:$48 sps:$4 sm:$0xff]   ;;  %v12468_v23 = vld [vmem:[%s13860_s16 + $0x3e0] ss:$48 sps:$4 sm:$0xff]  }
 0x28b   : > { %6514 = vmatprep.subr.bf16.mxu1 %v12398_v26  ;;  %v12473_v26 = vld [vmem:[%s13860_s16 + $0xa2c] ss:$48 sps:$4 sm:$0xff]  }
 0x28d   : > { %6300 = vmatpush1.bf16.msra.mxu0 %v12393_v27  ;;  %v12476_v27 = vld [vmem:[%s13860_s16 + $0x444] ss:$48 sps:$4 sm:$0xff]  }
 0x28e   : > { %6515 = vmatpush1.bf16.msra.mxu1 %v12396_v29  ;;  %6301 = vmatprep.subr.bf16.mxu0 %v12401_v28  ;;  %v12471_v29 = vld [vmem:[%s13860_s16 + $0xa28] ss:$48 sps:$4 sm:$0xff]   ;;  %v12474_v28 = vld [vmem:[%s13860_s16 + $0x440] ss:$48 sps:$4 sm:$0xff]  }
 0x28f   : > { %6516 = vmatprep.subr.bf16.mxu1 %v12404_v31  ;;  %v12479_v31 = vld [vmem:[%s13860_s16 + $0xa8c] ss:$48 sps:$4 sm:$0xff]  }
 0x291   : > { %6302 = vmatpush1.bf16.msra.mxu0 %v12399_v32  ;;  %v12482_v32 = vld [vmem:[%s13860_s16 + $0x4a4] ss:$48 sps:$4 sm:$0xff]  }
 0x292   : > { %6517 = vmatpush1.bf16.msra.mxu1 %v12402_v33  ;;  %6314 = vmatprep.subr.bf16.mxu0 %v12407_v34  ;;  %v12477_v33 = vld [vmem:[%s13860_s16 + $0xa88] ss:$48 sps:$4 sm:$0xff]   ;;  %v12480_v34 = vld [vmem:[%s13860_s16 + $0x4a0] ss:$48 sps:$4 sm:$0xff]  }
 0x293   : > { %6658 = vmatprep.subr.bf16.mxu1 %v12410_v35  ;;  %v12485_v35 = vld [vmem:[%s13860_s16 + $0xaec] ss:$48 sps:$4 sm:$0xff]  }
 0x294   : > { %6304 = vmatmul.mubr.bf16.vlgmr.msra.gmra.mrb[12].mxu0 %v14494_v46 }
 0x295   : > { %6519 = vmatmul.mubr.bf16.vlgmr.msra.gmra.mrb[8].mxu1 %v13427_v45  ;;  %6315 = vmatpush1.bf16.msra.mxu0 %v12405_v38  ;;  %v12488_v38 = vld [vmem:[%s13860_s16 + $0x504] ss:$48 sps:$4 sm:$0xff]   ;;  %v12492_v45 = vld [vmem:[%s13860_s16 + $0x560] ss:$48 sps:$4 sm:$0xff]  }
 0x296   : > { %6659 = vmatpush1.bf16.msra.mxu1 %v12408_v39  ;;  %6316 = vmatprep.subr.bf16.mxu0 %v12413_v40  ;;  %v12483_v39 = vld [vmem:[%s13860_s16 + $0xae8] ss:$48 sps:$4 sm:$0xff]   ;;  %v12486_v40 = vld [vmem:[%s13860_s16 + $0x500] ss:$48 sps:$4 sm:$0xff]  }
 0x297   : > { %6660 = vmatprep.subr.bf16.mxu1 %v12416_v41  ;;  %6346 = vmatprep.mubr.bf16.mxu0 %v14502_v52  ;;  %v12491_v41 = vld [vmem:[%s13860_s16 + $0xb4c] ss:$48 sps:$4 sm:$0xff]  }
 0x298   : > { %6690 = vmatprep.mubr.bf16.mxu1 %v14412_v30  ;;  %v12429_v30 = vld [vmem:[%s13860_s16 + $0x788] ss:$48 sps:$4 sm:$0xff]  }
 0x299   : > { %6317 = vmatpush1.bf16.msra.mxu0 %v12411_v42  ;;  %v12494_v42 = vld [vmem:[%s13860_s16 + $0x564] ss:$48 sps:$4 sm:$0xff]  }
 0x29a   : > { %6661 = vmatpush1.bf16.msra.mxu1 %v12414_v44  ;;  %6318 = vmatprep.subr.bf16.mxu0 %v12419_v47  ;;  %v12489_v44 = vld [vmem:[%s13860_s16 + $0xb48] ss:$48 sps:$4 sm:$0xff]   ;;  %v12497_v47 = vld [vmem:[%s13860_s16 + $0xbac] ss:$48 sps:$4 sm:$0xff]  }
 0x29b   : > { %6662 = vmatprep.subr.bf16.mxu1 %v12422_v48  ;;  %v12500_v48 = vld [vmem:[%s13860_s16 + $0x5c4] ss:$48 sps:$4 sm:$0xff]  }
 0x29d   : > { %6319 = vmatpush1.bf16.msra.mxu0 %v12417_v50  ;;  %v12495_v50 = vld [vmem:[%s13860_s16 + $0xba8] ss:$48 sps:$4 sm:$0xff]  }
 0x29e   : > { %6663 = vmatpush1.bf16.msra.mxu1 %v12420_v51  ;;  %6320 = vmatprep.subr.bf16.mxu0 %v12425_v53  ;;  %v12498_v51 = vld [vmem:[%s13860_s16 + $0x5c0] ss:$48 sps:$4 sm:$0xff]   ;;  %v12503_v53 = vld [vmem:[%s13860_s16 + $0xc0c] ss:$48 sps:$4 sm:$0xff]  }
 0x29f   : > { %6664 = vmatprep.subr.bf16.mxu1 %v12428_v54  ;;  %v12506_v54 = vld [vmem:[%s13860_s16 + $0x624] ss:$48 sps:$4 sm:$0xff]  }
 0x2a1   : > { %6321 = vmatpush1.bf16.msra.mxu0 %v12423_v55  ;;  %v12501_v55 = vld [vmem:[%s13860_s16 + $0xc08] ss:$48 sps:$4 sm:$0xff]  }
 0x2a2   : > { %6665 = vmatpush1.bf16.msra.mxu1 %v12426_v56  ;;  %6322 = vmatprep.subr.bf16.mxu0 %v12431_v57  ;;  %v12504_v56 = vld [vmem:[%s13860_s16 + $0x620] ss:$48 sps:$4 sm:$0xff]   ;;  %v12509_v57 = vld [vmem:[%s13860_s16 + $0xc6c] ss:$48 sps:$4 sm:$0xff]  }
 0x2a3   : > { %6666 = vmatprep.subr.bf16.mxu1 %v12434_v58  ;;  %v12512_v58 = vld [vmem:[%s13860_s16 + $0x684] ss:$48 sps:$4 sm:$0xff]  }
 0x2a5   : > { %6323 = vmatpush1.bf16.msra.mxu0 %v12429_v30  ;;  %v12507_v30 = vld [vmem:[%s13860_s16 + $0xc68] ss:$48 sps:$4 sm:$0xff]  }
 0x2a6   : > { %6667 = vmatpush1.bf16.msra.mxu1 %v12432_v59  ;;  %6324 = vmatprep.subr.bf16.mxu0 %v12437_v61  ;;  %v12510_v59 = vld [vmem:[%s13860_s16 + $0x680] ss:$48 sps:$4 sm:$0xff]  }
 0x2a7   : > { %6668 = vmatprep.subr.bf16.mxu1 %v12440_v62  ;;  %v14575_v61 = vld [vmem:[%s14044_s27 + $0x8] ss:$24 sps:$4 sm:$0xff]   ;;  %v12515_v62 = vld [vmem:[%s13860_s16 + $0xccc] ss:$48 sps:$4 sm:$0xff]  }
 0x2a8   : > { %v14520_v2 = vpop.f32.mrb[4].mxu1 }
 0x2a9   : > { %v14524_v4 = vpop.f32.mrb[5].mxu1  ;;  %6325 = vmatpush1.bf16.msra.mxu0 %v12435_v63  ;;  %v12518_v63 = vld [vmem:[%s13860_s16 + $0x6e4] ss:$48 sps:$4 sm:$0xff]  }
 0x2aa   : > { %v14527_v6 = vpop.f32.mrb[6].mxu1  ;;  %6669 = vmatpush1.bf16.msra.mxu1 %v12438_v1  ;;  %6326 = vmatprep.subr.bf16.mxu0 %v12443_v60  ;;  %v14582_v1 = vld [vmem:[%s14044_s27 + $0x14] ss:$24 sps:$4 sm:$0xff]   ;;  %v12516_v60 = vld [vmem:[%s13860_s16 + $0x6e0] ss:$48 sps:$4 sm:$0xff]  }
 0x2ab   : > { %v14529_v0 = vpop.f32.mrb[7].mxu1  ;;  %6670 = vmatprep.subr.bf16.mxu1 %v12446_v37  ;;  %v12521_v37 = vld [vmem:[%s13860_s16 + $0xd2c] ss:$48 sps:$4 sm:$0xff]  }
 0x2ad   : > { %6327 = vmatpush1.bf16.msra.mxu0 %v12441_v3  ;;  %v12524_v3 = vld [vmem:[%s13860_s16 + $0x744] ss:$48 sps:$4 sm:$0xff]  }
 0x2ae   : > { %6671 = vmatpush1.bf16.msra.mxu1 %v12444_v12  ;;  %6328 = vmatprep.subr.bf16.mxu0 %v12449_v5  ;;  %v12519_v12 = vld [vmem:[%s13860_s16 + $0xd28] ss:$48 sps:$4 sm:$0xff]   ;;  %v12522_v5 = vld [vmem:[%s13860_s16 + $0x740] ss:$48 sps:$4 sm:$0xff]  }
 0x2af   : > { %6672 = vmatprep.subr.bf16.mxu1 %v12452_v7  ;;  %v12530_v7 = vld [vmem:[%s13860_s16 + $0x7a4] ss:$48 sps:$4 sm:$0xff]  }
 0x2b1   : > { %6329 = vmatpush1.bf16.msra.mxu0 %v12447_v8  ;;  %v12525_v8 = vld [vmem:[%s13860_s16 + $0xd88] ss:$48 sps:$4 sm:$0xff]  }
 0x2b2   : > { %6673 = vmatpush1.bf16.msra.mxu1 %v12450_v9  ;;  %6330 = vmatprep.subr.bf16.mxu0 %v12455_v11  ;;  %v12528_v9 = vld [vmem:[%s13860_s16 + $0x7a0] ss:$48 sps:$4 sm:$0xff]   ;;  %v12533_v11 = vld [vmem:[%s13860_s16 + $0xdec] ss:$48 sps:$4 sm:$0xff]  }
 0x2b3   : > { %6674 = vmatprep.subr.bf16.mxu1 %v12458_v13  ;;  %v12536_v13 = vld [vmem:[%s13860_s16 + $0x804] ss:$48 sps:$4 sm:$0xff]  }
 0x2b5   : > { %6331 = vmatpush1.bf16.msra.mxu0 %v12453_v14  ;;  %v12531_v14 = vld [vmem:[%s13860_s16 + $0xde8] ss:$48 sps:$4 sm:$0xff]  }
 0x2b6   : > { %6675 = vmatpush1.bf16.msra.mxu1 %v12456_v18  ;;  %6332 = vmatprep.subr.bf16.mxu0 %v12461_v15  ;;  %v12534_v18 = vld [vmem:[%s13860_s16 + $0x800] ss:$48 sps:$4 sm:$0xff]   ;;  %v12539_v15 = vld [vmem:[%s13860_s16 + $0xe4c] ss:$48 sps:$4 sm:$0xff]  }
 0x2b7   : > { %6676 = vmatprep.subr.bf16.mxu1 %v12464_v16  ;;  %v12542_v16 = vld [vmem:[%s13860_s16 + $0x864] ss:$48 sps:$4 sm:$0xff]  }
 0x2b9   : > { %6333 = vmatpush1.bf16.msra.mxu0 %v12459_v17  ;;  %v12537_v17 = vld [vmem:[%s13860_s16 + $0xe48] ss:$48 sps:$4 sm:$0xff]  }
 0x2ba   : > { %6677 = vmatpush1.bf16.msra.mxu1 %v12462_v22  ;;  %6334 = vmatprep.subr.bf16.mxu0 %v12467_v19  ;;  %v12540_v22 = vld [vmem:[%s13860_s16 + $0x860] ss:$48 sps:$4 sm:$0xff]   ;;  %v12545_v19 = vld [vmem:[%s13860_s16 + $0xeac] ss:$48 sps:$4 sm:$0xff]  }
 0x2bb   : > { %6678 = vmatprep.subr.bf16.mxu1 %v12470_v20  ;;  %v12548_v20 = vld [vmem:[%s13860_s16 + $0x8c4] ss:$48 sps:$4 sm:$0xff]  }
 0x2bd   : > { %6335 = vmatpush1.bf16.msra.mxu0 %v12465_v21  ;;  %v12543_v21 = vld [vmem:[%s13860_s16 + $0xea8] ss:$48 sps:$4 sm:$0xff]  }
 0x2be   : > { %6679 = vmatpush1.bf16.msra.mxu1 %v12468_v23  ;;  %6336 = vmatprep.subr.bf16.mxu0 %v12473_v26  ;;  %v12546_v23 = vld [vmem:[%s13860_s16 + $0x8c0] ss:$48 sps:$4 sm:$0xff]   ;;  %v12551_v26 = vld [vmem:[%s13860_s16 + $0xf0c] ss:$48 sps:$4 sm:$0xff]  }
 0x2bf   : > { %6680 = vmatprep.subr.bf16.mxu1 %v12476_v27  ;;  %v12554_v27 = vld [vmem:[%s13860_s16 + $0x924] ss:$48 sps:$4 sm:$0xff]  }
 0x2c1   : > { %6337 = vmatpush1.bf16.msra.mxu0 %v12471_v29  ;;  %v12549_v29 = vld [vmem:[%s13860_s16 + $0xf08] ss:$48 sps:$4 sm:$0xff]  }
 0x2c2   : > { %6681 = vmatpush1.bf16.msra.mxu1 %v12474_v28  ;;  %6338 = vmatprep.subr.bf16.mxu0 %v12479_v31  ;;  %v12552_v28 = vld [vmem:[%s13860_s16 + $0x920] ss:$48 sps:$4 sm:$0xff]   ;;  %v12557_v31 = vld [vmem:[%s13860_s16 + $0xf6c] ss:$48 sps:$4 sm:$0xff]  }
 0x2c3   : > { %6682 = vmatprep.subr.bf16.mxu1 %v12482_v32  ;;  %v12560_v32 = vld [vmem:[%s13860_s16 + $0x984] ss:$48 sps:$4 sm:$0xff]  }
 0x2c5   : > { %6339 = vmatpush1.bf16.msra.mxu0 %v12477_v33  ;;  %v12555_v33 = vld [vmem:[%s13860_s16 + $0xf68] ss:$48 sps:$4 sm:$0xff]  }
 0x2c6   : > { %6683 = vmatpush1.bf16.msra.mxu1 %v12480_v34  ;;  %6340 = vmatprep.subr.bf16.mxu0 %v12485_v35  ;;  %v12558_v34 = vld [vmem:[%s13860_s16 + $0x980] ss:$48 sps:$4 sm:$0xff]   ;;  %v12563_v35 = vld [vmem:[%s13860_s16 + $0xfcc] ss:$48 sps:$4 sm:$0xff]  }
 0x2c7   : > { %6684 = vmatprep.subr.bf16.mxu1 %v12488_v38  ;;  %v12566_v38 = vld [vmem:[%s13860_s16 + $0x9e4] ss:$48 sps:$4 sm:$0xff]  }
 0x2c9   : > { %6341 = vmatpush1.bf16.msra.mxu0 %v12483_v39  ;;  %v12561_v39 = vld [vmem:[%s13860_s16 + $0xfc8] ss:$48 sps:$4 sm:$0xff]  }
 0x2ca   : > { %6685 = vmatpush1.bf16.msra.mxu1 %v12486_v40  ;;  %6342 = vmatprep.subr.bf16.mxu0 %v12491_v41  ;;  %v12564_v40 = vld [vmem:[%s13860_s16 + $0x9e0] ss:$48 sps:$4 sm:$0xff]   ;;  %v12569_v41 = vld [vmem:[%s13860_s16 + $0x102c] ss:$48 sps:$4 sm:$0xff]  }
 0x2cb   : > { %6686 = vmatprep.subr.bf16.mxu1 %v12494_v42  ;;  %v12572_v42 = vld [vmem:[%s13860_s16 + $0xa44] ss:$48 sps:$4 sm:$0xff]  }
 0x2cd   : > { %6343 = vmatpush1.bf16.msra.mxu0 %v12489_v44  ;;  %v12567_v44 = vld [vmem:[%s13860_s16 + $0x1028] ss:$48 sps:$4 sm:$0xff]  }
 0x2ce   : > { %6687 = vmatpush1.bf16.msra.mxu1 %v12492_v45  ;;  %6344 = vmatprep.subr.bf16.mxu0 %v12497_v47  ;;  %v12570_v45 = vld [vmem:[%s13860_s16 + $0xa40] ss:$48 sps:$4 sm:$0xff]   ;;  %v12575_v47 = vld [vmem:[%s13860_s16 + $0x108c] ss:$48 sps:$4 sm:$0xff]  }
 0x2cf   : > { %6688 = vmatprep.subr.bf16.mxu1 %v12500_v48  ;;  %v12578_v48 = vld [vmem:[%s13860_s16 + $0xaa4] ss:$48 sps:$4 sm:$0xff]  }
 0x2d1   : > { %6345 = vmatpush1.bf16.msra.mxu0 %v12495_v50  ;;  %v12573_v50 = vld [vmem:[%s13860_s16 + $0x1088] ss:$48 sps:$4 sm:$0xff]  }
 0x2d2   : > { %6689 = vmatpush1.bf16.msra.mxu1 %v12498_v51  ;;  %6357 = vmatprep.subr.bf16.mxu0 %v12503_v53  ;;  %v12576_v51 = vld [vmem:[%s13860_s16 + $0xaa0] ss:$48 sps:$4 sm:$0xff]   ;;  %v12581_v53 = vld [vmem:[%s13860_s16 + $0x10ec] ss:$48 sps:$4 sm:$0xff]  }
 0x2d3   : > { %6701 = vmatprep.subr.bf16.mxu1 %v12506_v54  ;;  %v12584_v54 = vld [vmem:[%s13860_s16 + $0xb04] ss:$48 sps:$4 sm:$0xff]  }
 0x2d4   : > { %6347 = vmatmul.mubr.bf16.vlgmr.msra.gmra.mrb[12].mxu0 %v14575_v61 }
 0x2d5   : > { %6691 = vmatmul.mubr.bf16.vlgmr.msra.gmra.mrb[12].mxu1 %v14494_v46  ;;  %6358 = vmatpush1.bf16.msra.mxu0 %v12501_v55  ;;  %v12513_v46 = vld [vmem:[%s13860_s16 + $0xcc8] ss:$48 sps:$4 sm:$0xff]  }
 0x2d6   : > { %6702 = vmatpush1.bf16.msra.mxu1 %v12504_v56  ;;  %6359 = vmatprep.subr.bf16.mxu0 %v12509_v57  ;;  %v12579_v55 = vld [vmem:[%s13860_s16 + $0x10e8] ss:$48 sps:$4 sm:$0xff]   ;;  %v12582_v56 = vld [vmem:[%s13860_s16 + $0xb00] ss:$48 sps:$4 sm:$0xff]   ;;  %v12587_v57 = vld [vmem:[%s13860_s16 + $0x114c] ss:$48 sps:$4 sm:$0xff]  }
 0x2d7   : > { %6703 = vmatprep.subr.bf16.mxu1 %v12512_v58  ;;  %6389 = vmatprep.mubr.bf16.mxu0 %v14582_v1  ;;  %v12590_v58 = vld [vmem:[%s13860_s16 + $0xb64] ss:$48 sps:$4 sm:$0xff]  }
 0x2d8   : > { %6733 = vmatprep.mubr.bf16.mxu1 %v14502_v52  ;;  %v12527_v52 = vld [vmem:[%s13860_s16 + $0xd8c] ss:$48 sps:$4 sm:$0xff]  }
 0x2d9   : > { %6360 = vmatpush1.bf16.msra.mxu0 %v12507_v30  ;;  %v12585_v30 = vld [vmem:[%s13860_s16 + $0x1148] ss:$48 sps:$4 sm:$0xff]  }
 0x2da   : > { %6704 = vmatpush1.bf16.msra.mxu1 %v12510_v59  ;;  %6361 = vmatprep.subr.bf16.mxu0 %v12515_v62  ;;  %v12588_v59 = vld [vmem:[%s13860_s16 + $0xb60] ss:$48 sps:$4 sm:$0xff]   ;;  %v12593_v62 = vld [vmem:[%s13860_s16 + $0x11ac] ss:$48 sps:$4 sm:$0xff]  }
 0x2db   : > { %6705 = vmatprep.subr.bf16.mxu1 %v12518_v63  ;;  %v12596_v63 = vld [vmem:[%s13860_s16 + $0xbc4] ss:$48 sps:$4 sm:$0xff]  }
 0x2dd   : > { %6362 = vmatpush1.bf16.msra.mxu0 %v12513_v46  ;;  %v12591_v46 = vld [vmem:[%s13860_s16 + $0x11a8] ss:$48 sps:$4 sm:$0xff]  }
 0x2de   : > { %6706 = vmatpush1.bf16.msra.mxu1 %v12516_v60  ;;  %6363 = vmatprep.subr.bf16.mxu0 %v12521_v37  ;;  %v12594_v60 = vld [vmem:[%s13860_s16 + $0xbc0] ss:$48 sps:$4 sm:$0xff]   ;;  %v12599_v37 = vld [vmem:[%s13860_s16 + $0xc24] ss:$48 sps:$4 sm:$0xff]  }
 0x2df   : > { %6707 = vmatprep.subr.bf16.mxu1 %v12524_v3  ;;  %v12651_v3 = vld [vmem:[%s13860_s16 + $0x1c] ss:$48 sps:$4 sm:$0xff]  }
 0x2e1   : > { %6364 = vmatpush1.bf16.msra.mxu0 %v12519_v12  ;;  %v12597_v12 = vld [vmem:[%s13860_s16 + $0xc20] ss:$48 sps:$4 sm:$0xff]  }
 0x2e2   : > { %6708 = vmatpush1.bf16.msra.mxu1 %v12522_v5  ;;  %6365 = vmatprep.subr.bf16.mxu0 %v12527_v52  ;;  %v12602_v5 = vld [vmem:[%s13860_s16 + $0xc84] ss:$48 sps:$4 sm:$0xff]   ;;  %v12649_v52 = vld [vmem:[%s13860_s16 + $0x18] ss:$48 sps:$4 sm:$0xff]  }
 0x2e3   : > { %6709 = vmatprep.subr.bf16.mxu1 %v12530_v7  ;;  %v12600_v7 = vld [vmem:[%s13860_s16 + $0xc80] ss:$48 sps:$4 sm:$0xff]  }
 0x2e5   : > { %6366 = vmatpush1.bf16.msra.mxu0 %v12525_v8  ;;  %v12656_v8 = vld [vmem:[%s13860_s16 + $0x7c] ss:$48 sps:$4 sm:$0xff]  }
 0x2e6   : > { %6710 = vmatpush1.bf16.msra.mxu1 %v12528_v9  ;;  %6367 = vmatprep.subr.bf16.mxu0 %v12533_v11  ;;  %v14648_v9 = vld [vmem:[%s14044_s27 + $0x10] ss:$24 sps:$4 sm:$0xff]   ;;  %v12605_v11 = vld [vmem:[%s13860_s16 + $0xce4] ss:$48 sps:$4 sm:$0xff]  }
 0x2e7   : > { %6711 = vmatprep.subr.bf16.mxu1 %v12536_v13  ;;  %v12654_v13 = vld [vmem:[%s13860_s16 + $0x78] ss:$48 sps:$4 sm:$0xff]  }
 0x2e9   : > { %6368 = vmatpush1.bf16.msra.mxu0 %v12531_v14  ;;  %v12603_v14 = vld [vmem:[%s13860_s16 + $0xce0] ss:$48 sps:$4 sm:$0xff]  }
 0x2ea   : > { %6712 = vmatpush1.bf16.msra.mxu1 %v12534_v18  ;;  %6369 = vmatprep.subr.bf16.mxu0 %v12539_v15  ;;  %v12661_v18 = vld [vmem:[%s13860_s16 + $0xdc] ss:$48 sps:$4 sm:$0xff]  }
 0x2eb   : > { %6713 = vmatprep.subr.bf16.mxu1 %v12542_v16  ;;  %v14658_v15 = vld [vmem:[%s14044_s27 + $0x4] ss:$24 sps:$4 sm:$0xff]   ;;  %v12659_v16 = vld [vmem:[%s13860_s16 + $0xd8] ss:$48 sps:$4 sm:$0xff]  }
 0x2ed   : > { %6370 = vmatpush1.bf16.msra.mxu0 %v12537_v17  ;;  %v12666_v17 = vld [vmem:[%s13860_s16 + $0x13c] ss:$48 sps:$4 sm:$0xff]  }
 0x2ee   : > { %6714 = vmatpush1.bf16.msra.mxu1 %v12540_v22  ;;  %6371 = vmatprep.subr.bf16.mxu0 %v12545_v19  ;;  %v12611_v22 = vld [vmem:[%s13860_s16 + $0xda4] ss:$48 sps:$4 sm:$0xff]   ;;  %v12664_v19 = vld [vmem:[%s13860_s16 + $0x138] ss:$48 sps:$4 sm:$0xff]  }
 0x2ef   : > { %6715 = vmatprep.subr.bf16.mxu1 %v12548_v20  ;;  %v12671_v20 = vld [vmem:[%s13860_s16 + $0x19c] ss:$48 sps:$4 sm:$0xff]  }
 0x2f1   : > { %6372 = vmatpush1.bf16.msra.mxu0 %v12543_v21  ;;  %v12609_v21 = vld [vmem:[%s13860_s16 + $0xda0] ss:$48 sps:$4 sm:$0xff]  }
 0x2f2   : > { %6716 = vmatpush1.bf16.msra.mxu1 %v12546_v23  ;;  %6373 = vmatprep.subr.bf16.mxu0 %v12551_v26  ;;  %v12614_v23 = vld [vmem:[%s13860_s16 + $0xe04] ss:$48 sps:$4 sm:$0xff]   ;;  %v12669_v26 = vld [vmem:[%s13860_s16 + $0x198] ss:$48 sps:$4 sm:$0xff]  }
 0x2f3   : > { %6717 = vmatprep.subr.bf16.mxu1 %v12554_v27  ;;  %v12676_v27 = vld [vmem:[%s13860_s16 + $0x1fc] ss:$48 sps:$4 sm:$0xff]  }
 0x2f5   : > { %6374 = vmatpush1.bf16.msra.mxu0 %v12549_v29  ;;  %v12612_v29 = vld [vmem:[%s13860_s16 + $0xe00] ss:$48 sps:$4 sm:$0xff]  }
 0x2f6   : > { %6718 = vmatpush1.bf16.msra.mxu1 %v12552_v28  ;;  %6375 = vmatprep.subr.bf16.mxu0 %v12557_v31  ;;  %v12617_v28 = vld [vmem:[%s13860_s16 + $0xe64] ss:$48 sps:$4 sm:$0xff]   ;;  %v12674_v31 = vld [vmem:[%s13860_s16 + $0x1f8] ss:$48 sps:$4 sm:$0xff]  }
 0x2f7   : > { %6719 = vmatprep.subr.bf16.mxu1 %v12560_v32  ;;  %v12681_v32 = vld [vmem:[%s13860_s16 + $0x25c] ss:$48 sps:$4 sm:$0xff]  }
 0x2f9   : > { %6376 = vmatpush1.bf16.msra.mxu0 %v12555_v33 }
 0x2fa   : > { %6720 = vmatpush1.bf16.msra.mxu1 %v12558_v34  ;;  %6377 = vmatprep.subr.bf16.mxu0 %v12563_v35  ;;  %v12615_v34 = vld [vmem:[%s13860_s16 + $0xe60] ss:$48 sps:$4 sm:$0xff]  }
 0x2fb   : > { %6721 = vmatprep.subr.bf16.mxu1 %v12566_v38  ;;  %v12620_v38 = vld [vmem:[%s13860_s16 + $0xec4] ss:$48 sps:$4 sm:$0xff]  }
 0x2fd   : > { %6378 = vmatpush1.bf16.msra.mxu0 %v12561_v39  ;;  %v12679_v39 = vld [vmem:[%s13860_s16 + $0x258] ss:$48 sps:$4 sm:$0xff]  }
 0x2fe   : > { %6722 = vmatpush1.bf16.msra.mxu1 %v12564_v40  ;;  %6379 = vmatprep.subr.bf16.mxu0 %v12569_v41 }
 0x2ff   : > { %6723 = vmatprep.subr.bf16.mxu1 %v12572_v42  ;;  %v12684_v42 = vld [vmem:[%s13860_s16 + $0x2bc] ss:$48 sps:$4 sm:$0xff]  }
 0x301   : > { %6380 = vmatpush1.bf16.msra.mxu0 %v12567_v44 }
 0x302   : > { %6724 = vmatpush1.bf16.msra.mxu1 %v12570_v45  ;;  %6381 = vmatprep.subr.bf16.mxu0 %v12575_v47  ;;  %v12618_v47 = vld [vmem:[%s13860_s16 + $0xec0] ss:$48 sps:$4 sm:$0xff]  }
 0x303   : > { %6725 = vmatprep.subr.bf16.mxu1 %v12578_v48  ;;  %v12623_v48 = vld [vmem:[%s13860_s16 + $0xf24] ss:$48 sps:$4 sm:$0xff]  }
 0x305   : > { %6382 = vmatpush1.bf16.msra.mxu0 %v12573_v50  ;;  %v12682_v50 = vld [vmem:[%s13860_s16 + $0x2b8] ss:$48 sps:$4 sm:$0xff]  }
 0x306   : > { %6726 = vmatpush1.bf16.msra.mxu1 %v12576_v51  ;;  %6383 = vmatprep.subr.bf16.mxu0 %v12581_v53  ;;  %v6955_v53 = vrot.slane %v6946_v10, %v13923_v49 }
 0x307   : > { %6727 = vmatprep.subr.bf16.mxu1 %v12584_v54 }
 0x309   : > { %6384 = vmatpush1.bf16.msra.mxu0 %v12579_v55  ;;  %v6985_v55 = vsub.s32 1, %v13912_v43 }
 0x30a   : > { %6728 = vmatpush1.bf16.msra.mxu1 %v12582_v56  ;;  %6385 = vmatprep.subr.bf16.mxu0 %v12587_v57  ;;  %v12687_v56 = vld [vmem:[%s13860_s16 + $0x31c] ss:$48 sps:$4 sm:$0xff]   ;;  %v6981_v57 = vsub.s32 0, %v13912_v43 }
 0x30b   : > { %6729 = vmatprep.subr.bf16.mxu1 %v12590_v58  ;;  %v6962_v58 = vrot.slane %v6947_v36, %v13923_v49 }
 0x30d   : > { %6386 = vmatpush1.bf16.msra.mxu0 %v12585_v30 }
 0x30e   : > { %6730 = vmatpush1.bf16.msra.mxu1 %v12588_v59  ;;  %6387 = vmatprep.subr.bf16.mxu0 %v12593_v62  ;;  %v12621_v59 = vld [vmem:[%s13860_s16 + $0xf20] ss:$48 sps:$4 sm:$0xff]   ;;  %v12626_v62 = vld [vmem:[%s13860_s16 + $0xf84] ss:$48 sps:$4 sm:$0xff]  }
 0x30f   : > { %6731 = vmatprep.subr.bf16.mxu1 %v12596_v63  ;;  %v12685_v63 = vld [vmem:[%s13860_s16 + $0x318] ss:$48 sps:$4 sm:$0xff]  }
 0x311   : > { %6388 = vmatpush1.bf16.msra.mxu0 %v12591_v46 }
 0x312   : > { %6732 = vmatpush1.bf16.msra.mxu1 %v12594_v60  ;;  %6529 = vmatprep.subr.bf16.mxu0 %v12651_v3  ;;  %v12629_v3 = vld [vmem:[%s13860_s16 + $0xfe4] ss:$48 sps:$4 sm:$0xff]  }
 0x313   : > { %6744 = vmatprep.subr.bf16.mxu1 %v12599_v37  ;;  %v12690_v37 = vld [vmem:[%s13860_s16 + $0x37c] ss:$48 sps:$4 sm:$0xff]  }
 0x314   : > { %6390 = vmatmul.mubr.bf16.vlgmr.msra.gmra.mrb[12].mxu0 %v14648_v9 }
 0x315   : > { %6734 = vmatmul.mubr.bf16.vlgmr.msra.gmra.mrb[12].mxu1 %v14575_v61  ;;  %6530 = vmatpush1.bf16.msra.mxu0 %v12649_v52  ;;  %v12608_v61 = vld [vmem:[%s13860_s16 + $0xd44] ss:$48 sps:$4 sm:$0xff]  }
 0x316   : > { %6745 = vmatpush1.bf16.msra.mxu1 %v12597_v12  ;;  %6776 = vmatprep.mubr.bf16.mxu1 %v14582_v1  ;;  %v12606_v1 = vld [vmem:[%s13860_s16 + $0xd40] ss:$48 sps:$4 sm:$0xff]  }
 0x317   : > { %6746 = vmatprep.subr.bf16.mxu1 %v12602_v5  ;;  %6531 = vmatprep.subr.bf16.mxu0 %v12656_v8 }
 0x318   : > { %6561 = vmatprep.mubr.bf16.mxu0 %v14658_v15 }
 0x319   : > { %6532 = vmatpush1.bf16.msra.mxu0 %v12654_v13  ;;  %v12691_v13 = vld [vmem:[%s13860_s16 + $0x3d8] ss:$48 sps:$4 sm:$0xff]  }
 0x31a   : > { %6747 = vmatpush1.bf16.msra.mxu1 %v12600_v7  ;;  %6533 = vmatprep.subr.bf16.mxu0 %v12661_v18  ;;  %v12630_v18 = vld [vmem:[%s13860_s16 + $0x1040] ss:$48 sps:$4 sm:$0xff]  }
 0x31b   : > { %6748 = vmatprep.subr.bf16.mxu1 %v12605_v11 }
 0x31d   : > { %6534 = vmatpush1.bf16.msra.mxu0 %v12659_v16  ;;  %v12694_v16 = vld [vmem:[%s13860_s16 + $0x438] ss:$48 sps:$4 sm:$0xff]  }
 0x31e   : > { %6749 = vmatpush1.bf16.msra.mxu1 %v12603_v14  ;;  %6535 = vmatprep.subr.bf16.mxu0 %v12666_v17  ;;  %v12696_v14 = vld [vmem:[%s13860_s16 + $0x43c] ss:$48 sps:$4 sm:$0xff]   ;;  %v12633_v17 = vld [vmem:[%s13860_s16 + $0x10a0] ss:$48 sps:$4 sm:$0xff]  }
 0x31f   : > { %6750 = vmatprep.subr.bf16.mxu1 %v12608_v61  ;;  %v12635_v61 = vld [vmem:[%s13860_s16 + $0x10a4] ss:$48 sps:$4 sm:$0xff]  }
 0x321   : > { %6536 = vmatpush1.bf16.msra.mxu0 %v12664_v19  ;;  %v12697_v19 = vld [vmem:[%s13860_s16 + $0x498] ss:$48 sps:$4 sm:$0xff]  }
 0x322   : > { %6751 = vmatpush1.bf16.msra.mxu1 %v12606_v1  ;;  %6537 = vmatprep.subr.bf16.mxu0 %v12671_v20  ;;  %v12699_v1 = vld [vmem:[%s13860_s16 + $0x49c] ss:$48 sps:$4 sm:$0xff]  }
 0x323   : > { %6752 = vmatprep.subr.bf16.mxu1 %v12611_v22  ;;  %v12638_v22 = vld [vmem:[%s13860_s16 + $0x1104] ss:$48 sps:$4 sm:$0xff]   ;;  %v12702_v20 = vld [vmem:[%s13860_s16 + $0x4fc] ss:$48 sps:$4 sm:$0xff]  }
 0x325   : > { %6538 = vmatpush1.bf16.msra.mxu0 %v12669_v26  ;;  %v12700_v26 = vld [vmem:[%s13860_s16 + $0x4f8] ss:$48 sps:$4 sm:$0xff]  }
 0x326   : > { %6753 = vmatpush1.bf16.msra.mxu1 %v12609_v21  ;;  %6539 = vmatprep.subr.bf16.mxu0 %v12676_v27  ;;  %v12636_v21 = vld [vmem:[%s13860_s16 + $0x1100] ss:$48 sps:$4 sm:$0xff]   ;;  %v12705_v27 = vld [vmem:[%s13860_s16 + $0x55c] ss:$48 sps:$4 sm:$0xff]  }
 0x327   : > { %6754 = vmatprep.subr.bf16.mxu1 %v12614_v23  ;;  %v2649_v33 = vpop.f32.mrb[8].mxu0  ;;  %v12641_v23 = vld [vmem:[%s13860_s16 + $0x1164] ss:$48 sps:$4 sm:$0xff]  }
 0x328   : > { %v2651_v35 = vpop.f32.mrb[9].mxu0 }
 0x329   : > { %v6924_v40 = vcombine.low %v2649_v33, %v2651_v35  ;;  %v2653_v41 = vpop.f32.mrb[10].mxu0  ;;  %6540 = vmatpush1.bf16.msra.mxu0 %v12674_v31  ;;  %v12703_v31 = vld [vmem:[%s13860_s16 + $0x558] ss:$48 sps:$4 sm:$0xff]   ;;  %v12642_v33 = vld [vmem:[%s13860_s16 + $0x11c0] ss:$48 sps:$4 sm:$0xff]  }
 0x32a   : > { %6755 = vmatpush1.bf16.msra.mxu1 %v12612_v29  ;;  %v2654_v44 = vpop.f32.mrb[11].mxu0  ;;  %6541 = vmatprep.subr.bf16.mxu0 %v12681_v32  ;;  %v12639_v29 = vld [vmem:[%s13860_s16 + $0x1160] ss:$48 sps:$4 sm:$0xff]   ;;  %v12708_v32 = vld [vmem:[%s13860_s16 + $0x5bc] ss:$48 sps:$4 sm:$0xff]  }
 0x32b   : > { %6756 = vmatprep.subr.bf16.mxu1 %v12617_v28  ;;  %v6945_v45 = vrot.slane %v6924_v40, %v13923_v49  ;;  %v12644_v28 = vld [vmem:[%s13860_s16 + $0x11c4] ss:$48 sps:$4 sm:$0xff]   ;;  %v12706_v35 = vld [vmem:[%s13860_s16 + $0x5b8] ss:$48 sps:$4 sm:$0xff]  }
 0x32c   : > { %v14757_v40 = vld [vmem:[#allocation2 + $0x48] sm:$0xff]  }
 0x32d   : > { %v6948_v51 = vcombine.high %v6945_v45, %v6945_v45  ;;  %v6969_v54 = vrot.slane %v6945_v45, %v13923_v49  ;;  %6542 = vmatpush1.bf16.msra.mxu0 %v12679_v39  ;;  %v14754_v39 = vld [vmem:[#allocation2] sm:$0xff]   ;;  %v12709_v41 = vld [vmem:[%s13860_s16 + $0x618] ss:$48 sps:$4 sm:$0xff]   ;;  %v14766_v45 = vld [vmem:[#allocation2 + $0x50] sm:$0xff]  }
 0x32e   : > { %6757 = vmatpush1.bf16.msra.mxu1 %v12615_v34  ;;  %6543 = vmatprep.subr.bf16.mxu0 %v12684_v42  ;;  %v14750_v34 = vld [vmem:[#allocation2 + $0x40] sm:$0xff]   ;;  %v12714_v42 = vld [vmem:[%s13860_s16 + $0x67c] ss:$48 sps:$4 sm:$0xff]  }
 0x32f   : > { %6758 = vmatprep.subr.bf16.mxu1 %v12620_v38  ;;  %v6976_v30 = vrot.slane %v6948_v51, %v13923_v49  ;;  %v14697_v10 = vcombine.low %v6955_v53, %v6969_v54  ;;  %v12624_v49 = vld [vmem:[%s13860_s16 + $0xf80] ss:$48 sps:$4 sm:$0xff]   ;;  %v12711_v38 = vld [vmem:[%s13860_s16 + $0x61c] ss:$48 sps:$4 sm:$0xff]  }
 0x330   : > { %v14763_v44 = vld [vmem:[#allocation2 + $0x8] sm:$0xff]   ;;  %v14779_v53 = vld [vmem:[#allocation2 + $0x10] sm:$0xff]   ;;  %v14782_v54 = vld [vmem:[#allocation2 + $0x58] sm:$0xff]  }
 0x331   : > { %v14702_v46 = vcombine.low %v6962_v58, %v6976_v30  ;;  %v6986_v60 = vrot.slane %v14697_v10, %v6985_v55  ;;  %v6982_v24 = vrot.slane %v14697_v10, %v6981_v57  ;;  %6544 = vmatpush1.bf16.msra.mxu0 %v12682_v50  ;;  %v14774_v50 = vld [vmem:[%s14044_s27 + $0xc] ss:$24 sps:$4 sm:$0xff]   ;;  %v12718_v30 = vld [vmem:[%s13860_s16 + $0x738] ss:$48 sps:$4 sm:$0xff]  }
 0x332   : > { %6759 = vmatpush1.bf16.msra.mxu1 %v12618_v47  ;;  %6545 = vmatprep.subr.bf16.mxu0 %v12687_v56  ;;  %v14769_v47 = vld [vmem:[%s14044_s27] ss:$24 sps:$4 sm:$0xff]   ;;  %v12717_v51 = vld [vmem:[%s13860_s16 + $0x6dc] ss:$48 sps:$4 sm:$0xff]  }
 0x333   : > { %6760 = vmatprep.subr.bf16.mxu1 %v12623_v48  ;;  %v7010_v25 = vrot.slane %v14702_v46, %v6985_v55  ;;  %v14710_v36 = vmul.f32 %v6986_v60, %v14524_v4  ;;  %v7006_v12 = vrot.slane %v14702_v46, %v6981_v57  ;;  %v14715_v5 = vmul.f32 %v6982_v24, %v14520_v2  ;;  %v12688_v4 = vld [vmem:[%s13860_s16 + $0x378] ss:$48 sps:$4 sm:$0xff]   ;;  %v12693_v2 = vld [vmem:[%s13860_s16 + $0x3dc] ss:$48 sps:$4 sm:$0xff]   ;;  %v14790_v58 = vld [vmem:[#allocation2 + $0x60] sm:$0xff]  }
 0x334   : > { %v12712_v48 = vld [vmem:[%s13860_s16 + $0x678] ss:$48 sps:$4 sm:$0xff]   ;;  %v12720_v56 = vld [vmem:[%s13860_s16 + $0x73c] ss:$48 sps:$4 sm:$0xff]  }
 0x335   : > { %v14718_v52 = vmul.f32 %v7010_v25, %v14529_v0  ;;  %v14721_v7 = vmul.f32 %v7006_v12, %v14527_v6  ;;  %6546 = vmatpush1.bf16.msra.mxu0 %v12685_v63  ;;  %v12627_v0 = vld [vmem:[%s13860_s16 + $0xfe0] ss:$48 sps:$4 sm:$0xff]   ;;  %v12632_v6 = vld [vmem:[%s13860_s16 + $0x1044] ss:$48 sps:$4 sm:$0xff]   ;;  %v12715_v55 = vld [vmem:[%s13860_s16 + $0x6d8] ss:$48 sps:$4 sm:$0xff]  }
 0x336   : > { %6761 = vmatpush1.bf16.msra.mxu1 %v12621_v59  ;;  %6547 = vmatprep.subr.bf16.mxu0 %v12690_v37  ;;  %v14787_v57 = vld [vmem:[#allocation2 + $0x18] sm:$0xff]   ;;  %v6997_v63 = vsub.s32 4, %v13912_v43  ;;  %v14799_v60 = vld [vmem:[#allocation2 + $0x68] sm:$0xff]   ;;  %v7001_v37 = vsub.s32 5, %v13912_v43 }
 0x337   : > { %6762 = vmatprep.subr.bf16.mxu1 %v12626_v62  ;;  %v11328_v8 = vpack.c.bf16 %v14718_v52, %v14710_v36  ;;  %v11327_v11 = vpack.c.bf16 %v14721_v7, %v14715_v5  ;;  %v12723_v59 = vld [vmem:[%s13860_s16 + $0x79c] ss:$48 sps:$4 sm:$0xff]   ;;  %v14795_v62 = vld [vmem:[#allocation2 + $0x20] sm:$0xff]   ;;  %v12721_v24 = vld [vmem:[%s13860_s16 + $0x798] ss:$48 sps:$4 sm:$0xff]  }
 0x338   : > { %v14805_v25 = vld [vmem:[#allocation2 + $0x28] sm:$0xff]   ;;  %v6998_v36 = vrot.slane %v14697_v10, %v6997_v63  ;;  %v7002_v52 = vrot.slane %v14697_v10, %v7001_v37  ;;  %v14864_v5 = vld [vmem:[#allocation2 + $0x90] sm:$0xff]   ;;  %v14867_v7 = vld [vmem:[#allocation2 + $0xd8] sm:$0xff]  }
 0x339   : > { %6548 = vmatpush1.bf16.msra.mxu0 %v12688_v4  ;;  %v12724_v4 = vld [vmem:[%s13860_s16 + $0x7f8] ss:$48 sps:$4 sm:$0xff]  }
 0x33a   : > { %6763 = vmatpush1.bf16.msra.mxu1 %v12624_v49  ;;  %6549 = vmatprep.subr.bf16.mxu0 %v12693_v2  ;;  %v12726_v49 = vld [vmem:[%s13860_s16 + $0x7fc] ss:$48 sps:$4 sm:$0xff]  }
 0x33b   : > { %6764 = vmatprep.subr.bf16.mxu1 %v12629_v3  ;;  %v14809_v3 = vld [vmem:[#allocation2 + $0x70] sm:$0xff]  }
 0x33d   : > { %6550 = vmatpush1.bf16.msra.mxu0 %v12691_v13 }
 0x33e   : > { %6765 = vmatpush1.bf16.msra.mxu1 %v12627_v0  ;;  %6551 = vmatprep.subr.bf16.mxu0 %v12696_v14  ;;  %v7022_v0 = vrot.slane %v14702_v46, %v6997_v63  ;;  %v14880_v63 = vld [vmem:[#allocation2 + $0xa0] sm:$0xff]  }
 0x33f   : > { %6766 = vmatprep.subr.bf16.mxu1 %v12632_v6  ;;  %v12729_v6 = vld [vmem:[%s13860_s16 + $0x85c] ss:$48 sps:$4 sm:$0xff]  }
 0x341   : > { %6552 = vmatpush1.bf16.msra.mxu0 %v12694_v16 }
 0x342   : > { %6767 = vmatpush1.bf16.msra.mxu1 %v12630_v18  ;;  %6553 = vmatprep.subr.bf16.mxu0 %v12699_v1  ;;  %v7026_v18 = vrot.slane %v14702_v46, %v7001_v37  ;;  %v14883_v37 = vld [vmem:[#allocation2 + $0xe8] sm:$0xff]  }
 0x343   : > { %6768 = vmatprep.subr.bf16.mxu1 %v12635_v61  ;;  %v14821_v61 = vld [vmem:[#allocation2 + $0x30] sm:$0xff]  }
 0x345   : > { %6554 = vmatpush1.bf16.msra.mxu0 %v12697_v19  ;;  %v12727_v19 = vld [vmem:[%s13860_s16 + $0x858] ss:$48 sps:$4 sm:$0xff]  }
 0x346   : > { %6769 = vmatpush1.bf16.msra.mxu1 %v12633_v17  ;;  %6555 = vmatprep.subr.bf16.mxu0 %v12702_v20  ;;  %v14826_v17 = vld [vmem:[#allocation2 + $0x78] sm:$0xff]  }
 0x347   : > { %6770 = vmatprep.subr.bf16.mxu1 %v12638_v22  ;;  %v12860_v20 = vld [vmem:[%s13860_s16 + $0x2cc] ss:$48 sps:$4 sm:$0xff]  }
 0x349   : > { %6556 = vmatpush1.bf16.msra.mxu0 %v12700_v26  ;;  %v14837_v26 = vld [vmem:[#allocation2 + $0x38] sm:$0xff]  }
 0x34a   : > { %6771 = vmatpush1.bf16.msra.mxu1 %v12636_v21  ;;  %6557 = vmatprep.subr.bf16.mxu0 %v12705_v27  ;;  %v12732_v21 = vld [vmem:[%s13860_s16 + $0x8bc] ss:$48 sps:$4 sm:$0xff]   ;;  %v14840_v27 = vld [vmem:[#allocation2 + $0xc0] sm:$0xff]  }
 0x34b   : > { %6772 = vmatprep.subr.bf16.mxu1 %v12641_v23 }
 0x34d   : > { %6558 = vmatpush1.bf16.msra.mxu0 %v12703_v31  ;;  %v14845_v31 = vld [vmem:[#allocation2 + $0x80] sm:$0xff]  }
 0x34e   : > { %6773 = vmatpush1.bf16.msra.mxu1 %v12639_v29  ;;  %6559 = vmatprep.subr.bf16.mxu0 %v12708_v32  ;;  %v12730_v29 = vld [vmem:[%s13860_s16 + $0x8b8] ss:$48 sps:$4 sm:$0xff]  }
 0x34f   : > { %6774 = vmatprep.subr.bf16.mxu1 %v12644_v28  ;;  %v12735_v28 = vld [vmem:[%s13860_s16 + $0x91c] ss:$48 sps:$4 sm:$0xff]  }
 0x350   : > { %v14848_v32 = vld [vmem:[#allocation2 + $0xc8] sm:$0xff]  }
 0x351   : > { %6560 = vmatpush1.bf16.msra.mxu0 %v12706_v35  ;;  %v12738_v35 = vld [vmem:[%s13860_s16 + $0x97c] ss:$48 sps:$4 sm:$0xff]  }
 0x352   : > { %6775 = vmatpush1.bf16.msra.mxu1 %v12642_v33  ;;  %6572 = vmatprep.subr.bf16.mxu0 %v12711_v38  ;;  %v12733_v33 = vld [vmem:[%s13860_s16 + $0x918] ss:$48 sps:$4 sm:$0xff]  }
 0x353   : > { %11334 = vmatprep.subr.bf16.mxu1 %v14750_v34  ;;  %v14856_v38 = vld [vmem:[#allocation2 + $0x88] sm:$0xff]  }
 0x354   : > { %6562 = vmatmul.mubr.bf16.vlgmr.msra.gmra.mrb[16].mxu0 %v14769_v47 }
 0x355   : > { %6777 = vmatmul.mubr.bf16.vlgmr.msra.gmra.mrb[12].mxu1 %v14648_v9  ;;  %6573 = vmatpush1.bf16.msra.mxu0 %v12709_v41  ;;  %v14859_v41 = vld [vmem:[#allocation2 + $0xd0] sm:$0xff]  }
 0x356   : > { %11335 = vmatpush3.bf16.msra.mxu1 %v14754_v39  ;;  %7419 = vmatprep.mubr.bf16.mxu1 %v11328_v8 }
 0x357   : > { %11336 = vmatprep.subr.bf16.mxu1 %v14757_v40  ;;  %6604 = vmatprep.mubr.bf16.mxu0 %v14774_v50 }
 0x358   : > { %6574 = vmatprep.subr.bf16.mxu0 %v12714_v42  ;;  %v12736_v42 = vld [vmem:[%s13860_s16 + $0x978] ss:$48 sps:$4 sm:$0xff]  }
 0x359   : > { %6575 = vmatpush1.bf16.msra.mxu0 %v12712_v48  ;;  %v12741_v48 = vld [vmem:[%s13860_s16 + $0x9dc] ss:$48 sps:$4 sm:$0xff]  }
 0x35a   : > { %11337 = vmatpush3.bf16.msra.mxu1 %v14763_v44  ;;  %6576 = vmatprep.subr.bf16.mxu0 %v12717_v51  ;;  %v12744_v51 = vld [vmem:[%s13860_s16 + $0xa3c] ss:$48 sps:$4 sm:$0xff]  }
 0x35b   : > { %11338 = vmatprep.subr.bf16.mxu1 %v14766_v45 }
 0x35d   : > { %6577 = vmatpush1.bf16.msra.mxu0 %v12715_v55  ;;  %v14872_v55 = vld [vmem:[#allocation2 + $0x98] sm:$0xff]  }
 0x35e   : > { %11339 = vmatpush3.bf16.msra.mxu1 %v14779_v53  ;;  %6578 = vmatprep.subr.bf16.mxu0 %v12720_v56  ;;  %v14875_v56 = vld [vmem:[#allocation2 + $0xe0] sm:$0xff]  }
 0x35f   : > { %11340 = vmatprep.subr.bf16.mxu1 %v14782_v54 }
 0x361   : > { %6579 = vmatpush1.bf16.msra.mxu0 %v12718_v30  ;;  %v12742_v30 = vld [vmem:[%s13860_s16 + $0xa38] ss:$48 sps:$4 sm:$0xff]  }
 0x362   : > { %11341 = vmatpush3.bf16.msra.mxu1 %v14787_v57  ;;  %6580 = vmatprep.subr.bf16.mxu0 %v12723_v59  ;;  %v12747_v59 = vld [vmem:[%s13860_s16 + $0xa9c] ss:$48 sps:$4 sm:$0xff]  }
 0x363   : > { %11342 = vmatprep.subr.bf16.mxu1 %v14790_v58 }
 0x365   : > { %6581 = vmatpush1.bf16.msra.mxu0 %v12721_v24  ;;  %v12745_v24 = vld [vmem:[%s13860_s16 + $0xa98] ss:$48 sps:$4 sm:$0xff]  }
 0x366   : > { %11343 = vmatpush3.bf16.msra.mxu1 %v14795_v62  ;;  %6582 = vmatprep.subr.bf16.mxu0 %v12726_v49  ;;  %v12751_v49 = vld [vmem:[%s13860_s16 + $0xafc] ss:$48 sps:$4 sm:$0xff]  }
 0x367   : > { %11344 = vmatprep.subr.bf16.mxu1 %v14799_v60 }
 0x368   : > { %v6520_v12 = vpop.f32.mrb[8].mxu1 }
 0x369   : > { %v14813_v8 = vmul.f32 %v6998_v36, %v6520_v12  ;;  %v6522_v2 = vpop.f32.mrb[9].mxu1  ;;  %6583 = vmatpush1.bf16.msra.mxu0 %v12724_v4  ;;  %v14888_v36 = vld [vmem:[#allocation2 + $0xa8] sm:$0xff]   ;;  %v14891_v12 = vld [vmem:[#allocation2 + $0xf0] sm:$0xff]  }
 0x36a   : > { %v14817_v13 = vmul.f32 %v7002_v52, %v6522_v2  ;;  %v6524_v14 = vpop.f32.mrb[10].mxu1  ;;  %11345 = vmatpush3.bf16.msra.mxu1 %v14805_v25  ;;  %6584 = vmatprep.subr.bf16.mxu0 %v12729_v6  ;;  %v12749_v52 = vld [vmem:[%s13860_s16 + $0xaf8] ss:$48 sps:$4 sm:$0xff]   ;;  %v12756_v4 = vld [vmem:[%s13860_s16 + $0xb5c] ss:$48 sps:$4 sm:$0xff]   ;;  %v14896_v2 = vld [vmem:[#allocation2 + $0xb0] sm:$0xff]  }
 0x36b   : > { %v14823_v16 = vmul.f32 %v7022_v0, %v6524_v14  ;;  %v6526_v1 = vpop.f32.mrb[11].mxu1  ;;  %11346 = vmatprep.subr.bf16.mxu1 %v14809_v3  ;;  %v14899_v0 = vld [vmem:[#allocation2 + $0xf8] sm:$0xff]  }
 0x36c   : > { %v14828_v22 = vmul.f32 %v7026_v18, %v6526_v1  ;;  %v12754_v6 = vld [vmem:[%s13860_s16 + $0xb58] ss:$48 sps:$4 sm:$0xff]   ;;  %v12761_v14 = vld [vmem:[%s13860_s16 + $0xbbc] ss:$48 sps:$4 sm:$0xff]   ;;  %v14907_v1 = vld [vmem:[#allocation2 + $0x140] sm:$0xff]  }
 0x36d   : > { %6585 = vmatpush1.bf16.msra.mxu0 %v12727_v19  ;;  %v14904_v18 = vld [vmem:[#allocation2 + $0xb8] sm:$0xff]  }
 0x36e   : > { %v11332_v23 = vpack.c.bf16 %v14828_v22, %v14817_v13  ;;  %11347 = vmatpush3.bf16.msra.mxu1 %v14821_v61  ;;  %6586 = vmatprep.subr.bf16.mxu0 %v12732_v21  ;;  %v12759_v19 = vld [vmem:[%s13860_s16 + $0xbb8] ss:$48 sps:$4 sm:$0xff]   ;;  %v12766_v21 = vld [vmem:[%s13860_s16 + $0xc1c] ss:$48 sps:$4 sm:$0xff]  }
 0x36f   : > { %11348 = vmatprep.subr.bf16.mxu1 %v14826_v17  ;;  %v14996_v13 = vld [vmem:[#allocation2 + $0x158] sm:$0xff]  }
 0x370   : > { %v12864_v22 = vld [vmem:[%s13860_s16 + $0x388] ss:$48 sps:$4 sm:$0xff]  }
 0x371   : > { %6587 = vmatpush1.bf16.msra.mxu0 %v12730_v29  ;;  %v12764_v29 = vld [vmem:[%s13860_s16 + $0xc18] ss:$48 sps:$4 sm:$0xff]  }
 0x372   : > { %11349 = vmatpush3.bf16.msra.mxu1 %v14837_v26  ;;  %6588 = vmatprep.subr.bf16.mxu0 %v12735_v28  ;;  %v12771_v28 = vld [vmem:[%s13860_s16 + $0xc7c] ss:$48 sps:$4 sm:$0xff]  }
 0x373   : > { %11356 = vmatprep.subr.bf16.mxu1 %v14840_v27 }
 0x375   : > { %7420 = vmatmul.mubr.bf16.vlgmr.msra.gmra.mrb[16].mxu1 %v11327_v11  ;;  %6589 = vmatpush1.bf16.msra.mxu0 %v12733_v33  ;;  %v12739_v11 = vld [vmem:[%s13860_s16 + $0x9d8] ss:$48 sps:$4 sm:$0xff]  }
 0x376   : > { %11357 = vmatpush3.bf16.msra.mxu1 %v14845_v31  ;;  %6590 = vmatprep.subr.bf16.mxu0 %v12738_v35  ;;  %v14916_v33 = vld [vmem:[%s14044_s27 + $0x8] ss:$24 sps:$4 sm:$0xff]  }
 0x377   : > { %11358 = vmatprep.subr.bf16.mxu1 %v14848_v32  ;;  %v12769_v35 = vld [vmem:[%s13860_s16 + $0xc78] ss:$48 sps:$4 sm:$0xff]  }
 0x379   : > { %6591 = vmatpush1.bf16.msra.mxu0 %v12736_v42  ;;  %v14921_v42 = vld [vmem:[%s14044_s27 + $0x14] ss:$24 sps:$4 sm:$0xff]  }
 0x37a   : > { %11359 = vmatpush3.bf16.msra.mxu1 %v14856_v38  ;;  %6592 = vmatprep.subr.bf16.mxu0 %v12741_v48  ;;  %v12776_v48 = vld [vmem:[%s13860_s16 + $0xcdc] ss:$48 sps:$4 sm:$0xff]  }
 0x37b   : > { %11360 = vmatprep.subr.bf16.mxu1 %v14859_v41 }
 0x37d   : > { %6593 = vmatpush1.bf16.msra.mxu0 %v12739_v11  ;;  %v12774_v11 = vld [vmem:[%s13860_s16 + $0xcd8] ss:$48 sps:$4 sm:$0xff]  }
 0x37e   : > { %11361 = vmatpush3.bf16.msra.mxu1 %v14864_v5  ;;  %6594 = vmatprep.subr.bf16.mxu0 %v12744_v51  ;;  %v12781_v51 = vld [vmem:[%s13860_s16 + $0xd3c] ss:$48 sps:$4 sm:$0xff]  }
 0x37f   : > { %11362 = vmatprep.subr.bf16.mxu1 %v14867_v7 }
 0x381   : > { %6595 = vmatpush1.bf16.msra.mxu0 %v12742_v30  ;;  %v12779_v30 = vld [vmem:[%s13860_s16 + $0xd38] ss:$48 sps:$4 sm:$0xff]  }
 0x382   : > { %11363 = vmatpush3.bf16.msra.mxu1 %v14872_v55  ;;  %6596 = vmatprep.subr.bf16.mxu0 %v12747_v59  ;;  %v12786_v59 = vld [vmem:[%s13860_s16 + $0xd9c] ss:$48 sps:$4 sm:$0xff]  }
 0x383   : > { %11364 = vmatprep.subr.bf16.mxu1 %v14875_v56 }
 0x385   : > { %6597 = vmatpush1.bf16.msra.mxu0 %v12745_v24  ;;  %v12784_v24 = vld [vmem:[%s13860_s16 + $0xd98] ss:$48 sps:$4 sm:$0xff]  }
 0x386   : > { %11365 = vmatpush3.bf16.msra.mxu1 %v14880_v63  ;;  %6598 = vmatprep.subr.bf16.mxu0 %v12751_v49  ;;  %v12791_v49 = vld [vmem:[%s13860_s16 + $0xdfc] ss:$48 sps:$4 sm:$0xff]  }
 0x387   : > { %11366 = vmatprep.subr.bf16.mxu1 %v14883_v37 }
 0x389   : > { %6599 = vmatpush1.bf16.msra.mxu0 %v12749_v52  ;;  %v12789_v52 = vld [vmem:[%s13860_s16 + $0xdf8] ss:$48 sps:$4 sm:$0xff]  }
 0x38a   : > { %11367 = vmatpush3.bf16.msra.mxu1 %v14888_v36  ;;  %6600 = vmatprep.subr.bf16.mxu0 %v12756_v4  ;;  %v12796_v4 = vld [vmem:[%s13860_s16 + $0xe5c] ss:$48 sps:$4 sm:$0xff]  }
 0x38b   : > { %11368 = vmatprep.subr.bf16.mxu1 %v14891_v12 }
 0x38d   : > { %6601 = vmatpush1.bf16.msra.mxu0 %v12754_v6  ;;  %v12794_v6 = vld [vmem:[%s13860_s16 + $0xe58] ss:$48 sps:$4 sm:$0xff]  }
 0x38e   : > { %11369 = vmatpush3.bf16.msra.mxu1 %v14896_v2  ;;  %6602 = vmatprep.subr.bf16.mxu0 %v12761_v14  ;;  %v12801_v14 = vld [vmem:[%s13860_s16 + $0xebc] ss:$48 sps:$4 sm:$0xff]  }
 0x38f   : > { %11370 = vmatprep.subr.bf16.mxu1 %v14899_v0 }
 0x391   : > { %6603 = vmatpush1.bf16.msra.mxu0 %v12759_v19  ;;  %v12799_v19 = vld [vmem:[%s13860_s16 + $0xeb8] ss:$48 sps:$4 sm:$0xff]  }
 0x392   : > { %11371 = vmatpush3.bf16.msra.mxu1 %v14904_v18  ;;  %6615 = vmatprep.subr.bf16.mxu0 %v12766_v21  ;;  %v12806_v21 = vld [vmem:[%s13860_s16 + $0xf1c] ss:$48 sps:$4 sm:$0xff]  }
 0x393   : > { %11378 = vmatprep.subr.bf16.mxu1 %v14907_v1 }
 0x394   : > { %6605 = vmatmul.mubr.bf16.vlgmr.msra.gmra.mrb[16].mxu0 %v14916_v33 }
 0x395   : > { %6616 = vmatpush1.bf16.msra.mxu0 %v12764_v29  ;;  %6647 = vmatprep.mubr.bf16.mxu0 %v14921_v42  ;;  %v12804_v29 = vld [vmem:[%s13860_s16 + $0xf18] ss:$48 sps:$4 sm:$0xff]  }
 0x396   : > { %6617 = vmatprep.subr.bf16.mxu0 %v12771_v28  ;;  %v12811_v28 = vld [vmem:[%s13860_s16 + $0xf7c] ss:$48 sps:$4 sm:$0xff]  }
 0x399   : > { %6618 = vmatpush1.bf16.msra.mxu0 %v12769_v35  ;;  %v12809_v35 = vld [vmem:[%s13860_s16 + $0xf78] ss:$48 sps:$4 sm:$0xff]  }
 0x39a   : > { %6619 = vmatprep.subr.bf16.mxu0 %v12776_v48  ;;  %v12816_v48 = vld [vmem:[%s13860_s16 + $0xfdc] ss:$48 sps:$4 sm:$0xff]  }
 0x39d   : > { %6620 = vmatpush1.bf16.msra.mxu0 %v12774_v11  ;;  %v12814_v11 = vld [vmem:[%s13860_s16 + $0xfd8] ss:$48 sps:$4 sm:$0xff]  }
 0x39e   : > { %6621 = vmatprep.subr.bf16.mxu0 %v12781_v51  ;;  %v12821_v51 = vld [vmem:[%s13860_s16 + $0x103c] ss:$48 sps:$4 sm:$0xff]  }
 0x3a1   : > { %6622 = vmatpush1.bf16.msra.mxu0 %v12779_v30  ;;  %v12819_v30 = vld [vmem:[%s13860_s16 + $0x1038] ss:$48 sps:$4 sm:$0xff]  }
 0x3a2   : > { %6623 = vmatprep.subr.bf16.mxu0 %v12786_v59  ;;  %v12826_v59 = vld [vmem:[%s13860_s16 + $0x109c] ss:$48 sps:$4 sm:$0xff]  }
 0x3a5   : > { %6624 = vmatpush1.bf16.msra.mxu0 %v12784_v24  ;;  %v12824_v24 = vld [vmem:[%s13860_s16 + $0x1098] ss:$48 sps:$4 sm:$0xff]  }
 0x3a6   : > { %6625 = vmatprep.subr.bf16.mxu0 %v12791_v49  ;;  %v12830_v49 = vld [vmem:[%s13860_s16 + $0x10fc] ss:$48 sps:$4 sm:$0xff]  }
 0x3a9   : > { %6626 = vmatpush1.bf16.msra.mxu0 %v12789_v52  ;;  %v12828_v52 = vld [vmem:[%s13860_s16 + $0x10f8] ss:$48 sps:$4 sm:$0xff]  }
 0x3aa   : > { %6627 = vmatprep.subr.bf16.mxu0 %v12796_v4  ;;  %v12833_v4 = vld [vmem:[%s13860_s16 + $0x115c] ss:$48 sps:$4 sm:$0xff]  }
 0x3ad   : > { %6628 = vmatpush1.bf16.msra.mxu0 %v12794_v6  ;;  %v12831_v6 = vld [vmem:[%s13860_s16 + $0x1158] ss:$48 sps:$4 sm:$0xff]  }
 0x3ae   : > { %6629 = vmatprep.subr.bf16.mxu0 %v12801_v14  ;;  %v12836_v14 = vld [vmem:[%s13860_s16 + $0x11bc] ss:$48 sps:$4 sm:$0xff]  }
 0x3b1   : > { %6630 = vmatpush1.bf16.msra.mxu0 %v12799_v19  ;;  %v12834_v19 = vld [vmem:[%s13860_s16 + $0x11b8] ss:$48 sps:$4 sm:$0xff]  }
 0x3b2   : > { %6631 = vmatprep.subr.bf16.mxu0 %v12806_v21  ;;  %v12839_v21 = vld [vmem:[%s13860_s16 + $0x2c] ss:$48 sps:$4 sm:$0xff]  }
 0x3b5   : > { %6632 = vmatpush1.bf16.msra.mxu0 %v12804_v29  ;;  %v12837_v29 = vld [vmem:[%s13860_s16 + $0x28] ss:$48 sps:$4 sm:$0xff]  }
 0x3b6   : > { %6633 = vmatprep.subr.bf16.mxu0 %v12811_v28  ;;  %v12842_v28 = vld [vmem:[%s13860_s16 + $0x8c] ss:$48 sps:$4 sm:$0xff]  }
 0x3b9   : > { %6634 = vmatpush1.bf16.msra.mxu0 %v12809_v35  ;;  %v12840_v35 = vld [vmem:[%s13860_s16 + $0x88] ss:$48 sps:$4 sm:$0xff]  }
 0x3ba   : > { %6635 = vmatprep.subr.bf16.mxu0 %v12816_v48  ;;  %v12845_v48 = vld [vmem:[%s13860_s16 + $0xec] ss:$48 sps:$4 sm:$0xff]  }
 0x3bd   : > { %6636 = vmatpush1.bf16.msra.mxu0 %v12814_v11  ;;  %v12843_v11 = vld [vmem:[%s13860_s16 + $0xe8] ss:$48 sps:$4 sm:$0xff]  }
 0x3be   : > { %6637 = vmatprep.subr.bf16.mxu0 %v12821_v51  ;;  %v12848_v51 = vld [vmem:[%s13860_s16 + $0x14c] ss:$48 sps:$4 sm:$0xff]  }
 0x3c1   : > { %6638 = vmatpush1.bf16.msra.mxu0 %v12819_v30  ;;  %v12846_v30 = vld [vmem:[%s13860_s16 + $0x148] ss:$48 sps:$4 sm:$0xff]  }
 0x3c2   : > { %6639 = vmatprep.subr.bf16.mxu0 %v12826_v59  ;;  %v12851_v59 = vld [vmem:[%s13860_s16 + $0x1ac] ss:$48 sps:$4 sm:$0xff]  }
 0x3c5   : > { %6640 = vmatpush1.bf16.msra.mxu0 %v12824_v24  ;;  %v6993_v24 = vsub.s32 3, %v13912_v43 }
 0x3c6   : > { %6641 = vmatprep.subr.bf16.mxu0 %v12830_v49  ;;  %v12849_v49 = vld [vmem:[%s13860_s16 + $0x1a8] ss:$48 sps:$4 sm:$0xff]  }
 0x3c9   : > { %6642 = vmatpush1.bf16.msra.mxu0 %v12828_v52 }
 0x3ca   : > { %6643 = vmatprep.subr.bf16.mxu0 %v12833_v4 }
 0x3cd   : > { %6644 = vmatpush1.bf16.msra.mxu0 %v12831_v6  ;;  %v6994_v6 = vrot.slane %v14697_v10, %v6993_v24 }
 0x3ce   : > { %6645 = vmatprep.subr.bf16.mxu0 %v12836_v14  ;;  %v12852_v14 = vld [vmem:[%s13860_s16 + $0x208] ss:$48 sps:$4 sm:$0xff]  }
 0x3d1   : > { %6646 = vmatpush1.bf16.msra.mxu0 %v12834_v19 }
 0x3d2   : > { %6787 = vmatprep.subr.bf16.mxu0 %v12839_v21 }
 0x3d4   : > { %6648 = vmatmul.mubr.bf16.vlgmr.msra.gmra.mrb[16].mxu0 %v14648_v9  ;;  %v6989_v9 = vsub.s32 2, %v13912_v43 }
 0x3d5   : > { %6788 = vmatpush1.bf16.msra.mxu0 %v12837_v29  ;;  %6819 = vmatprep.mubr.bf16.mxu0 %v14658_v15  ;;  %v12854_v15 = vld [vmem:[%s13860_s16 + $0x20c] ss:$48 sps:$4 sm:$0xff]  }
 0x3d6   : > { %6789 = vmatprep.subr.bf16.mxu0 %v12842_v28  ;;  %v6990_v52 = vrot.slane %v14697_v10, %v6989_v9  ;;  %v7014_v29 = vrot.slane %v14702_v46, %v6989_v9  ;;  %v12857_v28 = vld [vmem:[%s13860_s16 + $0x26c] ss:$48 sps:$4 sm:$0xff]   ;;  %v12855_v10 = vld [vmem:[%s13860_s16 + $0x268] ss:$48 sps:$4 sm:$0xff]  }
 0x3d7   : > { %v14977_v9 = vld [vmem:[#allocation2 + $0x148] sm:$0xff]  }
 0x3d9   : > { %6790 = vmatpush1.bf16.msra.mxu0 %v12840_v35 }
 0x3da   : > { %6791 = vmatprep.subr.bf16.mxu0 %v12845_v48 }
 0x3dd   : > { %6792 = vmatpush1.bf16.msra.mxu0 %v12843_v11  ;;  %v7018_v11 = vrot.slane %v14702_v46, %v6993_v24  ;;  %v12863_v46 = vld [vmem:[%s13860_s16 + $0x32c] ss:$48 sps:$4 sm:$0xff]  }
 0x3de   : > { %6793 = vmatprep.subr.bf16.mxu0 %v12848_v51  ;;  %v14985_v24 = vld [vmem:[#allocation2 + $0x108] sm:$0xff]  }
 0x3e1   : > { %6794 = vmatpush1.bf16.msra.mxu0 %v12846_v30 }
 0x3e2   : > { %6795 = vmatprep.subr.bf16.mxu0 %v12851_v59 }
 0x3e5   : > { %6796 = vmatpush1.bf16.msra.mxu0 %v12849_v49 }
 0x3e6   : > { %6797 = vmatprep.subr.bf16.mxu0 %v12854_v15  ;;  %v12858_v15 = vld [vmem:[%s13860_s16 + $0x2c8] ss:$48 sps:$4 sm:$0xff]  }
 0x3e7   : > { %v6391_v4 = vpop.f32.mrb[12].mxu0 }
 0x3e8   : > { %v7041_v19 = vmul.f32 %v6990_v52, %v6391_v4  ;;  %v6393_v21 = vpop.f32.mrb[13].mxu0  ;;  %v14975_v4 = vld [vmem:[#allocation2 + $0x100] sm:$0xff]  }
 0x3e9   : > { %v7042_v35 = vmul.f32 %v6994_v6, %v6393_v21  ;;  %v6395_v48 = vpop.f32.mrb[14].mxu0  ;;  %6798 = vmatpush1.bf16.msra.mxu0 %v12852_v14  ;;  %v14988_v6 = vld [vmem:[#allocation2 + $0x150] sm:$0xff]   ;;  %v12861_v14 = vld [vmem:[%s13860_s16 + $0x328] ss:$48 sps:$4 sm:$0xff]  }
 0x3ea   : > { %v7047_v51 = vmul.f32 %v7014_v29, %v6395_v48  ;;  %v6397_v30 = vpop.f32.mrb[15].mxu0  ;;  %6799 = vmatprep.subr.bf16.mxu0 %v12857_v28  ;;  %v15001_v21 = vld [vmem:[#allocation2 + $0x118] sm:$0xff]   ;;  %v15004_v29 = vld [vmem:[#allocation2 + $0x160] sm:$0xff]  }
 0x3eb   : > { %v7048_v59 = vmul.f32 %v7018_v11, %v6397_v30  ;;  %v12867_v28 = vld [vmem:[%s13860_s16 + $0x3e8] ss:$48 sps:$4 sm:$0xff]   ;;  %v15009_v48 = vld [vmem:[#allocation2 + $0x120] sm:$0xff]   ;;  %v12875_v30 = vld [vmem:[%s13860_s16 + $0x4ac] ss:$48 sps:$4 sm:$0xff]  }
 0x3ec   : > { %v11329_v49 = vpack.c.bf16 %v7047_v51, %v7041_v19  ;;  %v14993_v19 = vld [vmem:[#allocation2 + $0x110] sm:$0xff]   ;;  %v15012_v11 = vld [vmem:[#allocation2 + $0x168] sm:$0xff]  }
 0x3ed   : > { %v11330_v52 = vpack.c.bf16 %v7048_v59, %v7042_v35  ;;  %6800 = vmatpush1.bf16.msra.mxu0 %v12855_v10  ;;  %v12872_v35 = vld [vmem:[%s13860_s16 + $0x44c] ss:$48 sps:$4 sm:$0xff]   ;;  %v12870_v51 = vld [vmem:[%s13860_s16 + $0x448] ss:$48 sps:$4 sm:$0xff]   ;;  %v15020_v10 = vld [vmem:[#allocation2 + $0x170] sm:$0xff]  }
 0x3ee   : > { %6801 = vmatprep.subr.bf16.mxu0 %v12860_v20  ;;  %v12866_v20 = vld [vmem:[%s13860_s16 + $0x38c] ss:$48 sps:$4 sm:$0xff]  }
 0x3ef   : > { %7460 = vmatprep.mubr.bf16.mxu1 %v11330_v52  ;;  %v15017_v59 = vld [vmem:[#allocation2 + $0x128] sm:$0xff]  }
 0x3f0   : > { %7461 = vmatmul.mubr.bf16.vlgmr.msra.gmra.mrb[20].mxu1 %v11329_v49  ;;  %v12873_v49 = vld [vmem:[%s13860_s16 + $0x4a8] ss:$48 sps:$4 sm:$0xff]   ;;  %v12878_v52 = vld [vmem:[%s13860_s16 + $0x50c] ss:$48 sps:$4 sm:$0xff]  }
 0x3f1   : > { %11379 = vmatpush3.bf16.msra.mxu1 %v14975_v4  ;;  %7501 = vmatprep.mubr.bf16.mxu1 %v11332_v23  ;;  %v12869_v23 = vld [vmem:[%s13860_s16 + $0x3ec] ss:$48 sps:$4 sm:$0xff]  }
 0x3f2   : > { %11380 = vmatprep.subr.bf16.mxu1 %v14977_v9  ;;  %6802 = vmatpush1.bf16.msra.mxu0 %v12858_v15  ;;  %v15025_v15 = vld [vmem:[#allocation2 + $0x130] sm:$0xff]  }
 0x3f3   : > { %6803 = vmatprep.subr.bf16.mxu0 %v12863_v46  ;;  %v15028_v46 = vld [vmem:[#allocation2 + $0x178] sm:$0xff]  }
 0x3f5   : > { %11381 = vmatpush3.bf16.msra.mxu1 %v14985_v24 }
 0x3f6   : > { %11382 = vmatprep.subr.bf16.mxu1 %v14988_v6  ;;  %6804 = vmatpush1.bf16.msra.mxu0 %v12861_v14  ;;  %v12876_v14 = vld [vmem:[%s13860_s16 + $0x508] ss:$48 sps:$4 sm:$0xff]  }
 0x3f7   : > { %6805 = vmatprep.subr.bf16.mxu0 %v12866_v20  ;;  %v12881_v20 = vld [vmem:[%s13860_s16 + $0x56c] ss:$48 sps:$4 sm:$0xff]  }
 0x3f9   : > { %11383 = vmatpush3.bf16.msra.mxu1 %v14993_v19 }
 0x3fa   : > { %11384 = vmatprep.subr.bf16.mxu1 %v14996_v13  ;;  %6806 = vmatpush1.bf16.msra.mxu0 %v12864_v22  ;;  %v15033_v22 = vld [vmem:[#allocation2 + $0x138] sm:$0xff]  }
 0x3fb   : > { %6807 = vmatprep.subr.bf16.mxu0 %v12869_v23  ;;  %v12879_v23 = vld [vmem:[%s13860_s16 + $0x568] ss:$48 sps:$4 sm:$0xff]  }
 0x3fd   : > { %11385 = vmatpush3.bf16.msra.mxu1 %v15001_v21 }
 0x3fe   : > { %11386 = vmatprep.subr.bf16.mxu1 %v15004_v29  ;;  %6808 = vmatpush1.bf16.msra.mxu0 %v12867_v28  ;;  %v12884_v28 = vld [vmem:[%s13860_s16 + $0x5cc] ss:$48 sps:$4 sm:$0xff]  }
 0x3ff   : > { %6809 = vmatprep.subr.bf16.mxu0 %v12872_v35  ;;  %v12882_v35 = vld [vmem:[%s13860_s16 + $0x5c8] ss:$48 sps:$4 sm:$0xff]  }
 0x401   : > { %11387 = vmatpush3.bf16.msra.mxu1 %v15009_v48 }
 0x402   : > { %11388 = vmatprep.subr.bf16.mxu1 %v15012_v11  ;;  %6810 = vmatpush1.bf16.msra.mxu0 %v12870_v51  ;;  %v15593_v51 = vpack.c.bf16 %v14823_v16, %v14813_v8  ;;  %v12893_v8 = vld [vmem:[%s13860_s16 + $0x6ec] ss:$48 sps:$4 sm:$0xff]   ;;  %v12891_v16 = vld [vmem:[%s13860_s16 + $0x6e8] ss:$48 sps:$4 sm:$0xff]  }
 0x403   : > { %6811 = vmatprep.subr.bf16.mxu0 %v12875_v30  ;;  %v12887_v30 = vld [vmem:[%s13860_s16 + $0x62c] ss:$48 sps:$4 sm:$0xff]  }
 0x405   : > { %11389 = vmatpush3.bf16.msra.mxu1 %v15017_v59 }
 0x406   : > { %11390 = vmatprep.subr.bf16.mxu1 %v15020_v10  ;;  %6812 = vmatpush1.bf16.msra.mxu0 %v12873_v49  ;;  %v12885_v49 = vld [vmem:[%s13860_s16 + $0x628] ss:$48 sps:$4 sm:$0xff]  }
 0x407   : > { %6813 = vmatprep.subr.bf16.mxu0 %v12878_v52  ;;  %v12890_v52 = vld [vmem:[%s13860_s16 + $0x68c] ss:$48 sps:$4 sm:$0xff]  }
 0x409   : > { %11391 = vmatpush3.bf16.msra.mxu1 %v15025_v15 }
 0x40a   : > { %11392 = vmatprep.subr.bf16.mxu1 %v15028_v46  ;;  %6814 = vmatpush1.bf16.msra.mxu0 %v12876_v14  ;;  %v12896_v14 = vld [vmem:[%s13860_s16 + $0x74c] ss:$48 sps:$4 sm:$0xff]  }
 0x40b   : > { %6815 = vmatprep.subr.bf16.mxu0 %v12881_v20 }
 0x40d   : > { %11393 = vmatpush3.bf16.msra.mxu1 %v15033_v22 }
 0x40e   : > { %11400 = vmatprep.subr.bf16.mxu1 %v14750_v34  ;;  %6816 = vmatpush1.bf16.msra.mxu0 %v12879_v23  ;;  %v12888_v34 = vld [vmem:[%s13860_s16 + $0x688] ss:$48 sps:$4 sm:$0xff]  }
 0x40f   : > { %6817 = vmatprep.subr.bf16.mxu0 %v12884_v28 }
 0x410   : > { %7502 = vmatmul.mubr.bf16.vlgmr.msra.gmra.mrb[24].mxu1 %v15593_v51  ;;  %v12908_v51 = vld [vmem:[%s13860_s16 + $0x8cc] ss:$48 sps:$4 sm:$0xff]  }
 0x412   : > { %6818 = vmatpush1.bf16.msra.mxu0 %v12882_v35 }
 0x413   : > { %6830 = vmatprep.subr.bf16.mxu0 %v12887_v30  ;;  %v12911_v30 = vld [vmem:[%s13860_s16 + $0x92c] ss:$48 sps:$4 sm:$0xff]  }
 0x415   : > { %6820 = vmatmul.mubr.bf16.vlgmr.msra.gmra.mrb[20].mxu0 %v14769_v47  ;;  %v12899_v47 = vld [vmem:[%s13860_s16 + $0x7ac] ss:$48 sps:$4 sm:$0xff]  }
 0x416   : > { %11401 = vmatpush3.bf16.xpose.msra.mxu1 %v14754_v39  ;;  %6831 = vmatpush1.bf16.msra.mxu0 %v12885_v49  ;;  %v12894_v39 = vld [vmem:[%s13860_s16 + $0x748] ss:$48 sps:$4 sm:$0xff]  }
 0x417   : > { %6862 = vmatprep.mubr.bf16.mxu0 %v14774_v50  ;;  %6832 = vmatprep.subr.bf16.mxu0 %v12890_v52  ;;  %v12897_v50 = vld [vmem:[%s13860_s16 + $0x7a8] ss:$48 sps:$4 sm:$0xff]   ;;  %v12914_v52 = vld [vmem:[%s13860_s16 + $0x98c] ss:$48 sps:$4 sm:$0xff]  }
 0x418   : > { %11402 = vmatprep.subr.bf16.mxu1 %v14757_v40  ;;  %v12902_v40 = vld [vmem:[%s13860_s16 + $0x80c] ss:$48 sps:$4 sm:$0xff]   ;;  %v12909_v49 = vld [vmem:[%s13860_s16 + $0x928] ss:$48 sps:$4 sm:$0xff]  }
 0x41a   : > { %6833 = vmatpush1.bf16.msra.mxu0 %v12888_v34  ;;  %v12912_v34 = vld [vmem:[%s13860_s16 + $0x988] ss:$48 sps:$4 sm:$0xff]  }
 0x41b   : > { %6834 = vmatprep.subr.bf16.mxu0 %v12893_v8  ;;  %v12920_v8 = vld [vmem:[%s13860_s16 + $0xa4c] ss:$48 sps:$4 sm:$0xff]  }
 0x41e   : > { %11403 = vmatpush3.bf16.xpose.msra.mxu1 %v14763_v44  ;;  %6835 = vmatpush1.bf16.msra.mxu0 %v12891_v16  ;;  %v12900_v44 = vld [vmem:[%s13860_s16 + $0x808] ss:$48 sps:$4 sm:$0xff]  }
 0x41f   : > { %11404 = vmatprep.subr.bf16.mxu1 %v14766_v45  ;;  %6836 = vmatprep.subr.bf16.mxu0 %v12896_v14  ;;  %v12905_v45 = vld [vmem:[%s13860_s16 + $0x86c] ss:$48 sps:$4 sm:$0xff]   ;;  %v12918_v16 = vld [vmem:[%s13860_s16 + $0xa48] ss:$48 sps:$4 sm:$0xff]  }
 0x420   : > { %v12921_v14 = vld [vmem:[%s13860_s16 + $0xaa8] ss:$48 sps:$4 sm:$0xff]  }
 0x422   : > { %6837 = vmatpush1.bf16.msra.mxu0 %v12894_v39 }
 0x423   : > { %6838 = vmatprep.subr.bf16.mxu0 %v12899_v47  ;;  %v12924_v47 = vld [vmem:[%s13860_s16 + $0xb08] ss:$48 sps:$4 sm:$0xff]  }
 0x426   : > { %11405 = vmatpush3.bf16.xpose.msra.mxu1 %v14779_v53  ;;  %6839 = vmatpush1.bf16.msra.mxu0 %v12897_v50  ;;  %v12903_v53 = vld [vmem:[%s13860_s16 + $0x868] ss:$48 sps:$4 sm:$0xff]  }
 0x427   : > { %11406 = vmatprep.subr.bf16.mxu1 %v14782_v54  ;;  %6840 = vmatprep.subr.bf16.mxu0 %v12902_v40  ;;  %v12906_v54 = vld [vmem:[%s13860_s16 + $0x8c8] ss:$48 sps:$4 sm:$0xff]  }
 0x428   : > { %v15062_v20 = vpop.f32.mrb[12].mxu1 }
 0x429   : > { %v15066_v23 = vpop.f32.mrb[13].mxu1 }
 0x42a   : > { %v15069_v28 = vpop.f32.mrb[14].mxu1  ;;  %6841 = vmatpush1.bf16.msra.mxu0 %v12900_v44 }
 0x42b   : > { %v15071_v35 = vpop.f32.mrb[15].mxu1  ;;  %6842 = vmatprep.subr.bf16.mxu0 %v12905_v45 }
 0x42e   : > { %11407 = vmatpush3.bf16.xpose.msra.mxu1 %v14787_v57  ;;  %6843 = vmatpush1.bf16.msra.mxu0 %v12903_v53  ;;  %v12917_v57 = vld [vmem:[%s13860_s16 + $0x9ec] ss:$48 sps:$4 sm:$0xff]  }
 0x42f   : > { %11408 = vmatprep.subr.bf16.mxu1 %v14790_v58  ;;  %6844 = vmatprep.subr.bf16.mxu0 %v12908_v51  ;;  %v12915_v58 = vld [vmem:[%s13860_s16 + $0x9e8] ss:$48 sps:$4 sm:$0xff]   ;;  %v12932_v53 = vld [vmem:[%s13860_s16 + $0xbcc] ss:$48 sps:$4 sm:$0xff]  }
 0x430   : > { %v12935_v51 = vld [vmem:[%s13860_s16 + $0xc2c] ss:$48 sps:$4 sm:$0xff]  }
 0x432   : > { %6845 = vmatpush1.bf16.msra.mxu0 %v12906_v54  ;;  %v12933_v54 = vld [vmem:[%s13860_s16 + $0xc28] ss:$48 sps:$4 sm:$0xff]  }
 0x433   : > { %6846 = vmatprep.subr.bf16.mxu0 %v12911_v30  ;;  %v12938_v30 = vld [vmem:[%s13860_s16 + $0xc8c] ss:$48 sps:$4 sm:$0xff]  }
 0x436   : > { %11409 = vmatpush3.bf16.xpose.msra.mxu1 %v14795_v62  ;;  %6847 = vmatpush1.bf16.msra.mxu0 %v12909_v49  ;;  %v12923_v62 = vld [vmem:[%s13860_s16 + $0xaac] ss:$48 sps:$4 sm:$0xff]   ;;  %v12939_v49 = vld [vmem:[%s13860_s16 + $0xce8] ss:$48 sps:$4 sm:$0xff]  }
 0x437   : > { %11410 = vmatprep.subr.bf16.mxu1 %v14799_v60  ;;  %6848 = vmatprep.subr.bf16.mxu0 %v12914_v52  ;;  %v12926_v60 = vld [vmem:[%s13860_s16 + $0xb0c] ss:$48 sps:$4 sm:$0xff]  }
 0x438   : > { %v12944_v52 = vld [vmem:[%s13860_s16 + $0xd4c] ss:$48 sps:$4 sm:$0xff]  }
 0x43a   : > { %6849 = vmatpush1.bf16.msra.mxu0 %v12912_v34  ;;  %v12942_v34 = vld [vmem:[%s13860_s16 + $0xd48] ss:$48 sps:$4 sm:$0xff]  }
 0x43b   : > { %6850 = vmatprep.subr.bf16.mxu0 %v12917_v57  ;;  %v12945_v57 = vld [vmem:[%s13860_s16 + $0xda8] ss:$48 sps:$4 sm:$0xff]  }
 0x43e   : > { %11411 = vmatpush3.bf16.xpose.msra.mxu1 %v14805_v25  ;;  %6851 = vmatpush1.bf16.msra.mxu0 %v12915_v58  ;;  %v12948_v58 = vld [vmem:[%s13860_s16 + $0xe08] ss:$48 sps:$4 sm:$0xff]  }
 0x43f   : > { %11412 = vmatprep.subr.bf16.mxu1 %v14809_v3  ;;  %6852 = vmatprep.subr.bf16.mxu0 %v12920_v8  ;;  %v12929_v3 = vld [vmem:[%s13860_s16 + $0xb6c] ss:$48 sps:$4 sm:$0xff]  }
 0x440   : > { %v12953_v8 = vld [vmem:[%s13860_s16 + $0xe6c] ss:$48 sps:$4 sm:$0xff]  }
 0x442   : > { %6853 = vmatpush1.bf16.msra.mxu0 %v12918_v16  ;;  %v12951_v16 = vld [vmem:[%s13860_s16 + $0xe68] ss:$48 sps:$4 sm:$0xff]  }
 0x443   : > { %6854 = vmatprep.subr.bf16.mxu0 %v12923_v62  ;;  %v12956_v62 = vld [vmem:[%s13860_s16 + $0xecc] ss:$48 sps:$4 sm:$0xff]  }
 0x446   : > { %11413 = vmatpush3.bf16.xpose.msra.mxu1 %v14821_v61  ;;  %6855 = vmatpush1.bf16.msra.mxu0 %v12921_v14  ;;  %v12927_v61 = vld [vmem:[%s13860_s16 + $0xb68] ss:$48 sps:$4 sm:$0xff]  }
 0x447   : > { %11414 = vmatprep.subr.bf16.mxu1 %v14826_v17  ;;  %6856 = vmatprep.subr.bf16.mxu0 %v12926_v60  ;;  %v12930_v17 = vld [vmem:[%s13860_s16 + $0xbc8] ss:$48 sps:$4 sm:$0xff]   ;;  %v12959_v60 = vld [vmem:[%s13860_s16 + $0xf2c] ss:$48 sps:$4 sm:$0xff]  }
 0x448   : > { %v11350_v39 = vpop.f32.mrb[16].mxu1  ;;  %v12954_v14 = vld [vmem:[%s13860_s16 + $0xec8] ss:$48 sps:$4 sm:$0xff]  }
 0x449   : > { %v11351_v25 = vpop.f32.mrb[17].mxu1 }
 0x44a   : > { %v15097_v50 = vadd.f32 %v11351_v25, %v11350_v39  ;;  %v11353_v40 = vpop.f32.mrb[18].mxu1  ;;  %6857 = vmatpush1.bf16.msra.mxu0 %v12924_v47  ;;  %v12957_v39 = vld [vmem:[%s13860_s16 + $0xf28] ss:$48 sps:$4 sm:$0xff]   ;;  %v12962_v47 = vld [vmem:[%s13860_s16 + $0xf8c] ss:$48 sps:$4 sm:$0xff]  }
 0x44b   : > { %v11354_v44 = vpop.f32.mrb[19].mxu1  ;;  %6858 = vmatprep.subr.bf16.mxu0 %v12929_v3  ;;  %v12960_v25 = vld [vmem:[%s13860_s16 + $0xf88] ss:$48 sps:$4 sm:$0xff]   ;;  %v12965_v3 = vld [vmem:[%s13860_s16 + $0xfec] ss:$48 sps:$4 sm:$0xff]  }
 0x44c   : > { %v15099_v45 = vadd.f32 %v11354_v44, %v11353_v40  ;;  %v12963_v40 = vld [vmem:[%s13860_s16 + $0xfe8] ss:$48 sps:$4 sm:$0xff]   ;;  %v12968_v44 = vld [vmem:[%s13860_s16 + $0x104c] ss:$48 sps:$4 sm:$0xff]  }
 0x44e   : > { %11415 = vmatpush3.bf16.xpose.msra.mxu1 %v14837_v26  ;;  %6859 = vmatpush1.bf16.msra.mxu0 %v12927_v61  ;;  %v12936_v26 = vld [vmem:[%s13860_s16 + $0xc88] ss:$48 sps:$4 sm:$0xff]  }
 0x44f   : > { %11418 = vmatprep.subr.bf16.mxu1 %v14840_v27  ;;  %6860 = vmatprep.subr.bf16.mxu0 %v12932_v53  ;;  %v12941_v27 = vld [vmem:[%s13860_s16 + $0xcec] ss:$48 sps:$4 sm:$0xff]   ;;  %v12966_v61 = vld [vmem:[%s13860_s16 + $0x1048] ss:$48 sps:$4 sm:$0xff]  }
 0x450   : > { %v12971_v53 = vld [vmem:[%s13860_s16 + $0x10ac] ss:$48 sps:$4 sm:$0xff]  }
 0x452   : > { %6861 = vmatpush1.bf16.msra.mxu0 %v12930_v17  ;;  %v12969_v17 = vld [vmem:[%s13860_s16 + $0x10a8] ss:$48 sps:$4 sm:$0xff]  }
 0x453   : > { %6873 = vmatprep.subr.bf16.mxu0 %v12935_v51  ;;  %v12974_v51 = vld [vmem:[%s13860_s16 + $0x110c] ss:$48 sps:$4 sm:$0xff]  }
 0x455   : > { %6863 = vmatmul.mubr.bf16.vlgmr.msra.gmra.mrb[20].mxu0 %v14916_v33  ;;  %v12947_v33 = vld [vmem:[%s13860_s16 + $0xdac] ss:$48 sps:$4 sm:$0xff]  }
 0x456   : > { %6874 = vmatpush1.bf16.msra.mxu0 %v12933_v54  ;;  %6905 = vmatprep.mubr.bf16.mxu0 %v14921_v42  ;;  %v12950_v42 = vld [vmem:[%s13860_s16 + $0xe0c] ss:$48 sps:$4 sm:$0xff]   ;;  %v12972_v54 = vld [vmem:[%s13860_s16 + $0x1108] ss:$48 sps:$4 sm:$0xff]  }
 0x457   : > { %6875 = vmatprep.subr.bf16.mxu0 %v12938_v30  ;;  %v12977_v30 = vld [vmem:[%s13860_s16 + $0x116c] ss:$48 sps:$4 sm:$0xff]  }
 0x45a   : > { %6876 = vmatpush1.bf16.msra.mxu0 %v12936_v26  ;;  %v12975_v26 = vld [vmem:[%s13860_s16 + $0x1168] ss:$48 sps:$4 sm:$0xff]  }
 0x45b   : > { %6877 = vmatprep.subr.bf16.mxu0 %v12941_v27  ;;  %v12980_v27 = vld [vmem:[%s13860_s16 + $0x11cc] ss:$48 sps:$4 sm:$0xff]  }
 0x45e   : > { %6878 = vmatpush1.bf16.msra.mxu0 %v12939_v49  ;;  %v12978_v49 = vld [vmem:[%s13860_s16 + $0x11c8] ss:$48 sps:$4 sm:$0xff]  }
 0x45f   : > { %6879 = vmatprep.subr.bf16.mxu0 %v12944_v52  ;;  %v13438_v52 = vld [vmem:[%s14044_s27 + $0x10] ss:$24 sps:$4 sm:$0xff]  }
 0x462   : > { %6880 = vmatpush1.bf16.msra.mxu0 %v12942_v34 }
 0x463   : > { %6881 = vmatprep.subr.bf16.mxu0 %v12947_v33 }
 0x466   : > { %6882 = vmatpush1.bf16.msra.mxu0 %v12945_v57 }
 0x467   : > { %6883 = vmatprep.subr.bf16.mxu0 %v12950_v42 }
 0x46a   : > { %6884 = vmatpush1.bf16.msra.mxu0 %v12948_v58 }
 0x46b   : > { %6885 = vmatprep.subr.bf16.mxu0 %v12953_v8 }
 0x46e   : > { %6886 = vmatpush1.bf16.msra.mxu0 %v12951_v16 }
 0x46f   : > { %6887 = vmatprep.subr.bf16.mxu0 %v12956_v62 }
 0x472   : > { %6888 = vmatpush1.bf16.msra.mxu0 %v12954_v14 }
 0x473   : > { %6889 = vmatprep.subr.bf16.mxu0 %v12959_v60 }
 0x476   : > { %6890 = vmatpush1.bf16.msra.mxu0 %v12957_v39  ;;  %v12986_v39 = vld [vmem:[%s13862_s12 + $0xc] ss:$24 sps:$4 sm:$0xff]  }
 0x477   : > { %6891 = vmatprep.subr.bf16.mxu0 %v12962_v47 }
 0x47a   : > { %6892 = vmatpush1.bf16.msra.mxu0 %v12960_v25 }
 0x47b   : > { %6893 = vmatprep.subr.bf16.mxu0 %v12965_v3 }
 0x47e   : > { %6894 = vmatpush1.bf16.msra.mxu0 %v12963_v40 }
 0x47f   : > { %6895 = vmatprep.subr.bf16.mxu0 %v12968_v44 }
 0x482   : > { %6896 = vmatpush1.bf16.msra.mxu0 %v12966_v61 }
 0x483   : > { %6897 = vmatprep.subr.bf16.mxu0 %v12971_v53 }
 0x486   : > { %6898 = vmatpush1.bf16.msra.mxu0 %v12969_v17 }
 0x487   : > { %6899 = vmatprep.subr.bf16.mxu0 %v12974_v51 }
 0x48a   : > { %6900 = vmatpush1.bf16.msra.mxu0 %v12972_v54 }
 0x48b   : > { %6901 = vmatprep.subr.bf16.mxu0 %v12977_v30 }
 0x48e   : > { %6902 = vmatpush1.bf16.msra.mxu0 %v12975_v26 }
 0x48f   : > { %6903 = vmatprep.subr.bf16.mxu0 %v12980_v27 }
 0x492   : > { %6904 = vmatpush1.bf16.msra.mxu0 %v12978_v49 }
 0x493   : > { %11436 = vmatprep.subr.bf16.mxu0 %v14907_v1 }
 0x495   : > { %6906 = vmatmul.mubr.bf16.vlgmr.msra.gmra.mrb[20].mxu0 %v13438_v52 }
 0x49b   : > { %11437 = vmatpush3.bf16.xpose.msra.mxu0 %v14975_v4 }
 0x49c   : > { %11438 = vmatprep.subr.bf16.mxu0 %v14977_v9 }
 0x4a3   : > { %11439 = vmatpush3.bf16.xpose.msra.mxu0 %v14985_v24 }
 0x4a4   : > { %11440 = vmatprep.subr.bf16.mxu0 %v14988_v6 }
 0x4a7   : > { %v15146_v34 = vpop.f32.mrb[16].mxu0 }
 0x4a8   : > { %v15148_v33 = vpop.f32.mrb[17].mxu0 }
 0x4a9   : > { %v15150_v57 = vpop.f32.mrb[18].mxu0 }
 0x4aa   : > { %v15152_v42 = vpop.f32.mrb[19].mxu0 }
 0x4ab   : > { %11441 = vmatpush3.bf16.xpose.msra.mxu0 %v14993_v19 }
 0x4ac   : > { %11442 = vmatprep.subr.bf16.mxu0 %v14996_v13 }
 0x4b3   : > { %11443 = vmatpush3.bf16.xpose.msra.mxu0 %v15001_v21 }
 0x4b4   : > { %11444 = vmatprep.subr.bf16.mxu0 %v15004_v29 }
 0x4bb   : > { %11445 = vmatpush3.bf16.xpose.msra.mxu0 %v15009_v48 }
 0x4bc   : > { %11446 = vmatprep.subr.bf16.mxu0 %v15012_v11 }
 0x4c3   : > { %v11372_v1 = vpop.f32.mrb[20].mxu1  ;;  %11447 = vmatpush3.bf16.xpose.msra.mxu0 %v15017_v59 }
 0x4c4   : > { %v11373_v4 = vpop.f32.mrb[21].mxu1  ;;  %11448 = vmatprep.subr.bf16.mxu0 %v15020_v10 }
 0x4c5   : > { %v11374_v9 = vadd.f32 %v11373_v4, %v11372_v1  ;;  %v11375_v24 = vpop.f32.mrb[22].mxu1 }
 0x4c6   : > { %v11376_v6 = vpop.f32.mrb[23].mxu1 }
 0x4c7   : > { %v7463_v19 = vadd.f32 %v11374_v9, %v15097_v50  ;;  %v11377_v13 = vadd.f32 %v11376_v6, %v11375_v24 }
 0x4c9   : > { %v7466_v21 = vadd.f32 %v11377_v13, %v15099_v45 }
 0x4cb   : > { %11449 = vmatpush3.bf16.xpose.msra.mxu0 %v15025_v15 }
 0x4cc   : > { %11450 = vmatprep.subr.bf16.mxu0 %v15028_v46 }
 0x4d3   : > { %11451 = vmatpush3.bf16.xpose.msra.mxu0 %v15033_v22 }
 0x4d4   : > { %9673 = vmatprep.subr.bf16.mxu0 %v12986_v39  ;;  %v13016_v39 = vld [vmem:[%s13862_s12 + $0xfc] ss:$24 sps:$4 sm:$0xff]  }
 0x4e3   : > { %v11394_v29 = vpop.f32.mrb[24].mxu1 }
 0x4e4   : > { %v11395_v48 = vpop.f32.mrb[25].mxu1 }
 0x4e5   : > { %v11396_v11 = vadd.f32 %v11395_v48, %v11394_v29  ;;  %v11397_v59 = vpop.f32.mrb[26].mxu1 }
 0x4e6   : > { %v11398_v58 = vpop.f32.mrb[27].mxu1 }
 0x4e7   : > { %v7504_v8 = vadd.f32 %v11396_v11, %v7463_v19  ;;  %v11399_v10 = vadd.f32 %v11398_v58, %v11397_v59 }
 0x4e9   : > { %v7510_v16 = vmul.f32 0.125, %v7504_v8  ;;  %v7507_v62 = vadd.f32 %v11399_v10, %v7466_v21  ;;  %v12984_v10 = vld [vmem:[%s13862_s12 + $0x8] ss:$24 sps:$4 sm:$0xff]  }
 0x4eb   : > { %v7512_v50 = vrot.slane %v7510_v16, 4  ;;  %v7511_v14 = vmul.f32 0.125, %v7507_v62  ;;  %v12990_v62 = vld [vmem:[%s13862_s12 + $0x38] ss:$24 sps:$4 sm:$0xff]  }
 0x4ed   : > { %v7513_v60 = vmax.f32 %v7510_v16, %v7512_v50  ;;  %v7518_v45 = vrot.slane %v7511_v14, 4  ;;  %v12998_v50 = vld [vmem:[%s13862_s12 + $0x6c] ss:$24 sps:$4 sm:$0xff]  }
 0x4ef   : > { %v7514_v15 = vrot.slane %v7513_v60, 2  ;;  %v7519_v47 = vmax.f32 %v7511_v14, %v7518_v45  ;;  %v13008_v45 = vld [vmem:[%s13862_s12 + $0xc8] ss:$24 sps:$4 sm:$0xff]  }
 0x4f1   : > { %v7515_v46 = vmax.f32 %v7513_v60, %v7514_v15  ;;  %v7520_v25 = vrot.slane %v7519_v47, 2  ;;  %v13004_v60 = vld [vmem:[%s13862_s12 + $0x9c] ss:$24 sps:$4 sm:$0xff]   ;;  %v13020_v15 = vld [vmem:[%s13862_s12 + $0x128] ss:$24 sps:$4 sm:$0xff]  }
 0x4f3   : > { %v7516_v22 = vrot.slane %v7515_v46, 1  ;;  %v7521_v3 = vmax.f32 %v7519_v47, %v7520_v25  ;;  %v13028_v47 = vld [vmem:[%s13862_s12 + $0x15c] ss:$24 sps:$4 sm:$0xff]  }
 0x4f4   : > { %v13040_v25 = vld [vmem:[%s13862_s12 + $0x1bc] ss:$24 sps:$4 sm:$0xff]  }
 0x4f5   : > { %v7517_v40 = vmax.f32 %v7515_v46, %v7516_v22  ;;  %v7522_v44 = vrot.slane %v7521_v3, 1  ;;  %v13026_v46 = vld [vmem:[%s13862_s12 + $0x158] ss:$24 sps:$4 sm:$0xff]  }
 0x4f6   : > { %v12987_v22 = vld [vmem:[%s13862_s12 + $0x30] ss:$24 sps:$4 sm:$0xff]  }
 0x4f7   : > { %v7524_v61 = vsub.f32 %v7510_v16, %v7517_v40  ;;  %v7523_v53 = vmax.f32 %v7521_v3, %v7522_v44  ;;  %v12992_v16 = vld [vmem:[%s13862_s12 + $0x3c] ss:$24 sps:$4 sm:$0xff]   ;;  %v12999_v44 = vld [vmem:[%s13862_s12 + $0x90] ss:$24 sps:$4 sm:$0xff]  }
 0x4f9   : > { %v7526_v17 = vmul.f32 1.442695, %v7524_v61  ;;  %v7525_v51 = vsub.f32 %v7511_v14, %v7523_v53  ;;  %v12996_v14 = vld [vmem:[%s13862_s12 + $0x68] ss:$24 sps:$4 sm:$0xff]   ;;  %v13007_v61 = vld [vmem:[%s13862_s12 + $0xc4] ss:$24 sps:$4 sm:$0xff]  }
 0x4fa   : > { %v13005_v53 = vld [vmem:[%s13862_s12 + $0xc0] ss:$24 sps:$4 sm:$0xff]  }
 0x4fb   : > { %13413 = vpow2.f32 %v7526_v17  ;;  %v7528_v54 = vmul.f32 1.442695, %v7525_v51  ;;  %v13013_v17 = vld [vmem:[%s13862_s12 + $0xf4] ss:$24 sps:$4 sm:$0xff]   ;;  %v13011_v51 = vld [vmem:[%s13862_s12 + $0xf0] ss:$24 sps:$4 sm:$0xff]  }
 0x4fd   : > { %13415 = vpow2.f32 %v7528_v54  ;;  %v13019_v54 = vld [vmem:[%s13862_s12 + $0x124] ss:$24 sps:$4 sm:$0xff]  }
 0x505   : > { %v13414_v30 = vpop.eup %13413 }
 0x506   : > { %v7530_v26 = vrot.slane %v13414_v30, 4 }
 0x507   : > { %v13416_v27 = vpop.eup %13415 }
 0x508   : > { %v7531_v49 = vadd.f32 %v13414_v30, %v7530_v26  ;;  %v7536_v52 = vrot.slane %v13416_v27, 4  ;;  %v13044_v26 = vld [vmem:[%s13862_s12 + $0x1e8] ss:$24 sps:$4 sm:$0xff]  }
 0x50a   : > { %v7537_v1 = vadd.f32 %v13416_v27, %v7536_v52  ;;  %v7532_v4 = vrot.slane %v7531_v49, 2  ;;  %v13052_v52 = vld [vmem:[%s13862_s12 + $0x21c] ss:$24 sps:$4 sm:$0xff]  }
 0x50c   : > { %v7533_v9 = vadd.f32 %v7532_v4, %v7531_v49  ;;  %v7538_v24 = vrot.slane %v7537_v1, 2  ;;  %v13025_v49 = vld [vmem:[%s13862_s12 + $0x154] ss:$24 sps:$4 sm:$0xff]   ;;  %v13023_v4 = vld [vmem:[%s13862_s12 + $0x150] ss:$24 sps:$4 sm:$0xff]  }
 0x50e   : > { %v7534_v6 = vrot.slane %v7533_v9, 1  ;;  %v7539_v19 = vadd.f32 %v7538_v24, %v7537_v1  ;;  %v13050_v1 = vld [vmem:[%s13862_s12 + $0x218] ss:$24 sps:$4 sm:$0xff]   ;;  %v13058_v24 = vld [vmem:[%s13862_s12 + $0x24c] ss:$24 sps:$4 sm:$0xff]  }
 0x510   : > { %v7535_v13 = vadd.f32 %v7534_v6, %v7533_v9  ;;  %v7540_v21 = vrot.slane %v7539_v19, 1  ;;  %v13031_v9 = vld [vmem:[%s13862_s12 + $0x184] ss:$24 sps:$4 sm:$0xff]   ;;  %v13056_v6 = vld [vmem:[%s13862_s12 + $0x248] ss:$24 sps:$4 sm:$0xff]  }
 0x512   : > { %v7541_v29 = vadd.f32 %v7540_v21, %v7539_v19  ;;  %13417 = vrcp.f32 %v7535_v13  ;;  %v13029_v19 = vld [vmem:[%s13862_s12 + $0x180] ss:$24 sps:$4 sm:$0xff]   ;;  %v13037_v13 = vld [vmem:[%s13862_s12 + $0x1b4] ss:$24 sps:$4 sm:$0xff]  }
 0x513   : > { %v13064_v21 = vld [vmem:[%s13862_s12 + $0x27c] ss:$24 sps:$4 sm:$0xff]  }
 0x514   : > { %13419 = vrcp.f32 %v7541_v29  ;;  %v13062_v29 = vld [vmem:[%s13862_s12 + $0x278] ss:$24 sps:$4 sm:$0xff]  }
 0x51c   : > { %v13418_v48 = vpop.eup %13417 }
 0x51d   : > { %v7544_v59 = vmul.f32 %v13418_v48, %v13414_v30  ;;  %v13046_v30 = vld [vmem:[%s13862_s12 + $0x1ec] ss:$24 sps:$4 sm:$0xff]   ;;  %v13035_v48 = vld [vmem:[%s13862_s12 + $0x1b0] ss:$24 sps:$4 sm:$0xff]  }
 0x51e   : > { %v13420_v11 = vpop.eup %13419 }
 0x51f   : > { %v7545_v58 = vmul.f32 %v13420_v11, %v13416_v27  ;;  %v13017_v27 = vld [vmem:[%s13862_s12 + $0x120] ss:$24 sps:$4 sm:$0xff]   ;;  %v13043_v11 = vld [vmem:[%s13862_s12 + $0x1e4] ss:$24 sps:$4 sm:$0xff]  }
 0x521   : > { %v11333_v8 = vpack.c.bf16 %v7545_v58, %v7544_v59  ;;  %v13070_v59 = vld [vmem:[%s13862_s12 + $0x2ac] ss:$24 sps:$4 sm:$0xff]   ;;  %v13068_v58 = vld [vmem:[%s13862_s12 + $0x2a8] ss:$24 sps:$4 sm:$0xff]  }
 0x523   : > { %11416 = vmatprep.mubr.bf16.mxu1 %v11333_v8  ;;  %11452 = vmatprep.mubr.bf16.mxu0 %v11333_v8 }
 0x524   : > { %11417 = vmatmul.mubr.bf16.vlgmr.msra.gmra.mrb[28].mxu1 %v11333_v8  ;;  %11453 = vmatmul.mubr.bf16.vlgmr.msra.gmra.mrb[24].mxu0 %v11333_v8 }
 0x525   : > { %11419 = vmatpush3.bf16.xpose.msra.mxu1 %v14845_v31  ;;  %11434 = vmatprep.mubr.bf16.mxu1 %v11333_v8  ;;  %v13002_v31 = vld [vmem:[%s13862_s12 + $0x98] ss:$24 sps:$4 sm:$0xff]  }
 0x526   : > { %11420 = vmatprep.subr.bf16.mxu1 %v14848_v32  ;;  %9674 = vmatpush1.bf16.msra.mxu0 %v12984_v10  ;;  %v13010_v32 = vld [vmem:[%s13862_s12 + $0xcc] ss:$24 sps:$4 sm:$0xff]  }
 0x527   : > { %9675 = vmatprep.subr.bf16.mxu0 %v12992_v16  ;;  %v13049_v10 = vld [vmem:[%s13862_s12 + $0x214] ss:$24 sps:$4 sm:$0xff]   ;;  %v13074_v16 = vld [vmem:[%s13862_s12 + $0x2d8] ss:$24 sps:$4 sm:$0xff]  }
 0x52a   : > { %9676 = vmatpush1.bf16.msra.mxu0 %v12990_v62  ;;  %v13076_v62 = vld [vmem:[%s13862_s12 + $0x2dc] ss:$24 sps:$4 sm:$0xff]  }
 0x52b   : > { %9677 = vmatprep.subr.bf16.mxu0 %v12998_v50  ;;  %v13047_v50 = vld [vmem:[%s13862_s12 + $0x210] ss:$24 sps:$4 sm:$0xff]  }
 0x52d   : > { %11421 = vmatpush3.bf16.xpose.msra.mxu1 %v14856_v38  ;;  %v13014_v38 = vld [vmem:[%s13862_s12 + $0xf8] ss:$24 sps:$4 sm:$0xff]  }
 0x52e   : > { %11422 = vmatprep.subr.bf16.mxu1 %v14859_v41  ;;  %9678 = vmatpush1.bf16.msra.mxu0 %v12996_v14  ;;  %v13022_v41 = vld [vmem:[%s13862_s12 + $0x12c] ss:$24 sps:$4 sm:$0xff]  }
 0x52f   : > { %9679 = vmatprep.subr.bf16.mxu0 %v13004_v60  ;;  %v13055_v14 = vld [vmem:[%s13862_s12 + $0x244] ss:$24 sps:$4 sm:$0xff]  }
 0x530   : > { %v13082_v60 = vld [vmem:[%s13862_s12 + $0x30c] ss:$24 sps:$4 sm:$0xff]  }
 0x532   : > { %9680 = vmatpush1.bf16.msra.mxu0 %v13002_v31  ;;  %v13053_v31 = vld [vmem:[%s13862_s12 + $0x240] ss:$24 sps:$4 sm:$0xff]  }
 0x533   : > { %9681 = vmatprep.subr.bf16.mxu0 %v13010_v32  ;;  %v13061_v32 = vld [vmem:[%s13862_s12 + $0x274] ss:$24 sps:$4 sm:$0xff]  }
 0x535   : > { %11423 = vmatpush3.bf16.xpose.msra.mxu1 %v14864_v5  ;;  %v13034_v5 = vld [vmem:[%s13862_s12 + $0x18c] ss:$24 sps:$4 sm:$0xff]  }
 0x536   : > { %11424 = vmatprep.subr.bf16.mxu1 %v14867_v7  ;;  %9682 = vmatpush1.bf16.msra.mxu0 %v13008_v45  ;;  %v13032_v7 = vld [vmem:[%s13862_s12 + $0x188] ss:$24 sps:$4 sm:$0xff]  }
 0x537   : > { %9683 = vmatprep.subr.bf16.mxu0 %v13016_v39  ;;  %v13059_v45 = vld [vmem:[%s13862_s12 + $0x270] ss:$24 sps:$4 sm:$0xff]   ;;  %v13067_v39 = vld [vmem:[%s13862_s12 + $0x2a4] ss:$24 sps:$4 sm:$0xff]  }
 0x53a   : > { %9684 = vmatpush1.bf16.msra.mxu0 %v13014_v38  ;;  %v13065_v38 = vld [vmem:[%s13862_s12 + $0x2a0] ss:$24 sps:$4 sm:$0xff]  }
 0x53b   : > { %9685 = vmatprep.subr.bf16.mxu0 %v13022_v41  ;;  %v13073_v41 = vld [vmem:[%s13862_s12 + $0x2d4] ss:$24 sps:$4 sm:$0xff]  }
 0x53d   : > { %11425 = vmatpush3.bf16.xpose.msra.mxu1 %v14872_v55  ;;  %v13038_v55 = vld [vmem:[%s13862_s12 + $0x1b8] ss:$24 sps:$4 sm:$0xff]  }
 0x53e   : > { %11426 = vmatprep.subr.bf16.mxu1 %v14875_v56  ;;  %9686 = vmatpush1.bf16.msra.mxu0 %v13020_v15  ;;  %v12983_v56 = vld [vmem:[%s13862_s12 + $0x4] ss:$24 sps:$4 sm:$0xff]   ;;  %v13071_v15 = vld [vmem:[%s13862_s12 + $0x2d0] ss:$24 sps:$4 sm:$0xff]  }
 0x53f   : > { %9687 = vmatprep.subr.bf16.mxu0 %v13028_v47  ;;  %v13079_v47 = vld [vmem:[%s13862_s12 + $0x304] ss:$24 sps:$4 sm:$0xff]  }
 0x542   : > { %9688 = vmatpush1.bf16.msra.mxu0 %v13026_v46 }
 0x543   : > { %9689 = vmatprep.subr.bf16.mxu0 %v13034_v5 }
 0x545   : > { %11427 = vmatpush3.bf16.xpose.msra.mxu1 %v14880_v63  ;;  %v12981_v63 = vld [vmem:[%s13862_s12] ss:$24 sps:$4 sm:$0xff]  }
 0x546   : > { %11428 = vmatprep.subr.bf16.mxu1 %v14883_v37  ;;  %9690 = vmatpush1.bf16.msra.mxu0 %v13032_v7  ;;  %v12989_v37 = vld [vmem:[%s13862_s12 + $0x34] ss:$24 sps:$4 sm:$0xff]  }
 0x547   : > { %9691 = vmatprep.subr.bf16.mxu0 %v13040_v25 }
 0x54a   : > { %9692 = vmatpush1.bf16.msra.mxu0 %v13038_v55 }
 0x54b   : > { %9693 = vmatprep.subr.bf16.mxu0 %v13046_v30 }
 0x54d   : > { %11429 = vmatpush3.bf16.xpose.msra.mxu1 %v14888_v36  ;;  %v12995_v36 = vld [vmem:[%s13862_s12 + $0x64] ss:$24 sps:$4 sm:$0xff]  }
 0x54e   : > { %11430 = vmatprep.subr.bf16.mxu1 %v14891_v12  ;;  %9694 = vmatpush1.bf16.msra.mxu0 %v13044_v26 }
 0x54f   : > { %9695 = vmatprep.subr.bf16.mxu0 %v13052_v52 }
 0x552   : > { %9696 = vmatpush1.bf16.msra.mxu0 %v13050_v1 }
 0x553   : > { %9697 = vmatprep.subr.bf16.mxu0 %v13058_v24 }
 0x555   : > { %11431 = vmatpush3.bf16.xpose.msra.mxu1 %v14896_v2  ;;  %v12993_v2 = vld [vmem:[%s13862_s12 + $0x60] ss:$24 sps:$4 sm:$0xff]  }
 0x556   : > { %11432 = vmatprep.subr.bf16.mxu1 %v14899_v0  ;;  %9698 = vmatpush1.bf16.msra.mxu0 %v13056_v6 }
 0x557   : > { %9699 = vmatprep.subr.bf16.mxu0 %v13064_v21 }
 0x55a   : > { %9700 = vmatpush1.bf16.msra.mxu0 %v13062_v29 }
 0x55b   : > { %9701 = vmatprep.subr.bf16.mxu0 %v13070_v59 }
 0x55d   : > { %11433 = vmatpush3.bf16.xpose.msra.mxu1 %v14904_v18  ;;  %v13001_v18 = vld [vmem:[%s13862_s12 + $0x94] ss:$24 sps:$4 sm:$0xff]  }
 0x55e   : > { %9550 = vmatprep.subr.bf16.mxu1 %v12983_v56  ;;  %9702 = vmatpush1.bf16.msra.mxu0 %v13068_v58 }
 0x55f   : > { %9703 = vmatprep.subr.bf16.mxu0 %v13076_v62 }
 0x562   : > { %9704 = vmatpush1.bf16.msra.mxu0 %v13074_v16 }
 0x563   : > { %9714 = vmatprep.subr.bf16.mxu0 %v13082_v60 }
 0x564   : > { %11435 = vmatmul.mubr.bf16.vlgmr.msra.gmra.mrb[32].mxu1 %v11333_v8  ;;  %v13041_v8 = vld [vmem:[%s13862_s12 + $0x1e0] ss:$24 sps:$4 sm:$0xff]  }
 0x565   : > { %9551 = vmatpush1.bf16.msra.mxu1 %v12981_v63 }
 0x566   : > { %9552 = vmatprep.subr.bf16.mxu1 %v12989_v37 }
 0x568   : > { %v15207_v12 = vpop.f32.mrb[20].mxu0 }
 0x569   : > { %9553 = vmatpush1.bf16.msra.mxu1 %v12987_v22  ;;  %v15210_v0 = vpop.f32.mrb[21].mxu0 }
 0x56a   : > { %9554 = vmatprep.subr.bf16.mxu1 %v12995_v36  ;;  %v15213_v3 = vpop.f32.mrb[22].mxu0 }
 0x56b   : > { %v15215_v40 = vpop.f32.mrb[23].mxu0 }
 0x56d   : > { %9555 = vmatpush1.bf16.msra.mxu1 %v12993_v2 }
 0x56e   : > { %9556 = vmatprep.subr.bf16.mxu1 %v13001_v18 }
 0x571   : > { %9557 = vmatpush1.bf16.msra.mxu1 %v12999_v44 }
 0x572   : > { %9558 = vmatprep.subr.bf16.mxu1 %v13007_v61 }
 0x575   : > { %9559 = vmatpush1.bf16.msra.mxu1 %v13005_v53 }
 0x576   : > { %9560 = vmatprep.subr.bf16.mxu1 %v13013_v17 }
 0x579   : > { %9561 = vmatpush1.bf16.msra.mxu1 %v13011_v51 }
 0x57a   : > { %9562 = vmatprep.subr.bf16.mxu1 %v13019_v54 }
 0x57d   : > { %9563 = vmatpush1.bf16.msra.mxu1 %v13017_v27 }
 0x57e   : > { %9564 = vmatprep.subr.bf16.mxu1 %v13025_v49 }
 0x581   : > { %9565 = vmatpush1.bf16.msra.mxu1 %v13023_v4 }
 0x582   : > { %9566 = vmatprep.subr.bf16.mxu1 %v13031_v9 }
 0x585   : > { %9567 = vmatpush1.bf16.msra.mxu1 %v13029_v19 }
 0x586   : > { %9568 = vmatprep.subr.bf16.mxu1 %v13037_v13 }
 0x589   : > { %9569 = vmatpush1.bf16.msra.mxu1 %v13035_v48 }
 0x58a   : > { %9570 = vmatprep.subr.bf16.mxu1 %v13043_v11 }
 0x58d   : > { %9571 = vmatpush1.bf16.msra.mxu1 %v13041_v8 }
 0x58e   : > { %9572 = vmatprep.subr.bf16.mxu1 %v13049_v10 }
 0x591   : > { %9573 = vmatpush1.bf16.msra.mxu1 %v13047_v50 }
 0x592   : > { %9574 = vmatprep.subr.bf16.mxu1 %v13055_v14 }
 0x595   : > { %9575 = vmatpush1.bf16.msra.mxu1 %v13053_v31 }
 0x596   : > { %9576 = vmatprep.subr.bf16.mxu1 %v13061_v32 }
 0x599   : > { %9577 = vmatpush1.bf16.msra.mxu1 %v13059_v45 }
 0x59a   : > { %9578 = vmatprep.subr.bf16.mxu1 %v13067_v39 }
 0x59d   : > { %9579 = vmatpush1.bf16.msra.mxu1 %v13065_v38 }
 0x59e   : > { %9580 = vmatprep.subr.bf16.mxu1 %v13073_v41 }
 0x5a1   : > { %9581 = vmatpush1.bf16.msra.mxu1 %v13071_v15 }
 0x5a2   : > { %9591 = vmatprep.subr.bf16.mxu1 %v13079_v47 }
 0x5f7   : > { %v7588_v46 = vpop.f32.mrb[28].mxu1  ;;  %v7674_v5 = vpop.f32.mrb[24].mxu0 }
 0x5f8   : > { %v7683_v7 = vmul.f32 %v7588_v46, %v15146_v34  ;;  %v7687_v25 = vmul.f32 %v7674_v5, %v15207_v12  ;;  %v7590_v55 = vpop.f32.mrb[29].mxu1  ;;  %v7676_v56 = vpop.f32.mrb[25].mxu0 }
 0x5f9   : > { %v7684_v63 = vmul.f32 %v7590_v55, %v15148_v33  ;;  %v7688_v37 = vmul.f32 %v7676_v56, %v15210_v0  ;;  %v7592_v22 = vpop.f32.mrb[30].mxu1  ;;  %v7678_v36 = vpop.f32.mrb[26].mxu0 }
 0x5fa   : > { %v7695_v2 = vrot.slane %v7683_v7, 4  ;;  %v7719_v18 = vrot.slane %v7687_v25, 4  ;;  %v7689_v44 = vmul.f32 %v7592_v22, %v15150_v57  ;;  %v7693_v61 = vmul.f32 %v7678_v36, %v15213_v3  ;;  %v7594_v53 = vpop.f32.mrb[31].mxu1  ;;  %v7680_v17 = vpop.f32.mrb[27].mxu0 }
 0x5fb   : > { %v7701_v51 = vrot.slane %v7684_v63, 4  ;;  %v7725_v34 = vrot.slane %v7688_v37, 4  ;;  %v7690_v12 = vmul.f32 %v7594_v53, %v15152_v42  ;;  %v7694_v54 = vmul.f32 %v7680_v17, %v15215_v40 }
 0x5fc   : > { %v7696_v30 = vadd.f32 %v7695_v2, %v7683_v7  ;;  %v7720_v33 = vadd.f32 %v7719_v18, %v7687_v25  ;;  %v7731_v26 = vrot.slane %v7689_v44, 4  ;;  %v7755_v0 = vrot.slane %v7693_v61, 4 }
 0x5fd   : > { %v7702_v27 = vadd.f32 %v7701_v51, %v7684_v63  ;;  %v7726_v49 = vadd.f32 %v7725_v34, %v7688_v37  ;;  %v7737_v52 = vrot.slane %v7690_v12, 4  ;;  %v7761_v1 = vrot.slane %v7694_v54, 4 }
 0x5fe   : > { %v7697_v4 = vrot.slane %v7696_v30, 2  ;;  %v7721_v57 = vrot.slane %v7720_v33, 2  ;;  %v7732_v9 = vadd.f32 %v7731_v26, %v7689_v44  ;;  %v7756_v3 = vadd.f32 %v7755_v0, %v7693_v61 }
 0x5ff   : > { %v7703_v24 = vrot.slane %v7702_v27, 2  ;;  %v7727_v6 = vrot.slane %v7726_v49, 2  ;;  %v7738_v19 = vadd.f32 %v7737_v52, %v7690_v12  ;;  %v7762_v13 = vadd.f32 %v7761_v1, %v7694_v54  ;;  %v13077_v52 = vld [vmem:[%s13862_s12 + $0x300] ss:$24 sps:$4 sm:$0xff]  }
 0x600   : > { %v7698_v21 = vadd.f32 %v7697_v4, %v7696_v30  ;;  %v7722_v42 = vadd.f32 %v7721_v57, %v7720_v33  ;;  %v7733_v29 = vrot.slane %v7732_v9, 2  ;;  %v7757_v40 = vrot.slane %v7756_v3, 2  ;;  %v13080_v1 = vld [vmem:[%s13862_s12 + $0x308] ss:$24 sps:$4 sm:$0xff]   ;;  %v13085_v57 = vld [vmem:[%s13862_s12 + $0x334] ss:$24 sps:$4 sm:$0xff]  }
 0x601   : > { %v7704_v48 = vadd.f32 %v7703_v24, %v7702_v27  ;;  %v7728_v11 = vadd.f32 %v7727_v6, %v7726_v49  ;;  %v7739_v59 = vrot.slane %v7738_v19, 2  ;;  %v7763_v58 = vrot.slane %v7762_v13, 2  ;;  %v13086_v24 = vld [vmem:[%s13862_s12 + $0x338] ss:$24 sps:$4 sm:$0xff]   ;;  %v13091_v6 = vld [vmem:[%s13862_s12 + $0x364] ss:$24 sps:$4 sm:$0xff]  }
 0x602   : > { %v7699_v8 = vrot.slane %v7698_v21, 1  ;;  %v7723_v10 = vrot.slane %v7722_v42, 1  ;;  %v7734_v16 = vadd.f32 %v7733_v29, %v7732_v9  ;;  %v7758_v62 = vadd.f32 %v7757_v40, %v7756_v3  ;;  %v13088_v9 = vld [vmem:[%s13862_s12 + $0x33c] ss:$24 sps:$4 sm:$0xff]   ;;  %v13083_v3 = vld [vmem:[%s13862_s12 + $0x330] ss:$24 sps:$4 sm:$0xff]  }
 0x603   : > { %v7705_v50 = vrot.slane %v7704_v48, 1  ;;  %v7729_v14 = vrot.slane %v7728_v11, 1  ;;  %v7740_v60 = vadd.f32 %v7739_v59, %v7738_v19  ;;  %v7764_v31 = vadd.f32 %v7763_v58, %v7762_v13  ;;  %v13094_v19 = vld [vmem:[%s13862_s12 + $0x36c] ss:$24 sps:$4 sm:$0xff]   ;;  %v13089_v13 = vld [vmem:[%s13862_s12 + $0x360] ss:$24 sps:$4 sm:$0xff]  }
 0x604   : > { %v7700_v32 = vadd.f32 %v7699_v8, %v7698_v21  ;;  %v7724_v45 = vadd.f32 %v7723_v10, %v7722_v42  ;;  %v7735_v39 = vrot.slane %v7734_v16, 1  ;;  %v7759_v38 = vrot.slane %v7758_v62, 1  ;;  %v13092_v21 = vld [vmem:[%s13862_s12 + $0x368] ss:$24 sps:$4 sm:$0xff]   ;;  %v13097_v42 = vld [vmem:[%s13862_s12 + $0x394] ss:$24 sps:$4 sm:$0xff]  }
 0x605   : > { %v7706_v41 = vadd.f32 %v7705_v50, %v7704_v48  ;;  %v7730_v15 = vadd.f32 %v7729_v14, %v7728_v11  ;;  %v7741_v47 = vrot.slane %v7740_v60, 1  ;;  %v7765_v46 = vrot.slane %v7764_v31, 1  ;;  %v13100_v29 = vld [vmem:[%s13862_s12 + $0x39c] ss:$24 sps:$4 sm:$0xff]   ;;  %v13095_v40 = vld [vmem:[%s13862_s12 + $0x390] ss:$24 sps:$4 sm:$0xff]  }
 0x606   : > { %v7767_v5 = vpack.c.bf16 %v7700_v32, %v7700_v32  ;;  %v7771_v7 = vpack.c.bf16 %v7724_v45, %v7724_v45  ;;  %v7736_v25 = vadd.f32 %v7735_v39, %v7734_v16  ;;  %v7760_v55 = vadd.f32 %v7759_v38, %v7758_v62  ;;  %v13098_v48 = vld [vmem:[%s13862_s12 + $0x398] ss:$24 sps:$4 sm:$0xff]   ;;  %v13103_v11 = vld [vmem:[%s13862_s12 + $0x3c4] ss:$24 sps:$4 sm:$0xff]   ;;  %v13104_v8 = vld [vmem:[%s13862_s12 + $0x3c8] ss:$24 sps:$4 sm:$0xff]  }
 0x607   : > { %v7768_v56 = vpack.c.bf16 %v7706_v41, %v7706_v41  ;;  %v7772_v63 = vpack.c.bf16 %v7730_v15, %v7730_v15  ;;  %v7742_v37 = vadd.f32 %v7741_v47, %v7740_v60  ;;  %v7766_v22 = vadd.f32 %v7765_v46, %v7764_v31  ;;  %v13106_v59 = vld [vmem:[%s13862_s12 + $0x3cc] ss:$24 sps:$4 sm:$0xff]   ;;  %v13101_v58 = vld [vmem:[%s13862_s12 + $0x3c0] ss:$24 sps:$4 sm:$0xff]   ;;  %v13112_v16 = vld [vmem:[%s13862_s12 + $0x3fc] ss:$24 sps:$4 sm:$0xff]  }
 0x608   : > { %v7773_v36 = vpack.c.bf16 %v7736_v25, %v7736_v25  ;;  %v7777_v2 = vpack.c.bf16 %v7760_v55, %v7760_v55  ;;  %v8079_v61 = vunpack.c.l.b16 %v7767_v5  ;;  %v8083_v53 = vunpack.c.l.b16 %v7771_v7  ;;  %v13109_v10 = vld [vmem:[%s13862_s12 + $0x3f4] ss:$24 sps:$4 sm:$0xff]   ;;  %v13107_v62 = vld [vmem:[%s13862_s12 + $0x3f0] ss:$24 sps:$4 sm:$0xff]   ;;  %v13115_v14 = vld [vmem:[%s13862_s12 + $0x424] ss:$24 sps:$4 sm:$0xff]  }
 0x609   : > { %v7774_v18 = vpack.c.bf16 %v7742_v37, %v7742_v37  ;;  %v7778_v44 = vpack.c.bf16 %v7766_v22, %v7766_v22  ;;  %v8080_v34 = vunpack.c.l.b16 %v7768_v56  ;;  %v8084_v12 = vunpack.c.l.b16 %v7772_v63  ;;  %v13110_v50 = vld [vmem:[%s13862_s12 + $0x3f8] ss:$24 sps:$4 sm:$0xff]   ;;  %v13118_v60 = vld [vmem:[%s13862_s12 + $0x42c] ss:$24 sps:$4 sm:$0xff]   ;;  %v13116_v32 = vld [vmem:[%s13862_s12 + $0x428] ss:$24 sps:$4 sm:$0xff]  }
 0x60a   : > { %v8085_v17 = vunpack.c.l.b16 %v7773_v36  ;;  %v8089_v51 = vunpack.c.l.b16 %v7777_v2  ;;  %v13113_v31 = vld [vmem:[%s13862_s12 + $0x420] ss:$24 sps:$4 sm:$0xff]   ;;  %v13121_v45 = vld [vmem:[%s13862_s12 + $0x454] ss:$24 sps:$4 sm:$0xff]   ;;  %v13119_v38 = vld [vmem:[%s13862_s12 + $0x450] ss:$24 sps:$4 sm:$0xff]  }
 0x60b   : > { %v8086_v54 = vunpack.c.l.b16 %v7774_v18  ;;  %v8090_v30 = vunpack.c.l.b16 %v7778_v44  ;;  %v13124_v39 = vld [vmem:[%s13862_s12 + $0x45c] ss:$24 sps:$4 sm:$0xff]   ;;  %v13122_v41 = vld [vmem:[%s13862_s12 + $0x458] ss:$24 sps:$4 sm:$0xff]   ;;  %v13130_v47 = vld [vmem:[%s13862_s12 + $0x48c] ss:$24 sps:$4 sm:$0xff]  }
 0x60c   : > { %v8092_v33 = vsel %vm8091_vm0, %v8085_v17, %v8079_v61  ;;  %v15266_v26 = vsel %vm8091_vm0, %v8089_v51, %v8083_v53  ;;  %v13127_v15 = vld [vmem:[%s13862_s12 + $0x484] ss:$24 sps:$4 sm:$0xff]   ;;  %v13125_v46 = vld [vmem:[%s13862_s12 + $0x480] ss:$24 sps:$4 sm:$0xff]   ;;  %v13133_v7 = vld [vmem:[%s13862_s12 + $0x4b4] ss:$24 sps:$4 sm:$0xff]  }
 0x60d   : > { %v8093_v0 = vsel %vm8091_vm0, %v8086_v54, %v8080_v34  ;;  %v15270_v27 = vsel %vm8091_vm0, %v8090_v30, %v8084_v12  ;;  %v15276_v4 = vpack.c.b16 %v8092_v33, %v8092_v33  ;;  %v13128_v5 = vld [vmem:[%s13862_s12 + $0x488] ss:$24 sps:$4 sm:$0xff]   ;;  %v13136_v25 = vld [vmem:[%s13862_s12 + $0x4bc] ss:$24 sps:$4 sm:$0xff]   ;;  %v13134_v56 = vld [vmem:[%s13862_s12 + $0x4b8] ss:$24 sps:$4 sm:$0xff]  }
 0x60e   : > { %v15272_v49 = vpack.c.b16 %v8093_v0, %v8093_v0  ;;  %v13131_v55 = vld [vmem:[%s13862_s12 + $0x4b0] ss:$24 sps:$4 sm:$0xff]   ;;  %v13139_v63 = vld [vmem:[%s13862_s12 + $0x4e4] ss:$24 sps:$4 sm:$0xff]   ;;  %v13137_v22 = vld [vmem:[%s13862_s12 + $0x4e0] ss:$24 sps:$4 sm:$0xff]  }
 0x60f   : > { %v13142_v37 = vld [vmem:[%s13862_s12 + $0x4ec] ss:$24 sps:$4 sm:$0xff]   ;;  %v13140_v36 = vld [vmem:[%s13862_s12 + $0x4e8] ss:$24 sps:$4 sm:$0xff]   ;;  %v13148_v44 = vld [vmem:[%s13862_s12 + $0x51c] ss:$24 sps:$4 sm:$0xff]  }
 0x610   : > { %9582 = vmatprep.mubr.bf16.mxu1 %v15272_v49  ;;  %9705 = vmatprep.mubr.bf16.mxu0 %v15272_v49  ;;  %v13145_v18 = vld [vmem:[%s13862_s12 + $0x514] ss:$24 sps:$4 sm:$0xff]   ;;  %v13143_v30 = vld [vmem:[%s13862_s12 + $0x510] ss:$24 sps:$4 sm:$0xff]  }
 0x611   : > { %9583 = vmatmul.mubr.bf16.vlgmr.msra.gmra.mrb[36].mxu1 %v15276_v4  ;;  %9706 = vmatmul.mubr.bf16.vlgmr.msra.gmra.mrb[28].mxu0 %v15276_v4  ;;  %v13146_v33 = vld [vmem:[%s13862_s12 + $0x518] ss:$24 sps:$4 sm:$0xff]  }
 0x612   : > { %9592 = vmatpush1.bf16.msra.mxu1 %v13077_v52  ;;  %9715 = vmatpush1.bf16.msra.mxu0 %v13080_v1  ;;  %v13154_v1 = vld [vmem:[%s13862_s12 + $0x54c] ss:$24 sps:$4 sm:$0xff]  }
 0x613   : > { %9593 = vmatprep.subr.bf16.mxu1 %v13085_v57  ;;  %9716 = vmatprep.subr.bf16.mxu0 %v13088_v9 }
 0x616   : > { %9594 = vmatpush1.bf16.msra.mxu1 %v13083_v3  ;;  %9717 = vmatpush1.bf16.msra.mxu0 %v13086_v24 }
 0x617   : > { %9595 = vmatprep.subr.bf16.mxu1 %v13091_v6  ;;  %9718 = vmatprep.subr.bf16.mxu0 %v13094_v19  ;;  %v13149_v6 = vld [vmem:[%s13862_s12 + $0x540] ss:$24 sps:$4 sm:$0xff]  }
 0x618   : > { %v13152_v19 = vld [vmem:[%s13862_s12 + $0x548] ss:$24 sps:$4 sm:$0xff]  }
 0x61a   : > { %9596 = vmatpush1.bf16.msra.mxu1 %v13089_v13  ;;  %9719 = vmatpush1.bf16.msra.mxu0 %v13092_v21  ;;  %v13157_v21 = vld [vmem:[%s13862_s12 + $0x574] ss:$24 sps:$4 sm:$0xff]  }
 0x61b   : > { %9597 = vmatprep.subr.bf16.mxu1 %v13097_v42  ;;  %9720 = vmatprep.subr.bf16.mxu0 %v13100_v29  ;;  %v13160_v42 = vld [vmem:[%s13862_s12 + $0x57c] ss:$24 sps:$4 sm:$0xff]  }
 0x61e   : > { %9598 = vmatpush1.bf16.msra.mxu1 %v13095_v40  ;;  %9721 = vmatpush1.bf16.msra.mxu0 %v13098_v48 }
 0x61f   : > { %9599 = vmatprep.subr.bf16.mxu1 %v13103_v11  ;;  %9722 = vmatprep.subr.bf16.mxu0 %v13106_v59 }
 0x622   : > { %9600 = vmatpush1.bf16.msra.mxu1 %v13101_v58  ;;  %9723 = vmatpush1.bf16.msra.mxu0 %v13104_v8  ;;  %v13155_v8 = vld [vmem:[%s13862_s12 + $0x570] ss:$24 sps:$4 sm:$0xff]  }
 0x623   : > { %9601 = vmatprep.subr.bf16.mxu1 %v13109_v10  ;;  %9724 = vmatprep.subr.bf16.mxu0 %v13112_v16  ;;  %v13158_v10 = vld [vmem:[%s13862_s12 + $0x578] ss:$24 sps:$4 sm:$0xff]  }
 0x626   : > { %9602 = vmatpush1.bf16.msra.mxu1 %v13107_v62  ;;  %9725 = vmatpush1.bf16.msra.mxu0 %v13110_v50  ;;  %v13163_v50 = vld [vmem:[%s13862_s12 + $0x5a4] ss:$24 sps:$4 sm:$0xff]  }
 0x627   : > { %9603 = vmatprep.subr.bf16.mxu1 %v13115_v14  ;;  %9726 = vmatprep.subr.bf16.mxu0 %v13118_v60  ;;  %v13166_v14 = vld [vmem:[%s13862_s12 + $0x5ac] ss:$24 sps:$4 sm:$0xff]  }
 0x62a   : > { %9604 = vmatpush1.bf16.msra.mxu1 %v13113_v31  ;;  %9727 = vmatpush1.bf16.msra.mxu0 %v13116_v32 }
 0x62b   : > { %9605 = vmatprep.subr.bf16.mxu1 %v13121_v45  ;;  %9728 = vmatprep.subr.bf16.mxu0 %v13124_v39 }
 0x62e   : > { %9606 = vmatpush1.bf16.msra.mxu1 %v13119_v38  ;;  %9729 = vmatpush1.bf16.msra.mxu0 %v13122_v41  ;;  %v13161_v41 = vld [vmem:[%s13862_s12 + $0x5a0] ss:$24 sps:$4 sm:$0xff]  }
 0x62f   : > { %9607 = vmatprep.subr.bf16.mxu1 %v13127_v15  ;;  %9730 = vmatprep.subr.bf16.mxu0 %v13130_v47  ;;  %v13164_v15 = vld [vmem:[%s13862_s12 + $0x5a8] ss:$24 sps:$4 sm:$0xff]  }
 0x632   : > { %9608 = vmatpush1.bf16.msra.mxu1 %v13125_v46  ;;  %9731 = vmatpush1.bf16.msra.mxu0 %v13128_v5  ;;  %v13169_v5 = vld [vmem:[%s13862_s12 + $0x5d4] ss:$24 sps:$4 sm:$0xff]  }
 0x633   : > { %9609 = vmatprep.subr.bf16.mxu1 %v13133_v7  ;;  %9732 = vmatprep.subr.bf16.mxu0 %v13136_v25  ;;  %v13172_v7 = vld [vmem:[%s13862_s12 + $0x5dc] ss:$24 sps:$4 sm:$0xff]  }
 0x636   : > { %9610 = vmatpush1.bf16.msra.mxu1 %v13131_v55  ;;  %9733 = vmatpush1.bf16.msra.mxu0 %v13134_v56 }
 0x637   : > { %v7631_v2 = vpop.f32.mrb[32].mxu1  ;;  %9611 = vmatprep.subr.bf16.mxu1 %v13139_v63  ;;  %9734 = vmatprep.subr.bf16.mxu0 %v13142_v37  ;;  %v13167_v37 = vld [vmem:[%s13862_s12 + $0x5d0] ss:$24 sps:$4 sm:$0xff]  }
 0x638   : > { %v7685_v61 = vmul.f32 %v7631_v2, %v15062_v20  ;;  %v7633_v53 = vpop.f32.mrb[33].mxu1  ;;  %v13151_v20 = vld [vmem:[%s13862_s12 + $0x544] ss:$24 sps:$4 sm:$0xff]  }
 0x639   : > { %v7686_v17 = vmul.f32 %v7633_v53, %v15066_v23  ;;  %v7635_v51 = vpop.f32.mrb[34].mxu1 }
 0x63a   : > { %v7707_v34 = vrot.slane %v7685_v61, 4  ;;  %v7691_v12 = vmul.f32 %v7635_v51, %v15069_v28  ;;  %v7637_v54 = vpop.f32.mrb[35].mxu1  ;;  %9612 = vmatpush1.bf16.msra.mxu1 %v13137_v22  ;;  %9735 = vmatpush1.bf16.msra.mxu0 %v13140_v36  ;;  %v13170_v22 = vld [vmem:[%s13862_s12 + $0x5d8] ss:$24 sps:$4 sm:$0xff]  }
 0x63b   : > { %v7713_v0 = vrot.slane %v7686_v17, 4  ;;  %v7692_v52 = vmul.f32 %v7637_v54, %v15071_v35  ;;  %9613 = vmatprep.subr.bf16.mxu1 %v13145_v18  ;;  %9736 = vmatprep.subr.bf16.mxu0 %v13148_v44  ;;  %v13175_v18 = vld [vmem:[%s13862_s12 + $0x604] ss:$24 sps:$4 sm:$0xff]   ;;  %v13173_v51 = vld [vmem:[%s13862_s12 + $0x600] ss:$24 sps:$4 sm:$0xff]   ;;  %v15360_v54 = vpack.c.b16 %v15270_v27, %v15270_v27 }
 0x63c   : > { %v7708_v23 = vadd.f32 %v7707_v34, %v7685_v61  ;;  %v7743_v57 = vrot.slane %v7691_v12, 4  ;;  %v13178_v44 = vld [vmem:[%s13862_s12 + $0x60c] ss:$24 sps:$4 sm:$0xff]   ;;  %v13182_v27 = vld [vmem:[%s13862_s12 + $0x638] ss:$24 sps:$4 sm:$0xff]  }
 0x63d   : > { %v7714_v9 = vadd.f32 %v7713_v0, %v7686_v17  ;;  %v7749_v28 = vrot.slane %v7692_v52, 4  ;;  %v13179_v0 = vld [vmem:[%s13862_s12 + $0x630] ss:$24 sps:$4 sm:$0xff]  }
 0x63e   : > { %v7709_v3 = vrot.slane %v7708_v23, 2  ;;  %v7744_v24 = vadd.f32 %v7743_v57, %v7691_v12  ;;  %9614 = vmatpush1.bf16.msra.mxu1 %v13143_v30  ;;  %9737 = vmatpush1.bf16.msra.mxu0 %v13146_v33  ;;  %v13176_v12 = vld [vmem:[%s13862_s12 + $0x608] ss:$24 sps:$4 sm:$0xff]   ;;  %v13181_v30 = vld [vmem:[%s13862_s12 + $0x634] ss:$24 sps:$4 sm:$0xff]  }
 0x63f   : > { %v7715_v13 = vrot.slane %v7714_v9, 2  ;;  %v7750_v35 = vadd.f32 %v7749_v28, %v7692_v52  ;;  %9615 = vmatprep.subr.bf16.mxu1 %v13151_v20  ;;  %9738 = vmatprep.subr.bf16.mxu0 %v13154_v1  ;;  %v13184_v33 = vld [vmem:[%s13862_s12 + $0x63c] ss:$24 sps:$4 sm:$0xff]   ;;  %v13190_v20 = vld [vmem:[%s13862_s12 + $0x66c] ss:$24 sps:$4 sm:$0xff]  }
 0x640   : > { %v7710_v29 = vadd.f32 %v7709_v3, %v7708_v23  ;;  %v7745_v40 = vrot.slane %v7744_v24, 2  ;;  %v13187_v52 = vld [vmem:[%s13862_s12 + $0x664] ss:$24 sps:$4 sm:$0xff]   ;;  %v13185_v1 = vld [vmem:[%s13862_s12 + $0x660] ss:$24 sps:$4 sm:$0xff]  }
 0x641   : > { %v7716_v48 = vadd.f32 %v7715_v13, %v7714_v9  ;;  %v7751_v11 = vrot.slane %v7750_v35, 2  ;;  %v13188_v23 = vld [vmem:[%s13862_s12 + $0x668] ss:$24 sps:$4 sm:$0xff]   ;;  %v13193_v57 = vld [vmem:[%s13862_s12 + $0x694] ss:$24 sps:$4 sm:$0xff]  }
 0x642   : > { %v7711_v59 = vrot.slane %v7710_v29, 1  ;;  %v7746_v58 = vadd.f32 %v7745_v40, %v7744_v24  ;;  %9616 = vmatpush1.bf16.msra.mxu1 %v13149_v6  ;;  %9739 = vmatpush1.bf16.msra.mxu0 %v13152_v19  ;;  %v13196_v9 = vld [vmem:[%s13862_s12 + $0x69c] ss:$24 sps:$4 sm:$0xff]   ;;  %v13191_v28 = vld [vmem:[%s13862_s12 + $0x690] ss:$24 sps:$4 sm:$0xff]  }
 0x643   : > { %v7717_v16 = vrot.slane %v7716_v48, 1  ;;  %v7752_v62 = vadd.f32 %v7751_v11, %v7750_v35  ;;  %9617 = vmatprep.subr.bf16.mxu1 %v13157_v21  ;;  %9740 = vmatprep.subr.bf16.mxu0 %v13160_v42  ;;  %v13194_v3 = vld [vmem:[%s13862_s12 + $0x698] ss:$24 sps:$4 sm:$0xff]   ;;  %v13199_v24 = vld [vmem:[%s13862_s12 + $0x6c4] ss:$24 sps:$4 sm:$0xff]  }
 0x644   : > { %v7712_v60 = vadd.f32 %v7711_v59, %v7710_v29  ;;  %v7747_v31 = vrot.slane %v7746_v58, 1  ;;  %v13202_v6 = vld [vmem:[%s13862_s12 + $0x6cc] ss:$24 sps:$4 sm:$0xff]   ;;  %v13197_v19 = vld [vmem:[%s13862_s12 + $0x6c0] ss:$24 sps:$4 sm:$0xff]  }
 0x645   : > { %v7718_v32 = vadd.f32 %v7717_v16, %v7716_v48  ;;  %v7753_v45 = vrot.slane %v7752_v62, 1  ;;  %v13200_v13 = vld [vmem:[%s13862_s12 + $0x6c8] ss:$24 sps:$4 sm:$0xff]   ;;  %v13205_v35 = vld [vmem:[%s13862_s12 + $0x6f4] ss:$24 sps:$4 sm:$0xff]  }
 0x646   : > { %v7769_v39 = vpack.c.bf16 %v7712_v60, %v7712_v60  ;;  %v7748_v38 = vadd.f32 %v7747_v31, %v7746_v58  ;;  %9618 = vmatpush1.bf16.msra.mxu1 %v13155_v8  ;;  %9741 = vmatpush1.bf16.msra.mxu0 %v13158_v10  ;;  %v13208_v21 = vld [vmem:[%s13862_s12 + $0x6fc] ss:$24 sps:$4 sm:$0xff]   ;;  %v13203_v42 = vld [vmem:[%s13862_s12 + $0x6f0] ss:$24 sps:$4 sm:$0xff]   ;;  %v13214_v48 = vld [vmem:[%s13862_s12 + $0x72c] ss:$24 sps:$4 sm:$0xff]  }
 0x647   : > { %v7770_v47 = vpack.c.bf16 %v7718_v32, %v7718_v32  ;;  %v7754_v46 = vadd.f32 %v7753_v45, %v7752_v62  ;;  %9619 = vmatprep.subr.bf16.mxu1 %v13163_v50  ;;  %9742 = vmatprep.subr.bf16.mxu0 %v13166_v14  ;;  %v13206_v29 = vld [vmem:[%s13862_s12 + $0x6f8] ss:$24 sps:$4 sm:$0xff]   ;;  %v13211_v40 = vld [vmem:[%s13862_s12 + $0x724] ss:$24 sps:$4 sm:$0xff]   ;;  %v13212_v59 = vld [vmem:[%s13862_s12 + $0x728] ss:$24 sps:$4 sm:$0xff]  }
 0x648   : > { %v7775_v25 = vpack.c.bf16 %v7748_v38, %v7748_v38  ;;  %v8081_v56 = vunpack.c.l.b16 %v7769_v39  ;;  %v13209_v11 = vld [vmem:[%s13862_s12 + $0x720] ss:$24 sps:$4 sm:$0xff]   ;;  %v13217_v58 = vld [vmem:[%s13862_s12 + $0x754] ss:$24 sps:$4 sm:$0xff]   ;;  %v13215_v10 = vld [vmem:[%s13862_s12 + $0x750] ss:$24 sps:$4 sm:$0xff]  }
 0x649   : > { %v7776_v55 = vpack.c.bf16 %v7754_v46, %v7754_v46  ;;  %v8082_v36 = vunpack.c.l.b16 %v7770_v47  ;;  %v13220_v8 = vld [vmem:[%s13862_s12 + $0x75c] ss:$24 sps:$4 sm:$0xff]   ;;  %v13218_v16 = vld [vmem:[%s13862_s12 + $0x758] ss:$24 sps:$4 sm:$0xff]   ;;  %v13226_v50 = vld [vmem:[%s13862_s12 + $0x78c] ss:$24 sps:$4 sm:$0xff]  }
 0x64a   : > { %v8087_v63 = vunpack.c.l.b16 %v7775_v25  ;;  %9620 = vmatpush1.bf16.msra.mxu1 %v13161_v41  ;;  %9743 = vmatpush1.bf16.msra.mxu0 %v13164_v15  ;;  %v13223_v62 = vld [vmem:[%s13862_s12 + $0x784] ss:$24 sps:$4 sm:$0xff]   ;;  %v13221_v14 = vld [vmem:[%s13862_s12 + $0x780] ss:$24 sps:$4 sm:$0xff]   ;;  %v13229_v31 = vld [vmem:[%s13862_s12 + $0x7b4] ss:$24 sps:$4 sm:$0xff]  }
 0x64b   : > { %v8088_v2 = vunpack.c.l.b16 %v7776_v55  ;;  %9621 = vmatprep.subr.bf16.mxu1 %v13169_v5  ;;  %9744 = vmatprep.subr.bf16.mxu0 %v13172_v7  ;;  %v13224_v60 = vld [vmem:[%s13862_s12 + $0x788] ss:$24 sps:$4 sm:$0xff]   ;;  %v13232_v32 = vld [vmem:[%s13862_s12 + $0x7bc] ss:$24 sps:$4 sm:$0xff]   ;;  %v13230_v39 = vld [vmem:[%s13862_s12 + $0x7b8] ss:$24 sps:$4 sm:$0xff]  }
 0x64c   : > { %v8094_v61 = vsel %vm8091_vm0, %v8087_v63, %v8081_v56  ;;  %v13227_v45 = vld [vmem:[%s13862_s12 + $0x7b0] ss:$24 sps:$4 sm:$0xff]   ;;  %v13235_v38 = vld [vmem:[%s13862_s12 + $0x7e4] ss:$24 sps:$4 sm:$0xff]   ;;  %v13233_v15 = vld [vmem:[%s13862_s12 + $0x7e0] ss:$24 sps:$4 sm:$0xff]  }
 0x64d   : > { %v8095_v53 = vsel %vm8091_vm0, %v8088_v2, %v8082_v36  ;;  %v15353_v34 = vpack.c.b16 %v8094_v61, %v8094_v61  ;;  %v13238_v41 = vld [vmem:[%s13862_s12 + $0x7ec] ss:$24 sps:$4 sm:$0xff]   ;;  %v13236_v47 = vld [vmem:[%s13862_s12 + $0x7e8] ss:$24 sps:$4 sm:$0xff]   ;;  %v13244_v5 = vld [vmem:[%s13862_s12 + $0x81c] ss:$24 sps:$4 sm:$0xff]  }
 0x64e   : > { %9622 = vmatpush1.bf16.msra.mxu1 %v13167_v37  ;;  %9745 = vmatpush1.bf16.msra.mxu0 %v13170_v22  ;;  %v15350_v17 = vpack.c.b16 %v8095_v53, %v8095_v53  ;;  %v13241_v46 = vld [vmem:[%s13862_s12 + $0x814] ss:$24 sps:$4 sm:$0xff]   ;;  %v13239_v7 = vld [vmem:[%s13862_s12 + $0x810] ss:$24 sps:$4 sm:$0xff]   ;;  %v13247_v55 = vld [vmem:[%s13862_s12 + $0x844] ss:$24 sps:$4 sm:$0xff]  }
 0x64f   : > { %9632 = vmatprep.subr.bf16.mxu1 %v13175_v18  ;;  %9755 = vmatprep.subr.bf16.mxu0 %v13178_v44  ;;  %v13242_v25 = vld [vmem:[%s13862_s12 + $0x818] ss:$24 sps:$4 sm:$0xff]   ;;  %v13250_v56 = vld [vmem:[%s13862_s12 + $0x84c] ss:$24 sps:$4 sm:$0xff]   ;;  %v13248_v37 = vld [vmem:[%s13862_s12 + $0x848] ss:$24 sps:$4 sm:$0xff]  }
 0x650   : > { %9623 = vmatprep.mubr.bf16.mxu1 %v15350_v17  ;;  %9746 = vmatprep.mubr.bf16.mxu0 %v15350_v17  ;;  %v13245_v63 = vld [vmem:[%s13862_s12 + $0x840] ss:$24 sps:$4 sm:$0xff]   ;;  %v13253_v22 = vld [vmem:[%s13862_s12 + $0x874] ss:$24 sps:$4 sm:$0xff]   ;;  %v13251_v2 = vld [vmem:[%s13862_s12 + $0x870] ss:$24 sps:$4 sm:$0xff]  }
 0x651   : > { %9624 = vmatmul.mubr.bf16.vlgmr.msra.gmra.mrb[36].mxu1 %v15353_v34  ;;  %9747 = vmatmul.mubr.bf16.vlgmr.msra.gmra.mrb[28].mxu0 %v15353_v34  ;;  %v13256_v36 = vld [vmem:[%s13862_s12 + $0x87c] ss:$24 sps:$4 sm:$0xff]   ;;  %v13254_v18 = vld [vmem:[%s13862_s12 + $0x878] ss:$24 sps:$4 sm:$0xff]   ;;  %v13262_v61 = vld [vmem:[%s13862_s12 + $0x8ac] ss:$24 sps:$4 sm:$0xff]  }
 0x652   : > { %9633 = vmatpush1.bf16.msra.mxu1 %v13173_v51  ;;  %9664 = vmatprep.mubr.bf16.mxu1 %v15360_v54  ;;  %v13259_v44 = vld [vmem:[%s13862_s12 + $0x8a4] ss:$24 sps:$4 sm:$0xff]   ;;  %v13257_v53 = vld [vmem:[%s13862_s12 + $0x8a0] ss:$24 sps:$4 sm:$0xff]  }
 0x653   : > { %9756 = vmatpush1.bf16.msra.mxu0 %v13176_v12  ;;  %9787 = vmatprep.mubr.bf16.mxu0 %v15360_v54  ;;  %v13260_v51 = vld [vmem:[%s13862_s12 + $0x8a8] ss:$24 sps:$4 sm:$0xff]   ;;  %v13265_v12 = vld [vmem:[%s13862_s12 + $0x8d4] ss:$24 sps:$4 sm:$0xff]  }
 0x654   : > { %9634 = vmatprep.subr.bf16.mxu1 %v13181_v30  ;;  %9757 = vmatprep.subr.bf16.mxu0 %v13184_v33  ;;  %v13268_v30 = vld [vmem:[%s13862_s12 + $0x8dc] ss:$24 sps:$4 sm:$0xff]   ;;  %v13263_v33 = vld [vmem:[%s13862_s12 + $0x8d0] ss:$24 sps:$4 sm:$0xff]  }
 0x656   : > { %9635 = vmatpush1.bf16.msra.mxu1 %v13179_v0  ;;  %v13266_v0 = vld [vmem:[%s13862_s12 + $0x8d8] ss:$24 sps:$4 sm:$0xff]  }
 0x657   : > { %9758 = vmatpush1.bf16.msra.mxu0 %v13182_v27  ;;  %9636 = vmatprep.subr.bf16.mxu1 %v13187_v52  ;;  %v13271_v27 = vld [vmem:[%s13862_s12 + $0x14] ss:$24 sps:$4 sm:$0xff]   ;;  %v13269_v52 = vld [vmem:[%s13862_s12 + $0x10] ss:$24 sps:$4 sm:$0xff]  }
 0x658   : > { %9759 = vmatprep.subr.bf16.mxu0 %v13190_v20  ;;  %v15430_v20 = vpack.c.b16 %v15266_v26, %v15266_v26  ;;  %v13275_v26 = vld [vmem:[%s13862_s12 + $0x70] ss:$24 sps:$4 sm:$0xff]  }
 0x65a   : > { %9637 = vmatpush1.bf16.msra.mxu1 %v13185_v1  ;;  %v13274_v1 = vld [vmem:[%s13862_s12 + $0x44] ss:$24 sps:$4 sm:$0xff]  }
 0x65b   : > { %9760 = vmatpush1.bf16.msra.mxu0 %v13188_v23  ;;  %9638 = vmatprep.subr.bf16.mxu1 %v13193_v57  ;;  %v13272_v23 = vld [vmem:[%s13862_s12 + $0x40] ss:$24 sps:$4 sm:$0xff]   ;;  %v13277_v57 = vld [vmem:[%s13862_s12 + $0x74] ss:$24 sps:$4 sm:$0xff]  }
 0x65c   : > { %9761 = vmatprep.subr.bf16.mxu0 %v13196_v9  ;;  %v13280_v9 = vld [vmem:[%s13862_s12 + $0xa4] ss:$24 sps:$4 sm:$0xff]  }
 0x65e   : > { %9639 = vmatpush1.bf16.msra.mxu1 %v13191_v28  ;;  %v13278_v28 = vld [vmem:[%s13862_s12 + $0xa0] ss:$24 sps:$4 sm:$0xff]  }
 0x65f   : > { %9762 = vmatpush1.bf16.msra.mxu0 %v13194_v3  ;;  %9640 = vmatprep.subr.bf16.mxu1 %v13199_v24  ;;  %v13283_v3 = vld [vmem:[%s13862_s12 + $0xd4] ss:$24 sps:$4 sm:$0xff]   ;;  %v13281_v24 = vld [vmem:[%s13862_s12 + $0xd0] ss:$24 sps:$4 sm:$0xff]  }
 0x660   : > { %9763 = vmatprep.subr.bf16.mxu0 %v13202_v6  ;;  %v13284_v6 = vld [vmem:[%s13862_s12 + $0x100] ss:$24 sps:$4 sm:$0xff]  }
 0x662   : > { %9641 = vmatpush1.bf16.msra.mxu1 %v13197_v19  ;;  %v13289_v19 = vld [vmem:[%s13862_s12 + $0x134] ss:$24 sps:$4 sm:$0xff]  }
 0x663   : > { %9764 = vmatpush1.bf16.msra.mxu0 %v13200_v13  ;;  %9642 = vmatprep.subr.bf16.mxu1 %v13205_v35  ;;  %v13287_v13 = vld [vmem:[%s13862_s12 + $0x130] ss:$24 sps:$4 sm:$0xff]   ;;  %v13292_v35 = vld [vmem:[%s13862_s12 + $0x164] ss:$24 sps:$4 sm:$0xff]  }
 0x664   : > { %9765 = vmatprep.subr.bf16.mxu0 %v13208_v21  ;;  %v13290_v21 = vld [vmem:[%s13862_s12 + $0x160] ss:$24 sps:$4 sm:$0xff]  }
 0x666   : > { %9643 = vmatpush1.bf16.msra.mxu1 %v13203_v42  ;;  %v13295_v42 = vld [vmem:[%s13862_s12 + $0x194] ss:$24 sps:$4 sm:$0xff]  }
 0x667   : > { %9766 = vmatpush1.bf16.msra.mxu0 %v13206_v29  ;;  %9644 = vmatprep.subr.bf16.mxu1 %v13211_v40  ;;  %v13293_v29 = vld [vmem:[%s13862_s12 + $0x190] ss:$24 sps:$4 sm:$0xff]   ;;  %v13298_v40 = vld [vmem:[%s13862_s12 + $0x1c4] ss:$24 sps:$4 sm:$0xff]  }
 0x668   : > { %9767 = vmatprep.subr.bf16.mxu0 %v13214_v48  ;;  %v13296_v48 = vld [vmem:[%s13862_s12 + $0x1c0] ss:$24 sps:$4 sm:$0xff]  }
 0x66a   : > { %9645 = vmatpush1.bf16.msra.mxu1 %v13209_v11  ;;  %v13301_v11 = vld [vmem:[%s13862_s12 + $0x1f4] ss:$24 sps:$4 sm:$0xff]  }
 0x66b   : > { %9768 = vmatpush1.bf16.msra.mxu0 %v13212_v59  ;;  %9646 = vmatprep.subr.bf16.mxu1 %v13217_v58  ;;  %v13299_v59 = vld [vmem:[%s13862_s12 + $0x1f0] ss:$24 sps:$4 sm:$0xff]   ;;  %v13304_v58 = vld [vmem:[%s13862_s12 + $0x224] ss:$24 sps:$4 sm:$0xff]  }
 0x66c   : > { %9769 = vmatprep.subr.bf16.mxu0 %v13220_v8  ;;  %v13302_v8 = vld [vmem:[%s13862_s12 + $0x220] ss:$24 sps:$4 sm:$0xff]  }
 0x66e   : > { %9647 = vmatpush1.bf16.msra.mxu1 %v13215_v10  ;;  %v13307_v10 = vld [vmem:[%s13862_s12 + $0x254] ss:$24 sps:$4 sm:$0xff]  }
 0x66f   : > { %9770 = vmatpush1.bf16.msra.mxu0 %v13218_v16  ;;  %9648 = vmatprep.subr.bf16.mxu1 %v13223_v62  ;;  %v13305_v16 = vld [vmem:[%s13862_s12 + $0x250] ss:$24 sps:$4 sm:$0xff]   ;;  %v13310_v62 = vld [vmem:[%s13862_s12 + $0x284] ss:$24 sps:$4 sm:$0xff]  }
 0x670   : > { %9771 = vmatprep.subr.bf16.mxu0 %v13226_v50  ;;  %v13308_v50 = vld [vmem:[%s13862_s12 + $0x280] ss:$24 sps:$4 sm:$0xff]  }
 0x672   : > { %9649 = vmatpush1.bf16.msra.mxu1 %v13221_v14  ;;  %v13313_v14 = vld [vmem:[%s13862_s12 + $0x2b4] ss:$24 sps:$4 sm:$0xff]  }
 0x673   : > { %9772 = vmatpush1.bf16.msra.mxu0 %v13224_v60  ;;  %9650 = vmatprep.subr.bf16.mxu1 %v13229_v31  ;;  %v13311_v60 = vld [vmem:[%s13862_s12 + $0x2b0] ss:$24 sps:$4 sm:$0xff]   ;;  %v13316_v31 = vld [vmem:[%s13862_s12 + $0x2e4] ss:$24 sps:$4 sm:$0xff]  }
 0x674   : > { %9773 = vmatprep.subr.bf16.mxu0 %v13232_v32  ;;  %v13314_v32 = vld [vmem:[%s13862_s12 + $0x2e0] ss:$24 sps:$4 sm:$0xff]  }
 0x676   : > { %9651 = vmatpush1.bf16.msra.mxu1 %v13227_v45  ;;  %v13319_v45 = vld [vmem:[%s13862_s12 + $0x314] ss:$24 sps:$4 sm:$0xff]  }
 0x677   : > { %9774 = vmatpush1.bf16.msra.mxu0 %v13230_v39  ;;  %9652 = vmatprep.subr.bf16.mxu1 %v13235_v38  ;;  %v13317_v39 = vld [vmem:[%s13862_s12 + $0x310] ss:$24 sps:$4 sm:$0xff]   ;;  %v13322_v38 = vld [vmem:[%s13862_s12 + $0x344] ss:$24 sps:$4 sm:$0xff]  }
 0x678   : > { %9775 = vmatprep.subr.bf16.mxu0 %v13238_v41  ;;  %v13320_v41 = vld [vmem:[%s13862_s12 + $0x340] ss:$24 sps:$4 sm:$0xff]  }
 0x67a   : > { %9653 = vmatpush1.bf16.msra.mxu1 %v13233_v15  ;;  %v13325_v15 = vld [vmem:[%s13862_s12 + $0x374] ss:$24 sps:$4 sm:$0xff]  }
 0x67b   : > { %9776 = vmatpush1.bf16.msra.mxu0 %v13236_v47  ;;  %9654 = vmatprep.subr.bf16.mxu1 %v13241_v46  ;;  %v13323_v47 = vld [vmem:[%s13862_s12 + $0x370] ss:$24 sps:$4 sm:$0xff]   ;;  %v13328_v46 = vld [vmem:[%s13862_s12 + $0x3a4] ss:$24 sps:$4 sm:$0xff]  }
 0x67c   : > { %9777 = vmatprep.subr.bf16.mxu0 %v13244_v5  ;;  %v13326_v5 = vld [vmem:[%s13862_s12 + $0x3a0] ss:$24 sps:$4 sm:$0xff]  }
 0x67e   : > { %9655 = vmatpush1.bf16.msra.mxu1 %v13239_v7  ;;  %v13329_v7 = vld [vmem:[%s13862_s12 + $0x3d0] ss:$24 sps:$4 sm:$0xff]  }
 0x67f   : > { %9778 = vmatpush1.bf16.msra.mxu0 %v13242_v25  ;;  %9656 = vmatprep.subr.bf16.mxu1 %v13247_v55  ;;  %v13332_v25 = vld [vmem:[%s13862_s12 + $0x400] ss:$24 sps:$4 sm:$0xff]   ;;  %v13337_v55 = vld [vmem:[%s13862_s12 + $0x434] ss:$24 sps:$4 sm:$0xff]  }
 0x680   : > { %9779 = vmatprep.subr.bf16.mxu0 %v13250_v56  ;;  %v13335_v56 = vld [vmem:[%s13862_s12 + $0x430] ss:$24 sps:$4 sm:$0xff]  }
 0x682   : > { %9657 = vmatpush1.bf16.msra.mxu1 %v13245_v63  ;;  %v13340_v63 = vld [vmem:[%s13862_s12 + $0x464] ss:$24 sps:$4 sm:$0xff]  }
 0x683   : > { %9780 = vmatpush1.bf16.msra.mxu0 %v13248_v37  ;;  %9658 = vmatprep.subr.bf16.mxu1 %v13253_v22  ;;  %v13338_v37 = vld [vmem:[%s13862_s12 + $0x460] ss:$24 sps:$4 sm:$0xff]   ;;  %v13343_v22 = vld [vmem:[%s13862_s12 + $0x494] ss:$24 sps:$4 sm:$0xff]  }
 0x684   : > { %9781 = vmatprep.subr.bf16.mxu0 %v13256_v36  ;;  %v13341_v36 = vld [vmem:[%s13862_s12 + $0x490] ss:$24 sps:$4 sm:$0xff]  }
 0x686   : > { %9659 = vmatpush1.bf16.msra.mxu1 %v13251_v2  ;;  %v13346_v2 = vld [vmem:[%s13862_s12 + $0x4c4] ss:$24 sps:$4 sm:$0xff]  }
 0x687   : > { %9782 = vmatpush1.bf16.msra.mxu0 %v13254_v18  ;;  %9660 = vmatprep.subr.bf16.mxu1 %v13259_v44  ;;  %v13344_v18 = vld [vmem:[%s13862_s12 + $0x4c0] ss:$24 sps:$4 sm:$0xff]   ;;  %v13349_v44 = vld [vmem:[%s13862_s12 + $0x4f4] ss:$24 sps:$4 sm:$0xff]  }
 0x688   : > { %9783 = vmatprep.subr.bf16.mxu0 %v13262_v61  ;;  %v13347_v61 = vld [vmem:[%s13862_s12 + $0x4f0] ss:$24 sps:$4 sm:$0xff]  }
 0x68a   : > { %9661 = vmatpush1.bf16.msra.mxu1 %v13257_v53  ;;  %v13352_v53 = vld [vmem:[%s13862_s12 + $0x524] ss:$24 sps:$4 sm:$0xff]  }
 0x68b   : > { %9784 = vmatpush1.bf16.msra.mxu0 %v13260_v51  ;;  %9662 = vmatprep.subr.bf16.mxu1 %v13265_v12  ;;  %v13350_v51 = vld [vmem:[%s13862_s12 + $0x520] ss:$24 sps:$4 sm:$0xff]   ;;  %v13355_v12 = vld [vmem:[%s13862_s12 + $0x554] ss:$24 sps:$4 sm:$0xff]  }
 0x68c   : > { %9785 = vmatprep.subr.bf16.mxu0 %v13268_v30  ;;  %v13353_v30 = vld [vmem:[%s13862_s12 + $0x550] ss:$24 sps:$4 sm:$0xff]  }
 0x68e   : > { %9663 = vmatpush1.bf16.msra.mxu1 %v13263_v33  ;;  %v13358_v33 = vld [vmem:[%s13862_s12 + $0x584] ss:$24 sps:$4 sm:$0xff]  }
 0x68f   : > { %9786 = vmatpush1.bf16.msra.mxu0 %v13266_v0  ;;  %9796 = vmatprep.subr.bf16.mxu1 %v13271_v27  ;;  %v13356_v0 = vld [vmem:[%s13862_s12 + $0x580] ss:$24 sps:$4 sm:$0xff]   ;;  %v13361_v27 = vld [vmem:[%s13862_s12 + $0x5b4] ss:$24 sps:$4 sm:$0xff]  }
 0x691   : > { %9665 = vmatmul.mubr.bf16.vlgmr.msra.gmra.mrb[36].mxu1 %v15430_v20 }
 0x692   : > { %9788 = vmatmul.mubr.bf16.vlgmr.msra.gmra.mrb[28].mxu0 %v15430_v20  ;;  %9797 = vmatpush1.bf16.msra.mxu1 %v13269_v52  ;;  %v13359_v52 = vld [vmem:[%s13862_s12 + $0x5b0] ss:$24 sps:$4 sm:$0xff]  }
 0x693   : > { %9828 = vmatprep.mubr.bf16.mxu1 %v15272_v49  ;;  %9798 = vmatprep.subr.bf16.mxu1 %v13274_v1  ;;  %v13286_v49 = vld [vmem:[%s13862_s12 + $0x104] ss:$24 sps:$4 sm:$0xff]  }
 0x694   : > { %v13364_v1 = vld [vmem:[%s13862_s12 + $0x5e4] ss:$24 sps:$4 sm:$0xff]  }
 0x696   : > { %9799 = vmatpush1.bf16.msra.mxu1 %v13272_v23  ;;  %v13362_v23 = vld [vmem:[%s13862_s12 + $0x5e0] ss:$24 sps:$4 sm:$0xff]  }
 0x697   : > { %9800 = vmatprep.subr.bf16.mxu1 %v13277_v57  ;;  %v13367_v57 = vld [vmem:[%s13862_s12 + $0x614] ss:$24 sps:$4 sm:$0xff]  }
 0x69a   : > { %9801 = vmatpush1.bf16.msra.mxu1 %v13275_v26  ;;  %v13365_v26 = vld [vmem:[%s13862_s12 + $0x610] ss:$24 sps:$4 sm:$0xff]  }
 0x69b   : > { %9802 = vmatprep.subr.bf16.mxu1 %v13280_v9  ;;  %v13370_v9 = vld [vmem:[%s13862_s12 + $0x644] ss:$24 sps:$4 sm:$0xff]  }
 0x69e   : > { %9803 = vmatpush1.bf16.msra.mxu1 %v13278_v28  ;;  %v13368_v28 = vld [vmem:[%s13862_s12 + $0x640] ss:$24 sps:$4 sm:$0xff]  }
 0x69f   : > { %9804 = vmatprep.subr.bf16.mxu1 %v13283_v3  ;;  %v13373_v3 = vld [vmem:[%s13862_s12 + $0x674] ss:$24 sps:$4 sm:$0xff]  }
 0x6a2   : > { %9805 = vmatpush1.bf16.msra.mxu1 %v13281_v24  ;;  %v13371_v24 = vld [vmem:[%s13862_s12 + $0x670] ss:$24 sps:$4 sm:$0xff]  }
 0x6a3   : > { %9806 = vmatprep.subr.bf16.mxu1 %v13286_v49  ;;  %v13376_v49 = vld [vmem:[%s13862_s12 + $0x6a4] ss:$24 sps:$4 sm:$0xff]  }
 0x6a6   : > { %9807 = vmatpush1.bf16.msra.mxu1 %v13284_v6  ;;  %v13374_v6 = vld [vmem:[%s13862_s12 + $0x6a0] ss:$24 sps:$4 sm:$0xff]  }
 0x6a7   : > { %9808 = vmatprep.subr.bf16.mxu1 %v13289_v19  ;;  %v13377_v19 = vld [vmem:[%s13862_s12 + $0x6d0] ss:$24 sps:$4 sm:$0xff]  }
 0x6aa   : > { %9809 = vmatpush1.bf16.msra.mxu1 %v13287_v13  ;;  %v13380_v13 = vld [vmem:[%s13862_s12 + $0x700] ss:$24 sps:$4 sm:$0xff]  }
 0x6ab   : > { %9810 = vmatprep.subr.bf16.mxu1 %v13292_v35  ;;  %v13385_v35 = vld [vmem:[%s13862_s12 + $0x734] ss:$24 sps:$4 sm:$0xff]  }
 0x6ae   : > { %9811 = vmatpush1.bf16.msra.mxu1 %v13290_v21  ;;  %v13383_v21 = vld [vmem:[%s13862_s12 + $0x730] ss:$24 sps:$4 sm:$0xff]  }
 0x6af   : > { %9812 = vmatprep.subr.bf16.mxu1 %v13295_v42  ;;  %v13388_v42 = vld [vmem:[%s13862_s12 + $0x764] ss:$24 sps:$4 sm:$0xff]  }
 0x6b2   : > { %9813 = vmatpush1.bf16.msra.mxu1 %v13293_v29  ;;  %v13386_v29 = vld [vmem:[%s13862_s12 + $0x760] ss:$24 sps:$4 sm:$0xff]  }
 0x6b3   : > { %9814 = vmatprep.subr.bf16.mxu1 %v13298_v40  ;;  %v13391_v40 = vld [vmem:[%s13862_s12 + $0x794] ss:$24 sps:$4 sm:$0xff]  }
 0x6b6   : > { %9815 = vmatpush1.bf16.msra.mxu1 %v13296_v48  ;;  %v13389_v48 = vld [vmem:[%s13862_s12 + $0x790] ss:$24 sps:$4 sm:$0xff]  }
 0x6b7   : > { %9816 = vmatprep.subr.bf16.mxu1 %v13301_v11  ;;  %v13394_v11 = vld [vmem:[%s13862_s12 + $0x7c4] ss:$24 sps:$4 sm:$0xff]  }
 0x6ba   : > { %9817 = vmatpush1.bf16.msra.mxu1 %v13299_v59  ;;  %v13392_v59 = vld [vmem:[%s13862_s12 + $0x7c0] ss:$24 sps:$4 sm:$0xff]  }
 0x6bb   : > { %9818 = vmatprep.subr.bf16.mxu1 %v13304_v58  ;;  %v13397_v58 = vld [vmem:[%s13862_s12 + $0x7f4] ss:$24 sps:$4 sm:$0xff]  }
 0x6be   : > { %9819 = vmatpush1.bf16.msra.mxu1 %v13302_v8  ;;  %v13395_v8 = vld [vmem:[%s13862_s12 + $0x7f0] ss:$24 sps:$4 sm:$0xff]  }
 0x6bf   : > { %9820 = vmatprep.subr.bf16.mxu1 %v13307_v10  ;;  %v13400_v10 = vld [vmem:[%s13862_s12 + $0x824] ss:$24 sps:$4 sm:$0xff]  }
 0x6c2   : > { %9821 = vmatpush1.bf16.msra.mxu1 %v13305_v16  ;;  %v13398_v16 = vld [vmem:[%s13862_s12 + $0x820] ss:$24 sps:$4 sm:$0xff]  }
 0x6c3   : > { %9822 = vmatprep.subr.bf16.mxu1 %v13310_v62  ;;  %v13403_v62 = vld [vmem:[%s13862_s12 + $0x854] ss:$24 sps:$4 sm:$0xff]  }
 0x6c6   : > { %9823 = vmatpush1.bf16.msra.mxu1 %v13308_v50  ;;  %v13401_v50 = vld [vmem:[%s13862_s12 + $0x850] ss:$24 sps:$4 sm:$0xff]  }
 0x6c7   : > { %9824 = vmatprep.subr.bf16.mxu1 %v13313_v14  ;;  %v13406_v14 = vld [vmem:[%s13862_s12 + $0x884] ss:$24 sps:$4 sm:$0xff]  }
 0x6ca   : > { %9825 = vmatpush1.bf16.msra.mxu1 %v13311_v60  ;;  %v13404_v60 = vld [vmem:[%s13862_s12 + $0x880] ss:$24 sps:$4 sm:$0xff]  }
 0x6cb   : > { %9826 = vmatprep.subr.bf16.mxu1 %v13316_v31  ;;  %v13409_v31 = vld [vmem:[%s13862_s12 + $0x8b4] ss:$24 sps:$4 sm:$0xff]  }
 0x6ce   : > { %9827 = vmatpush1.bf16.msra.mxu1 %v13314_v32  ;;  %v13407_v32 = vld [vmem:[%s13862_s12 + $0x8b0] ss:$24 sps:$4 sm:$0xff]  }
 0x6cf   : > { %9837 = vmatprep.subr.bf16.mxu1 %v13319_v45  ;;  %v13412_v45 = vld [vmem:[%s13862_s12 + $0x8e4] ss:$24 sps:$4 sm:$0xff]  }
 0x6d1   : > { %9829 = vmatmul.mubr.bf16.vlgmr.msra.gmra.mrb[40].mxu1 %v15276_v4  ;;  %v13331_v4 = vld [vmem:[%s13862_s12 + $0x3d4] ss:$24 sps:$4 sm:$0xff]  }
 0x6d2   : > { %9838 = vmatpush1.bf16.msra.mxu1 %v13317_v39  ;;  %9869 = vmatprep.mubr.bf16.mxu1 %v15350_v17  ;;  %v13334_v17 = vld [vmem:[%s13862_s12 + $0x404] ss:$24 sps:$4 sm:$0xff]   ;;  %v13410_v39 = vld [vmem:[%s13862_s12 + $0x8e0] ss:$24 sps:$4 sm:$0xff]  }
 0x6d3   : > { %9839 = vmatprep.subr.bf16.mxu1 %v13322_v38  ;;  %v13612_v38 = vmov 1983009808  }
 0x6d6   : > { %9840 = vmatpush1.bf16.msra.mxu1 %v13320_v41  ;;  %v9928_v41 = vunpack.c.l.s4 %v13612_v38 }
 0x6d7   : > { %9841 = vmatprep.subr.bf16.mxu1 %v13325_v15 }
 0x6d8   : > { %v9929_v15 = vunpack.c.0.s8 %v9928_v41 }
 0x6da   : > { %9842 = vmatpush1.bf16.msra.mxu1 %v13323_v47 }
 0x6db   : > { %9843 = vmatprep.subr.bf16.mxu1 %v13328_v46  ;;  %v9932_v46 = vsub.s32 %v9929_v15, %v13912_v43 }
 0x6de   : > { %9844 = vmatpush1.bf16.msra.mxu1 %v13326_v5 }
 0x6df   : > { %9845 = vmatprep.subr.bf16.mxu1 %v13331_v4 }
 0x6e2   : > { %9846 = vmatpush1.bf16.msra.mxu1 %v13329_v7 }
 0x6e3   : > { %9847 = vmatprep.subr.bf16.mxu1 %v13334_v17 }
 0x6e6   : > { %9848 = vmatpush1.bf16.msra.mxu1 %v13332_v25 }
 0x6e7   : > { %9849 = vmatprep.subr.bf16.mxu1 %v13337_v55 }
 0x6ea   : > { %9850 = vmatpush1.bf16.msra.mxu1 %v13335_v56 }
 0x6eb   : > { %9851 = vmatprep.subr.bf16.mxu1 %v13340_v63 }
 0x6ee   : > { %9852 = vmatpush1.bf16.msra.mxu1 %v13338_v37 }
 0x6ef   : > { %9853 = vmatprep.subr.bf16.mxu1 %v13343_v22 }
 0x6f2   : > { %9854 = vmatpush1.bf16.msra.mxu1 %v13341_v36 }
 0x6f3   : > { %9855 = vmatprep.subr.bf16.mxu1 %v13346_v2 }
 0x6f6   : > { %9856 = vmatpush1.bf16.msra.mxu1 %v13344_v18 }
 0x6f7   : > { %9857 = vmatprep.subr.bf16.mxu1 %v13349_v44 }
 0x6fa   : > { %9858 = vmatpush1.bf16.msra.mxu1 %v13347_v61 }
 0x6fb   : > { %9859 = vmatprep.subr.bf16.mxu1 %v13352_v53 }
 0x6fe   : > { %9860 = vmatpush1.bf16.msra.mxu1 %v13350_v51 }
 0x6ff   : > { %9861 = vmatprep.subr.bf16.mxu1 %v13355_v12 }
 0x702   : > { %9862 = vmatpush1.bf16.msra.mxu1 %v13353_v30 }
 0x703   : > { %9863 = vmatprep.subr.bf16.mxu1 %v13358_v33 }
 0x706   : > { %9864 = vmatpush1.bf16.msra.mxu1 %v13356_v0 }
 0x707   : > { %9865 = vmatprep.subr.bf16.mxu1 %v13361_v27 }
 0x70a   : > { %9866 = vmatpush1.bf16.msra.mxu1 %v13359_v52 }
 0x70b   : > { %9867 = vmatprep.subr.bf16.mxu1 %v13364_v1 }
 0x70e   : > { %9868 = vmatpush1.bf16.msra.mxu1 %v13362_v23 }
 0x70f   : > { %9878 = vmatprep.subr.bf16.mxu1 %v13367_v57 }
 0x711   : > { %9870 = vmatmul.mubr.bf16.vlgmr.msra.gmra.mrb[40].mxu1 %v15353_v34  ;;  %v13379_v34 = vld [vmem:[%s13862_s12 + $0x6d4] ss:$24 sps:$4 sm:$0xff]  }
 0x712   : > { %9879 = vmatpush1.bf16.msra.mxu1 %v13365_v26  ;;  %9910 = vmatprep.mubr.bf16.mxu1 %v15360_v54  ;;  %v13382_v54 = vld [vmem:[%s13862_s12 + $0x704] ss:$24 sps:$4 sm:$0xff]  }
 0x713   : > { %9880 = vmatprep.subr.bf16.mxu1 %v13370_v9 }
 0x716   : > { %9881 = vmatpush1.bf16.msra.mxu1 %v13368_v28 }
 0x717   : > { %9882 = vmatprep.subr.bf16.mxu1 %v13373_v3 }
 0x71a   : > { %9883 = vmatpush1.bf16.msra.mxu1 %v13371_v24 }
 0x71b   : > { %9884 = vmatprep.subr.bf16.mxu1 %v13376_v49 }
 0x71e   : > { %9885 = vmatpush1.bf16.msra.mxu1 %v13374_v6 }
 0x71f   : > { %9886 = vmatprep.subr.bf16.mxu1 %v13379_v34 }
 0x722   : > { %9887 = vmatpush1.bf16.msra.mxu1 %v13377_v19 }
 0x723   : > { %9888 = vmatprep.subr.bf16.mxu1 %v13382_v54 }
 0x726   : > { %9889 = vmatpush1.bf16.msra.mxu1 %v13380_v13 }
 0x727   : > { %9890 = vmatprep.subr.bf16.mxu1 %v13385_v35 }
 0x72a   : > { %9891 = vmatpush1.bf16.msra.mxu1 %v13383_v21 }
 0x72b   : > { %9892 = vmatprep.subr.bf16.mxu1 %v13388_v42 }
 0x72e   : > { %9893 = vmatpush1.bf16.msra.mxu1 %v13386_v29 }
 0x72f   : > { %9894 = vmatprep.subr.bf16.mxu1 %v13391_v40 }
 0x732   : > { %9895 = vmatpush1.bf16.msra.mxu1 %v13389_v48 }
 0x733   : > { %9896 = vmatprep.subr.bf16.mxu1 %v13394_v11 }
 0x736   : > { %9897 = vmatpush1.bf16.msra.mxu1 %v13392_v59 }
 0x737   : > { %9898 = vmatprep.subr.bf16.mxu1 %v13397_v58 }
 0x73a   : > { %9899 = vmatpush1.bf16.msra.mxu1 %v13395_v8 }
 0x73b   : > { %9900 = vmatprep.subr.bf16.mxu1 %v13400_v10 }
 0x73e   : > { %9901 = vmatpush1.bf16.msra.mxu1 %v13398_v16 }
 0x73f   : > { %9902 = vmatprep.subr.bf16.mxu1 %v13403_v62 }
 0x742   : > { %9903 = vmatpush1.bf16.msra.mxu1 %v13401_v50 }
 0x743   : > { %9904 = vmatprep.subr.bf16.mxu1 %v13406_v14 }
 0x746   : > { %9905 = vmatpush1.bf16.msra.mxu1 %v13404_v60 }
 0x747   : > { %9906 = vmatprep.subr.bf16.mxu1 %v13409_v31 }
 0x74a   : > { %9907 = vmatpush1.bf16.msra.mxu1 %v13407_v32 }
 0x74b   : > { %9908 = vmatprep.subr.bf16.mxu1 %v13412_v45 }
 0x74e   : > { %9909 = vmatpush1.bf16.msra.mxu1 %v13410_v39 }
 0x751   : > { %9911 = vmatmul.mubr.bf16.vlgmr.msra.gmra.mrb[40].mxu1 %v15430_v20 }
 0x764   : > { %v9666_v47 = vpop.f32.mrb[36].mxu1 }
 0x765   : > { %v9789_v5 = vpop.f32.mrb[28].mxu0  ;;  %v9668_v4 = vpop.f32.mrb[37].mxu1 }
 0x766   : > { %v9925_v7 = vcombine.low %v9666_v47, %v9668_v4  ;;  %v9791_v17 = vpop.f32.mrb[29].mxu0  ;;  %v9670_v25 = vpop.f32.mrb[38].mxu1 }
 0x767   : > { %v9926_v55 = vcombine.low %v9789_v5, %v9791_v17  ;;  %v9793_v56 = vpop.f32.mrb[30].mxu0  ;;  %v9671_v63 = vpop.f32.mrb[39].mxu1 }
 0x768   : > { %v9933_v37 = vrot.slane %v9925_v7, %v9932_v46  ;;  %v9794_v22 = vpop.f32.mrb[31].mxu0 }
 0x769   : > { %v9940_v36 = vrot.slane %v9926_v55, %v9932_v46 }
 0x76b   : > { %v9941_v20 = vcombine.low %v9933_v37, %v9940_v36 }
 0x76d   : > { %9952 = vst [vmem:[%s400_s7] sm:$0xff] %v9941_v20 }
 0x824   : > { %v9912_v2 = vpop.f32.mrb[40].mxu1 }
 0x825   : > { %v9914_v43 = vpop.f32.mrb[41].mxu1 }
 0x826   : > { %v9942_v18 = vcombine.low %v9912_v2, %v9914_v43  ;;  %v9916_v44 = vpop.f32.mrb[42].mxu1 }
 0x827   : > { %v9917_v61 = vpop.f32.mrb[43].mxu1 }
 0x828   : > { %11324 = vst.sshfl [vmem:[%s400_s7 + $0x8] sm:$0x33 pattern:$0x76325410] %v9942_v18 }
 0x829 PF: > { %s15594_s24 = sld [smem:[#allocation13_spill]]  ;;  %s15595_s19 = sld [smem:[#allocation12_spill]] }
 0x82a   : > { %s15596_s23 = sld [smem:[#allocation14_spill]]  ;;  %s15597_s21 = smov %s13591_s22 }
 0x82f   : > { %p20_p0 = scmp.ge.s32.totalorder %s15594_s24, 4   ;;  %s15598_s22 = smov %s15595_s19 }
 0x831   :  { %22 = sbr.rel (!%p20_p0) target bundleno = 8 (0x8), region = 119 }
 0x838   :  { %9975 = vsyncpa [#allocation3], 1 }
 0x839   :  { %9977 = vsyncpa [#allocation3 + $0x1], 1 }
 0x83a   :  { %9978 = vsyncpa [#allocation5], 1 }
 0x83b   :  { %9980 = vsyncpa [#allocation5 + $0x1], 1 }
 0x83c   :  { %9981 = vsyncpa [#allocation8], 1 }
 0x83d   :  { %9983 = vsyncpa [#allocation8 + $0x1], 1 }

</bundles_post_ra>
